<compile_context>
chip_gen: v5e
topology: v5e:2x2
jax: 0.10.0
libtpu: 0.0.40
codegen_flags: <defaults>
</compile_context>

<pallas_src>
import jax
import jax.numpy as jnp
from jax.experimental import pallas as pl
from jax.experimental.pallas import tpu as pltpu

LEAKY_SLOPE = 0.01
LN_EPS = 1e-5


def _leaky_relu(z):
    return jnp.where(z > 0, z, LEAKY_SLOPE * z)


def _layer_norm(z):
    # Single-pass moments: both cross-lane reductions can issue back-to-back.
    mu = jnp.mean(z, axis=-1, keepdims=True)
    ms = jnp.mean(z * z, axis=-1, keepdims=True)
    var = jnp.maximum(ms - mu * mu, 0.0)
    return (z - mu) * jax.lax.rsqrt(var + LN_EPS)


def _library_size_encoder_kernel(x_ref, w1_ref, b1_ref, w2_ref, b2_ref,
                                 w3_ref, b3_ref, o_ref, acc_ref):
    k = pl.program_id(1)

    @pl.when(k == 0)
    def _init():
        acc_ref[...] = jnp.zeros_like(acc_ref)

    # Layer-0 partial matmul over the K (n_input) axis.  x arrives f32; the
    # bf16 cast happens here (VPU op hidden under the MXU) instead of in a
    # separate wrapper-side XLA pass over x in HBM.
    acc_ref[...] += jnp.dot(x_ref[...].astype(jnp.bfloat16), w1_ref[...],
                            preferred_element_type=jnp.float32)

    @pl.when(k == pl.num_programs(1) - 1)
    def _finish():
        tm = o_ref.shape[-1]
        # FCLayers layer 0 epilogue: bias -> LayerNorm -> LeakyReLU (f32 VPU/EUP)
        h = _leaky_relu(_layer_norm(acc_ref[...] + b1_ref[...]))
        # FCLayers layer 1
        h = jnp.dot(h.astype(jnp.bfloat16), w2_ref[...],
                    preferred_element_type=jnp.float32) + b2_ref[...]
        h = _leaky_relu(_layer_norm(h))
        # Output head (n_hidden -> 1): VPU multiply + lane reduction (avoids a
        # 1-lane MXU tile).  b3 is a scalar read from SMEM.
        y = jnp.sum(h * w3_ref[...], axis=-1) + b3_ref[0, 0]
        # Lane-dense store: one (1, tm) row instead of a masked (tm, 1) column.
        o_ref[...] = _leaky_relu(y).reshape(1, tm).astype(o_ref.dtype)


def _round_up(n, m):
    return ((n + m - 1) // m) * m


def _vmem_limit_bytes():
    # ~48 MiB on v7x (64 MiB physical), ~96 MiB on v5e/v6e (128 MiB physical).
    try:
        info = pltpu.get_tpu_info()
        cap = int(getattr(info, "vmem_capacity_bytes", 64 * 1024 * 1024))
    except Exception:
        cap = 64 * 1024 * 1024
    return min(cap * 3 // 4, 112 * 1024 * 1024)


def library_size_encoder(x, params, *, tm=1024, tk=None):
    """x: (batch, n_input) float32. params: dict of W1,b1,W2,b2,W3,b3 (f32)."""
    batch, n_input = x.shape
    n_hidden = params["W1"].shape[1]

    # Weights as bf16 MXU operands (one-time parameter conversion); biases,
    # W3, b3 stay f32 for the f32 LayerNorm / activation epilogue.
    w1 = params["W1"].astype(jnp.bfloat16)
    w2 = params["W2"].astype(jnp.bfloat16)
    b1 = params["b1"].reshape(1, n_hidden).astype(jnp.float32)
    b2 = params["b2"].reshape(1, n_hidden).astype(jnp.float32)
    w3 = params["W3"].reshape(1, n_hidden).astype(jnp.float32)
    b3 = params["b3"].reshape(1, 1).astype(jnp.float32)

    # Batch tile: large enough to amortize the ~0.35us/step grid overhead and
    # fill the MXU, clamped to the (8-padded) batch for small inputs.
    tm = min(tm, _round_up(batch, 8))
    n_tiles = pl.cdiv(batch, tm)
    batch_pad = n_tiles * tm

    # K (n_input) split: keeps the (tm, tk) x tile + double-buffered W1 slices
    # inside v7x's 64 MiB VMEM for 20k+ gene inputs; nk == 1 for small inputs.
    if tk is None:
        tk = n_input if n_input <= 2048 else 1024
    nk = pl.cdiv(n_input, tk)
    k_pad = nk * tk

    # x keeps its input dtype (f32) -- no wrapper cast pass.  Padding only
    # happens for non-aligned shapes (zero pad rows/cols contribute nothing).
    if batch_pad != batch or k_pad != n_input:
        x = jnp.pad(x, ((0, batch_pad - batch), (0, k_pad - n_input)))
    if k_pad != n_input:
        w1 = jnp.pad(w1, ((0, k_pad - n_input), (0, 0)))

    const = lambda i, k: (0, 0)
    resident = pl.Buffered(1)  # constant-index operands: single VMEM buffer

    w1_spec = pl.BlockSpec(
        (tk, n_hidden), lambda i, k: (k, 0),
        pipeline_mode=resident if nk == 1 else pl.Buffered(2))

    flops = 2 * batch_pad * (k_pad * n_hidden + n_hidden * n_hidden + n_hidden)
    bytes_accessed = (x.size * 4 + w1.size * 2 + w2.size * 2
                      + (b1.size + b2.size + w3.size + b3.size) * 4
                      + batch_pad * 4)

    out = pl.pallas_call(
        _library_size_encoder_kernel,
        out_shape=jax.ShapeDtypeStruct((n_tiles, tm), jnp.float32),
        grid=(n_tiles, nk),
        in_specs=[
            pl.BlockSpec((tm, tk), lambda i, k: (i, k)),                  # x tile
            w1_spec,                                                      # W1 K-slice
            pl.BlockSpec((1, n_hidden), const, pipeline_mode=resident),   # b1
            pl.BlockSpec((n_hidden, n_hidden), const,
                         pipeline_mode=resident),                         # W2
            pl.BlockSpec((1, n_hidden), const, pipeline_mode=resident),   # b2
            pl.BlockSpec((1, n_hidden), const, pipeline_mode=resident),   # W3 row
            pl.BlockSpec(memory_space=pltpu.MemorySpace.SMEM),            # b3 scalar
        ],
        out_specs=pl.BlockSpec((1, tm), lambda i, k: (i, 0)),
        scratch_shapes=[pltpu.VMEM((tm, n_hidden), jnp.float32)],
        compiler_params=pltpu.CompilerParams(
            dimension_semantics=("parallel", "arbitrary"),
            vmem_limit_bytes=_vmem_limit_bytes(),
        ),
        cost_estimate=pl.CostEstimate(
            flops=flops,
            transcendentals=2 * batch_pad,   # one rsqrt per row per LayerNorm
            bytes_accessed=bytes_accessed,
        ),
    )(x, w1, b1, w2, b2, w3, b3)

    # (n_tiles, tm) row-major == batch order; slice off any batch padding.
    return out.reshape(batch_pad, 1)[:batch]


def init_params(key, n_input, n_hidden):
    ks = jax.random.split(key, 6)
    si = 1.0 / jnp.sqrt(jnp.float32(n_input))
    sh = 1.0 / jnp.sqrt(jnp.float32(n_hidden))
    return {
        "W1": jax.random.uniform(ks[0], (n_input, n_hidden), jnp.float32, -si, si),
        "b1": jax.random.uniform(ks[1], (1, n_hidden), jnp.float32, -si, si),
        "W2": jax.random.uniform(ks[2], (n_hidden, n_hidden), jnp.float32, -sh, sh),
        "b2": jax.random.uniform(ks[3], (1, n_hidden), jnp.float32, -sh, sh),
        "W3": jax.random.uniform(ks[4], (n_hidden, 1), jnp.float32, -sh, sh),
        "b3": jax.random.uniform(ks[5], (1, 1), jnp.float32, -sh, sh),
    }


def reference_forward(x, p):
    # Pure-JAX reference with the same bf16-operand / f32-accumulate numerics.
    h = jnp.dot(x.astype(jnp.bfloat16), p["W1"].astype(jnp.bfloat16),
                preferred_element_type=jnp.float32) + p["b1"]
    h = _leaky_relu(_layer_norm(h))
    h = jnp.dot(h.astype(jnp.bfloat16), p["W2"].astype(jnp.bfloat16),
                preferred_element_type=jnp.float32) + p["b2"]
    h = _leaky_relu(_layer_norm(h))
    y = jnp.dot(h, p["W3"]) + p["b3"]
    return _leaky_relu(y)


if __name__ == "__main__":
    # Small shapes consistent with the module: n_input genes -> n_hidden -> 1.
    batch, n_input, n_hidden = 256, 64, 128

    key = jax.random.PRNGKey(0)
    kx, kp = jax.random.split(key)
    x = jax.random.normal(kx, (batch, n_input), jnp.float32)
    params = init_params(kp, n_input, n_hidden)

    out = library_size_encoder(x, params)
    out = jax.block_until_ready(out)

    ref = reference_forward(x, params)
    assert out.shape == (batch, 1), out.shape
    assert jnp.allclose(out, ref, atol=1e-2, rtol=1e-2), (out, ref)

    print("KERNEL_OK")
</pallas_src>

<mosaic_0001>
module attributes {stable_mosaic.version = 11 : i64} {
  func.func @_library_size_encoder_kernel(%arg0: i32, %arg1: i32, %arg2: memref<256x64xf32, #tpu.memory_space<vmem>>, %arg3: memref<64x128xbf16, #tpu.memory_space<vmem>>, %arg4: memref<1x128xf32, #tpu.memory_space<vmem>>, %arg5: memref<128x128xbf16, #tpu.memory_space<vmem>>, %arg6: memref<1x128xf32, #tpu.memory_space<vmem>>, %arg7: memref<1x128xf32, #tpu.memory_space<vmem>>, %arg8: memref<1x1xf32, #tpu.memory_space<smem>>, %arg9: memref<1x256xf32, #tpu.memory_space<vmem>>, %arg10: memref<256x128xf32, #tpu.memory_space<vmem>>) attributes {dimension_semantics = [#tpu.dimension_semantics<parallel>, #tpu.dimension_semantics<arbitrary>], iteration_bounds = array<i64: 1, 1>, scalar_prefetch = 0 : i64, scratch_operands = 1 : i64, tpu.core_type = #tpu.core_type<tc>, window_params = [{transform_indices = @transform_0, window_bounds = array<i64: 256, 64>}, {pipeline_mode = #tpu.pipeline_mode<synchronous>, transform_indices = @transform_1, window_bounds = array<i64: 64, 128>}, {pipeline_mode = #tpu.pipeline_mode<synchronous>, transform_indices = @transform_2, window_bounds = array<i64: 1, 128>}, {pipeline_mode = #tpu.pipeline_mode<synchronous>, transform_indices = @transform_3, window_bounds = array<i64: 128, 128>}, {pipeline_mode = #tpu.pipeline_mode<synchronous>, transform_indices = @transform_4, window_bounds = array<i64: 1, 128>}, {pipeline_mode = #tpu.pipeline_mode<synchronous>, transform_indices = @transform_5, window_bounds = array<i64: 1, 128>}, {transform_indices = @transform_6, window_bounds = array<i64: 1, 1>}, {transform_indices = @transform_7, window_bounds = array<i64: 1, 256>}]} {
    %c0_i32 = arith.constant 0 : i32
    %0 = arith.cmpi eq, %arg1, %c0_i32 : i32
    %1 = arith.extui %0 : i1 to i32
    %c0_i32_0 = arith.constant 0 : i32
    %2 = arith.cmpi ne, %1, %c0_i32_0 : i32
    scf.if %2 {
      %cst_10 = arith.constant 0.000000e+00 : f32
      %13 = vector.broadcast %cst_10 : f32 to vector<256x128xf32>
      %c0_11 = arith.constant 0 : index
      %c0_12 = arith.constant 0 : index
      %14 = vector.load %arg10[%c0_11, %c0_12] : memref<256x128xf32, #tpu.memory_space<vmem>>, vector<256x128xf32>
      tpu.vector_store %arg10[%c0_11, %c0_12], %13 {strides = array<i32>} : memref<256x128xf32, #tpu.memory_space<vmem>>, vector<256x128xf32>,
    } else {
    }
    %c0 = arith.constant 0 : index
    %c0_1 = arith.constant 0 : index
    %3 = vector.load %arg10[%c0, %c0_1] : memref<256x128xf32, #tpu.memory_space<vmem>>, vector<256x128xf32>
    %c0_2 = arith.constant 0 : index
    %c0_3 = arith.constant 0 : index
    %4 = vector.load %arg2[%c0_2, %c0_3] : memref<256x64xf32, #tpu.memory_space<vmem>>, vector<256x64xf32>
    %5 = arith.truncf %4 : vector<256x64xf32> to vector<256x64xbf16>
    %c0_4 = arith.constant 0 : index
    %c0_5 = arith.constant 0 : index
    %6 = vector.load %arg3[%c0_4, %c0_5] : memref<64x128xbf16, #tpu.memory_space<vmem>>, vector<64x128xbf16>
    %cst = arith.constant dense<0.000000e+00> : vector<256x128xf32>
    %7 = tpu.matmul %5, %6, %cst {dimension_numbers = #tpu.dot_dimension_numbers<[1], [0], [0], [1], [0, 0, 1, 1], [], []>} : vector<256x64xbf16>, vector<64x128xbf16>, vector<256x128xf32> -> vector<256x128xf32>
    %8 = arith.addf %3, %7 : vector<256x128xf32>
    %c0_6 = arith.constant 0 : index
    %c0_7 = arith.constant 0 : index
    %9 = vector.load %arg10[%c0_6, %c0_7] : memref<256x128xf32, #tpu.memory_space<vmem>>, vector<256x128xf32>
    tpu.vector_store %arg10[%c0_6, %c0_7], %8 {strides = array<i32>} : memref<256x128xf32, #tpu.memory_space<vmem>>, vector<256x128xf32>,
    %c0_i32_8 = arith.constant 0 : i32
    %10 = arith.cmpi eq, %arg1, %c0_i32_8 : i32
    %11 = arith.extui %10 : i1 to i32
    %c0_i32_9 = arith.constant 0 : i32
    %12 = arith.cmpi ne, %11, %c0_i32_9 : i32
    scf.if %12 {
      %c0_10 = arith.constant 0 : index
      %c0_11 = arith.constant 0 : index
      %13 = vector.load %arg10[%c0_10, %c0_11] : memref<256x128xf32, #tpu.memory_space<vmem>>, vector<256x128xf32>
      %c0_12 = arith.constant 0 : index
      %c0_13 = arith.constant 0 : index
      %14 = vector.load %arg4[%c0_12, %c0_13] : memref<1x128xf32, #tpu.memory_space<vmem>>, vector<1x128xf32>
      %15 = vector.broadcast %14 : vector<1x128xf32> to vector<256x128xf32>
      %16 = arith.addf %13, %15 : vector<256x128xf32>
      %cst_14 = arith.constant dense<0.000000e+00> : vector<256xf32>
      %17 = vector.multi_reduction <add>, %16, %cst_14 [1] : vector<256x128xf32> to vector<256xf32>
      %18 = vector.shape_cast %17 : vector<256xf32> to vector<256x1xf32>
      %cst_15 = arith.constant 1.280000e+02 : f32
      %19 = vector.broadcast %cst_15 : f32 to vector<256x1xf32>
      %20 = arith.divf %18, %19 : vector<256x1xf32>
      %21 = arith.mulf %16, %16 : vector<256x128xf32>
      %cst_16 = arith.constant dense<0.000000e+00> : vector<256xf32>
      %22 = vector.multi_reduction <add>, %21, %cst_16 [1] : vector<256x128xf32> to vector<256xf32>
      %23 = vector.shape_cast %22 : vector<256xf32> to vector<256x1xf32>
      %cst_17 = arith.constant 1.280000e+02 : f32
      %24 = vector.broadcast %cst_17 : f32 to vector<256x1xf32>
      %25 = arith.divf %23, %24 : vector<256x1xf32>
      %26 = arith.mulf %20, %20 : vector<256x1xf32>
      %27 = arith.subf %25, %26 : vector<256x1xf32>
      %cst_18 = arith.constant 0.000000e+00 : f32
      %28 = vector.broadcast %cst_18 : f32 to vector<256x1xf32>
      %29 = arith.maximumf %27, %28 : vector<256x1xf32>
      %30 = vector.broadcast %20 : vector<256x1xf32> to vector<256x128xf32>
      %31 = arith.subf %16, %30 : vector<256x128xf32>
      %cst_19 = arith.constant 9.99999974E-6 : f32
      %32 = vector.broadcast %cst_19 : f32 to vector<256x1xf32>
      %33 = arith.addf %29, %32 : vector<256x1xf32>
      %34 = math.rsqrt %33 : vector<256x1xf32>
      %35 = vector.broadcast %34 : vector<256x1xf32> to vector<256x128xf32>
      %36 = arith.mulf %31, %35 : vector<256x128xf32>
      %cst_20 = arith.constant 0.000000e+00 : f32
      %37 = vector.broadcast %cst_20 : f32 to vector<256x128xf32>
      %38 = arith.cmpf ogt, %36, %37 : vector<256x128xf32>
      %cst_21 = arith.constant 0.00999999977 : f32
      %39 = vector.broadcast %cst_21 : f32 to vector<256x128xf32>
      %40 = arith.mulf %39, %36 : vector<256x128xf32>
      %41 = arith.select %38, %36, %40 : vector<256x128xi1>, vector<256x128xf32>
      %42 = arith.truncf %41 : vector<256x128xf32> to vector<256x128xbf16>
      %c0_22 = arith.constant 0 : index
      %c0_23 = arith.constant 0 : index
      %43 = vector.load %arg5[%c0_22, %c0_23] : memref<128x128xbf16, #tpu.memory_space<vmem>>, vector<128x128xbf16>
      %cst_24 = arith.constant dense<0.000000e+00> : vector<256x128xf32>
      %44 = tpu.matmul %42, %43, %cst_24 {dimension_numbers = #tpu.dot_dimension_numbers<[1], [0], [0], [1], [0, 0, 1, 1], [], []>} : vector<256x128xbf16>, vector<128x128xbf16>, vector<256x128xf32> -> vector<256x128xf32>
      %c0_25 = arith.constant 0 : index
      %c0_26 = arith.constant 0 : index
      %45 = vector.load %arg6[%c0_25, %c0_26] : memref<1x128xf32, #tpu.memory_space<vmem>>, vector<1x128xf32>
      %46 = vector.broadcast %45 : vector<1x128xf32> to vector<256x128xf32>
      %47 = arith.addf %44, %46 : vector<256x128xf32>
      %cst_27 = arith.constant dense<0.000000e+00> : vector<256xf32>
      %48 = vector.multi_reduction <add>, %47, %cst_27 [1] : vector<256x128xf32> to vector<256xf32>
      %49 = vector.shape_cast %48 : vector<256xf32> to vector<256x1xf32>
      %cst_28 = arith.constant 1.280000e+02 : f32
      %50 = vector.broadcast %cst_28 : f32 to vector<256x1xf32>
      %51 = arith.divf %49, %50 : vector<256x1xf32>
      %52 = arith.mulf %47, %47 : vector<256x128xf32>
      %cst_29 = arith.constant dense<0.000000e+00> : vector<256xf32>
      %53 = vector.multi_reduction <add>, %52, %cst_29 [1] : vector<256x128xf32> to vector<256xf32>
      %54 = vector.shape_cast %53 : vector<256xf32> to vector<256x1xf32>
      %cst_30 = arith.constant 1.280000e+02 : f32
      %55 = vector.broadcast %cst_30 : f32 to vector<256x1xf32>
      %56 = arith.divf %54, %55 : vector<256x1xf32>
      %57 = arith.mulf %51, %51 : vector<256x1xf32>
      %58 = arith.subf %56, %57 : vector<256x1xf32>
      %cst_31 = arith.constant 0.000000e+00 : f32
      %59 = vector.broadcast %cst_31 : f32 to vector<256x1xf32>
      %60 = arith.maximumf %58, %59 : vector<256x1xf32>
      %61 = vector.broadcast %51 : vector<256x1xf32> to vector<256x128xf32>
      %62 = arith.subf %47, %61 : vector<256x128xf32>
      %cst_32 = arith.constant 9.99999974E-6 : f32
      %63 = vector.broadcast %cst_32 : f32 to vector<256x1xf32>
      %64 = arith.addf %60, %63 : vector<256x1xf32>
      %65 = math.rsqrt %64 : vector<256x1xf32>
      %66 = vector.broadcast %65 : vector<256x1xf32> to vector<256x128xf32>
      %67 = arith.mulf %62, %66 : vector<256x128xf32>
      %cst_33 = arith.constant 0.000000e+00 : f32
      %68 = vector.broadcast %cst_33 : f32 to vector<256x128xf32>
      %69 = arith.cmpf ogt, %67, %68 : vector<256x128xf32>
      %cst_34 = arith.constant 0.00999999977 : f32
      %70 = vector.broadcast %cst_34 : f32 to vector<256x128xf32>
      %71 = arith.mulf %70, %67 : vector<256x128xf32>
      %72 = arith.select %69, %67, %71 : vector<256x128xi1>, vector<256x128xf32>
      %c0_35 = arith.constant 0 : index
      %c0_36 = arith.constant 0 : index
      %73 = vector.load %arg7[%c0_35, %c0_36] : memref<1x128xf32, #tpu.memory_space<vmem>>, vector<1x128xf32>
      %74 = vector.broadcast %73 : vector<1x128xf32> to vector<256x128xf32>
      %75 = arith.mulf %72, %74 : vector<256x128xf32>
      %cst_37 = arith.constant dense<0.000000e+00> : vector<256xf32>
      %76 = vector.multi_reduction <add>, %75, %cst_37 [1] : vector<256x128xf32> to vector<256xf32>
      %c0_38 = arith.constant 0 : index
      %c0_39 = arith.constant 0 : index
      %77 = memref.load %arg8[%c0_38, %c0_39] : memref<1x1xf32, #tpu.memory_space<smem>>
      %78 = vector.broadcast %77 : f32 to vector<256xf32>
      %79 = arith.addf %76, %78 : vector<256xf32>
      %cst_40 = arith.constant 0.000000e+00 : f32
      %80 = vector.broadcast %cst_40 : f32 to vector<256xf32>
      %81 = arith.cmpf ogt, %79, %80 : vector<256xf32>
      %cst_41 = arith.constant 0.00999999977 : f32
      %82 = vector.broadcast %cst_41 : f32 to vector<256xf32>
      %83 = arith.mulf %82, %79 : vector<256xf32>
      %84 = arith.select %81, %79, %83 : vector<256xi1>, vector<256xf32>
      %85 = vector.shape_cast %84 : vector<256xf32> to vector<1x256xf32>
      %c0_42 = arith.constant 0 : index
      %c0_43 = arith.constant 0 : index
      %86 = vector.load %arg9[%c0_42, %c0_43] : memref<1x256xf32, #tpu.memory_space<vmem>>, vector<1x256xf32>
      tpu.vector_store %arg9[%c0_42, %c0_43], %85 {strides = array<i32>} : memref<1x256xf32, #tpu.memory_space<vmem>>, vector<1x256xf32>,
    } else {
    }
    return
  }
  func.func @transform_0(%arg0: i32, %arg1: i32) -> (i32, i32) {
    %c0_i32 = arith.constant 0 : i32
    return %arg0, %arg1 : i32, i32
  }
  func.func @transform_1(%arg0: i32, %arg1: i32) -> (i32, i32) {
    %c0_i32 = arith.constant 0 : i32
    %c0_i32_0 = arith.constant 0 : i32
    return %arg1, %c0_i32 : i32, i32
  }
  func.func @transform_2(%arg0: i32, %arg1: i32) -> (i32, i32) {
    %c0_i32 = arith.constant 0 : i32
    %c0_i32_0 = arith.constant 0 : i32
    %c0_i32_1 = arith.constant 0 : i32
    return %c0_i32, %c0_i32_0 : i32, i32
  }
  func.func @transform_3(%arg0: i32, %arg1: i32) -> (i32, i32) {
    %c0_i32 = arith.constant 0 : i32
    %c0_i32_0 = arith.constant 0 : i32
    %c0_i32_1 = arith.constant 0 : i32
    return %c0_i32, %c0_i32_0 : i32, i32
  }
  func.func @transform_4(%arg0: i32, %arg1: i32) -> (i32, i32) {
    %c0_i32 = arith.constant 0 : i32
    %c0_i32_0 = arith.constant 0 : i32
    %c0_i32_1 = arith.constant 0 : i32
    return %c0_i32, %c0_i32_0 : i32, i32
  }
  func.func @transform_5(%arg0: i32, %arg1: i32) -> (i32, i32) {
    %c0_i32 = arith.constant 0 : i32
    %c0_i32_0 = arith.constant 0 : i32
    %c0_i32_1 = arith.constant 0 : i32
    return %c0_i32, %c0_i32_0 : i32, i32
  }
  func.func @transform_6(%arg0: i32, %arg1: i32) -> (i32, i32) {
    %c0_i32 = arith.constant 0 : i32
    %c0_i32_0 = arith.constant 0 : i32
    %c0_i32_1 = arith.constant 0 : i32
    return %c0_i32, %c0_i32_0 : i32, i32
  }
  func.func @transform_7(%arg0: i32, %arg1: i32) -> (i32, i32) {
    %c0_i32 = arith.constant 0 : i32
    %c0_i32_0 = arith.constant 0 : i32
    return %arg0, %c0_i32 : i32, i32
  }
}

</mosaic_0001>

<bundles_post_ra>
// kernel: tpu_custom_call.1
= control target key start
LH: loop header
LB: loop body
LE: loop exit
PB: predicated region body
PF: predicated region fallthrough
CT: control target
= control target key end

     0   :  { %s5809_s0 = inlined_call_operand.vmem [shape: f32[256,64], index: 0, kind: input, shape index: {}]   ;;  %s5810_s1 = inlined_call_operand.vmem [shape: bf16[64,128], index: 1, kind: input, shape index: {}]   ;;  %s5811_s2 = inlined_call_operand.vmem [shape: f32[1,128], index: 2, kind: input, shape index: {}]   ;;  %s5812_s3 = inlined_call_operand.vmem [shape: bf16[128,128], index: 3, kind: input, shape index: {}]   ;;  %s5813_s4 = inlined_call_operand.vmem [shape: f32[1,128], index: 4, kind: input, shape index: {}]   ;;  %s5814_s5 = inlined_call_operand.vmem [shape: f32[1,128], index: 5, kind: input, shape index: {}]   ;;  %s5815_s6 = inlined_call_operand.<no memory space> [shape: f32[1,1], index: 6, kind: input, shape index: {}]   ;;  %s5816_s7 = inlined_call_operand.hbm [shape: f32[1,256], index: 7, kind: output, shape index: {}]  }
   0x1   :  { %v3389_v0 = vld [vmem:[%s5810_s1 + $0x18] sm:$0xff]  ;;  %v3388_v1 = vld [vmem:[%s5810_s1 + $0x10] sm:$0xff] }
   0x2   :  { %230 = vmatpush.bf16.msra.mxu0 %v3389_v0  ;;  %3398 = vmatpush.bf16.msra.mxu3 %v3389_v0 }
   0x3   :  { %13 = vsyncpa [#allocation5], 0  ;;  %v3387_v2 = vld [vmem:[%s5810_s1 + $0x8] sm:$0xff]  ;;  %v3386_v3 = vld [vmem:[%s5810_s1] sm:$0xff]  ;;  %vm177_vm0 = vcmask 523264   ;;  %s3313_s26 = sshll.u32 %s5816_s7, 4  ;;  %s3314_s26 = int_to_ptr.hbm [resolvable:$true] %s3313_s26 }
   0x4   :  { %v97_v4 = vld [vmem:[%s5809_s0] sm:$0xff]  ;;  %v98_v5 = vld [vmem:[%s5809_s0 + $0x8] sm:$0xff]  ;;  %v115_v6 = vld [vmem:[%s5809_s0 + $0x90] sm:$0xff] }
   0x5   :  { %v116_v7 = vld [vmem:[%s5809_s0 + $0x98] sm:$0xff]  ;;  %v129_v8 = vpack.c.bf16 %v98_v5, %v97_v4  ;;  %v99_v10 = vld [vmem:[%s5809_s0 + $0x10] sm:$0xff]  ;;  %v117_v12 = vld [vmem:[%s5809_s0 + $0xa0] sm:$0xff] }
   0x6   :  { %231 = vmatpush.bf16.msra.mxu0 %v3388_v1  ;;  %3399 = vmatpush.bf16.msra.mxu3 %v3388_v1  ;;  %v138_v9 = vpack.c.bf16 %v116_v7, %v115_v6  ;;  %v100_v11 = vld [vmem:[%s5809_s0 + $0x18] sm:$0xff]  ;;  %v118_v13 = vld [vmem:[%s5809_s0 + $0xa8] sm:$0xff]  ;;  %v101_v16 = vld [vmem:[%s5809_s0 + $0x20] sm:$0xff] }
   0x7   :  { %v130_v14 = vpack.c.bf16 %v100_v11, %v99_v10  ;;  %v139_v15 = vpack.c.bf16 %v118_v13, %v117_v12  ;;  %v102_v17 = vld [vmem:[%s5809_s0 + $0x28] sm:$0xff]  ;;  %v119_v18 = vld [vmem:[%s5809_s0 + $0xb0] sm:$0xff]  ;;  %v120_v19 = vld [vmem:[%s5809_s0 + $0xb8] sm:$0xff] }
   0x8   :  { %v131_v20 = vpack.c.bf16 %v102_v17, %v101_v16  ;;  %v140_v21 = vpack.c.bf16 %v120_v19, %v119_v18  ;;  %v121_v22 = vld [vmem:[%s5809_s0 + $0xc0] sm:$0xff]  ;;  %v122_v23 = vld [vmem:[%s5809_s0 + $0xc8] sm:$0xff]  ;;  %v103_v24 = vld [vmem:[%s5809_s0 + $0x30] sm:$0xff] }
   0x9   :  { %v104_v25 = vld [vmem:[%s5809_s0 + $0x38] sm:$0xff]  ;;  %v141_v26 = vpack.c.bf16 %v122_v23, %v121_v22  ;;  %v105_v28 = vld [vmem:[%s5809_s0 + $0x40] sm:$0xff]  ;;  %v106_v29 = vld [vmem:[%s5809_s0 + $0x48] sm:$0xff] }
   0xa   :  { %232 = vmatpush.bf16.msra.mxu0 %v3387_v2  ;;  %3400 = vmatpush.bf16.msra.mxu3 %v3387_v2  ;;  %v132_v27 = vpack.c.bf16 %v104_v25, %v103_v24  ;;  %v123_v30 = vld [vmem:[%s5809_s0 + $0xd0] sm:$0xff]  ;;  %v124_v31 = vld [vmem:[%s5809_s0 + $0xd8] sm:$0xff]  ;;  %v133_v32 = vpack.c.bf16 %v106_v29, %v105_v28  ;;  %v125_v36 = vld [vmem:[%s5809_s0 + $0xe0] sm:$0xff] }
   0xb   :  { %v142_v33 = vpack.c.bf16 %v124_v31, %v123_v30  ;;  %v107_v34 = vld [vmem:[%s5809_s0 + $0x50] sm:$0xff]  ;;  %v108_v35 = vld [vmem:[%s5809_s0 + $0x58] sm:$0xff]  ;;  %v126_v37 = vld [vmem:[%s5809_s0 + $0xe8] sm:$0xff] }
   0xc   :  { %v134_v38 = vpack.c.bf16 %v108_v35, %v107_v34  ;;  %v143_v39 = vpack.c.bf16 %v126_v37, %v125_v36  ;;  %v109_v40 = vld [vmem:[%s5809_s0 + $0x60] sm:$0xff]  ;;  %v110_v41 = vld [vmem:[%s5809_s0 + $0x68] sm:$0xff]  ;;  %v127_v42 = vld [vmem:[%s5809_s0 + $0xf0] sm:$0xff] }
   0xd   :  { %v128_v43 = vld [vmem:[%s5809_s0 + $0xf8] sm:$0xff]  ;;  %v135_v44 = vpack.c.bf16 %v110_v41, %v109_v40  ;;  %v111_v46 = vld [vmem:[%s5809_s0 + $0x70] sm:$0xff]  ;;  %v3741_v49 = vld [vmem:[%s5811_s2] ss:$0 sm:$0xff] }
   0xe   :  { %233 = vmatpush.bf16.msra.mxu0 %v3386_v3  ;;  %3401 = vmatpush.bf16.msra.mxu3 %v3386_v3  ;;  %v144_v45 = vpack.c.bf16 %v128_v43, %v127_v42  ;;  %v112_v47 = vld [vmem:[%s5809_s0 + $0x78] sm:$0xff]  ;;  %v113_v52 = vld [vmem:[%s5809_s0 + $0x80] sm:$0xff]  ;;  %v114_v53 = vld [vmem:[%s5809_s0 + $0x88] sm:$0xff]  ;;  %v3578_v42 = vmov 128.0  }
   0xf   :  { %v136_v48 = vpack.c.bf16 %v112_v47, %v111_v46  ;;  %v137_v54 = vpack.c.bf16 %v114_v53, %v113_v52  ;;  %3419 = vrcp.f32 %v3578_v42 }
  0x11   :  { %3338 = vmatmul.msk.bf16.vlgmr.msra.gmra.mxu0 %vm177_vm0, %v129_v8  ;;  %3347 = vmatmul.msk.bf16.vlgmr.msra.gmra.mxu3 %vm177_vm0, %v138_v9 }
  0x21   :  { %3339 = vmatmul.msk.bf16.gmra.mxu0 %vm177_vm0, %v130_v14  ;;  %3348 = vmatmul.msk.bf16.gmra.mxu3 %vm177_vm0, %v139_v15 }
  0x31   :  { %3340 = vmatmul.msk.bf16.gmra.mxu0 %vm177_vm0, %v131_v20  ;;  %3349 = vmatmul.msk.bf16.gmra.mxu3 %vm177_vm0, %v140_v21 }
  0x41   :  { %3350 = vmatmul.msk.bf16.gmra.mxu3 %vm177_vm0, %v141_v26  ;;  %3341 = vmatmul.msk.bf16.gmra.mxu0 %vm177_vm0, %v132_v27 }
  0x51   :  { %3342 = vmatmul.msk.bf16.gmra.mxu0 %vm177_vm0, %v133_v32  ;;  %3351 = vmatmul.msk.bf16.gmra.mxu3 %vm177_vm0, %v142_v33 }
  0x61   :  { %3343 = vmatmul.msk.bf16.gmra.mxu0 %vm177_vm0, %v134_v38  ;;  %3352 = vmatmul.msk.bf16.gmra.mxu3 %vm177_vm0, %v143_v39 }
  0x71   :  { %3344 = vmatmul.msk.bf16.gmra.mxu0 %vm177_vm0, %v135_v44  ;;  %3353 = vmatmul.msk.bf16.gmra.mxu3 %vm177_vm0, %v144_v45  ;;  %v3420_v45 = vpop.eup %3419 }
  0x72   :  { %vm519_vm1 = vweird.f32 %v3420_v45 }
  0x81   :  { %3345 = vmatmul.msk.bf16.gmra.mxu0 %vm177_vm0, %v136_v48  ;;  %v515_v48 = vmul.f32 128.0, %v3420_v45 }
  0x83   :  { %v516_v53 = vsub.f32 1.0, %v515_v48 }
  0x8e   :  { %v235_v50 = vpop.f32.mrf.mxu0 }
  0x8f   :  { %v3744_v51 = vadd.f32 %v3741_v49, %v235_v50 }
  0x91   :  { %450 = vadd.xlane.f32.xlu0 %v3744_v51  ;;  %v553_v55 = vmul.f32 %v3744_v51, %v3744_v51  ;;  %3346 = vmatmul.msk.bf16.gmra.mxu0 %vm177_vm0, %v137_v54 }
  0x93   :  { %585 = vadd.xlane.f32.xlu1 %v553_v55  ;;  %v3397_v55 = vld [vmem:[%s5812_s3 + $0x38] sm:$0xff] }
  0x94   :  { %v280_v56 = vpop.f32.mrf.mxu3  ;;  %1373 = vmatpush.bf16.msra.mxu1 %v3397_v55  ;;  %3402 = vmatpush.bf16.msra.mxu2 %v3397_v55 }
  0x95   :  { %v3757_v57 = vadd.f32 %v3741_v49, %v280_v56 }
  0x96   :  { %v237_v58 = vpop.f32.mrf.mxu0 }
  0x97   :  { %5829 = vst [vmem:[#allocation7_spill] sm:$0xff] %v3757_v57  ;;  %v571_v59 = vmul.f32 %v3757_v57, %v3757_v57  ;;  %v3763_v60 = vadd.f32 %v3741_v49, %v237_v58  ;;  %v517_v58 = vmul.f32 %v3420_v45, %v516_v53 }
  0x99   :  { %621 = vadd.xlane.f32.xlu2 %v571_v59  ;;  %486 = vadd.xlane.f32.xlu0 %v3757_v57  ;;  %v554_v0 = vmul.f32 %v3763_v60, %v3763_v60  ;;  %v3396_v59 = vld [vmem:[%s5812_s3 + $0x30] sm:$0xff] }
  0x9a   :  { %1374 = vmatpush.bf16.msra.mxu1 %v3396_v59  ;;  %3403 = vmatpush.bf16.msra.mxu2 %v3396_v59 }
  0x9c   :  { %v282_v61 = vpop.f32.mrf.mxu3 }
  0x9d   :  { %v3773_v2 = vadd.f32 %v3741_v49, %v282_v61 }
  0x9e   :  { %v240_v62 = vpop.f32.mrf.mxu0 }
  0x9f   :  { %v3766_v63 = vadd.f32 %v3741_v49, %v240_v62  ;;  %v572_v7 = vmul.f32 %v3773_v2, %v3773_v2 }
  0xa1   :  { %452 = vadd.xlane.f32.xlu0 %v3763_v60  ;;  %587 = vadd.xlane.f32.xlu2 %v554_v0  ;;  %v555_v12 = vmul.f32 %v3766_v63, %v3766_v63 }
  0xa2   :  { %454 = vadd.xlane.f32.xlu1 %v3766_v63 }
  0xa4   :  { %v285_v1 = vpop.f32.mrf.mxu3 }
  0xa5   :  { %v3776_v3 = vadd.f32 %v3741_v49, %v285_v1  ;;  %v518_v1 = vadd.f32 %v3420_v45, %v517_v58 }
  0xa6   :  { %v242_v4 = vpop.f32.mrf.mxu0 }
  0xa7   :  { %5830 = vst [vmem:[#allocation8_spill] sm:$0xff] %v3776_v3  ;;  %v3787_v8 = vadd.f32 %v3741_v49, %v242_v4  ;;  %v573_v13 = vmul.f32 %v3776_v3, %v3776_v3 }
  0xa9   :  { %488 = vadd.xlane.f32.xlu0 %v3773_v2  ;;  %v556_v18 = vmul.f32 %v3787_v8, %v3787_v8 }
  0xaa   :  { %490 = vadd.xlane.f32.xlu1 %v3776_v3 }
  0xac   :  { %v287_v5 = vpop.f32.mrf.mxu3 }
  0xad   :  { %v3781_v6 = vadd.f32 %v3741_v49, %v287_v5  ;;  %v3395_v5 = vld [vmem:[%s5812_s3 + $0x28] sm:$0xff] }
  0xae   :  { %v245_v9 = vpop.f32.mrf.mxu0  ;;  %1375 = vmatpush.bf16.msra.mxu1 %v3395_v5  ;;  %3404 = vmatpush.bf16.msra.mxu2 %v3395_v5 }
  0xaf   :  { %5831 = vst [vmem:[#allocation9_spill] sm:$0xff] %v3781_v6  ;;  %492 = vadd.xlane.f32.xlu2 %v3781_v6  ;;  %v3791_v10 = vadd.f32 %v3741_v49, %v245_v9  ;;  %v574_v15 = vmul.f32 %v3781_v6, %v3781_v6  ;;  %v3887_v9 = vsel %vm519_vm1, %v3420_v45, %v518_v1 }
  0xb1   :  { %623 = vadd.xlane.f32.xlu0 %v572_v7  ;;  %v557_v22 = vmul.f32 %v3791_v10, %v3791_v10 }
  0xb2   :  { %456 = vadd.xlane.f32.xlu1 %v3787_v8 }
  0xb4   :  { %v290_v11 = vpop.f32.mrf.mxu3 }
  0xb5   :  { %v3799_v14 = vadd.f32 %v3741_v49, %v290_v11 }
  0xb6   :  { %v247_v17 = vpop.f32.mrf.mxu0 }
  0xb7   :  { %458 = vadd.xlane.f32.xlu2 %v3791_v10  ;;  %5832 = vst [vmem:[#allocation10_spill] sm:$0xff] %v3799_v14  ;;  %v575_v16 = vmul.f32 %v3799_v14, %v3799_v14  ;;  %v3808_v20 = vadd.f32 %v3741_v49, %v247_v17 }
  0xb9   :  { %589 = vadd.xlane.f32.xlu0 %v555_v12  ;;  %v558_v23 = vmul.f32 %v3808_v20, %v3808_v20 }
  0xba   :  { %625 = vadd.xlane.f32.xlu1 %v573_v13  ;;  %v3394_v13 = vld [vmem:[%s5812_s3 + $0x20] sm:$0xff] }
  0xbb   :  { %1376 = vmatpush.bf16.msra.mxu1 %v3394_v13  ;;  %3405 = vmatpush.bf16.msra.mxu2 %v3394_v13 }
  0xbc   :  { %v292_v19 = vpop.f32.mrf.mxu3 }
  0xbd   :  { %v3811_v21 = vadd.f32 %v3741_v49, %v292_v19 }
  0xbe   :  { %v250_v25 = vpop.f32.mrf.mxu0 }
  0xbf   :  { %627 = vadd.xlane.f32.xlu2 %v574_v15  ;;  %5833 = vst [vmem:[#allocation11_spill] sm:$0xff] %v3811_v21  ;;  %v576_v24 = vmul.f32 %v3811_v21, %v3811_v21  ;;  %v3826_v29 = vadd.f32 %v3741_v49, %v250_v25 }
  0xc1   :  { %629 = vadd.xlane.f32.xlu0 %v575_v16  ;;  %v559_v32 = vmul.f32 %v3826_v29, %v3826_v29 }
  0xc2   :  { %591 = vadd.xlane.f32.xlu1 %v556_v18 }
  0xc4   :  { %v295_v26 = vpop.f32.mrf.mxu3 }
  0xc5   :  { %v3820_v27 = vadd.f32 %v3741_v49, %v295_v26 }
  0xc6   :  { %v252_v28 = vpop.f32.mrf.mxu0 }
  0xc7   :  { %593 = vadd.xlane.f32.xlu2 %v557_v22  ;;  %5834 = vst [vmem:[#allocation12_spill] sm:$0xff] %v3820_v27  ;;  %v3830_v30 = vadd.f32 %v3741_v49, %v252_v28  ;;  %v577_v37 = vmul.f32 %v3820_v27, %v3820_v27 }
  0xc9   :  { %595 = vadd.xlane.f32.xlu0 %v558_v23  ;;  %v560_v34 = vmul.f32 %v3830_v30, %v3830_v30 }
  0xca   :  { %631 = vadd.xlane.f32.xlu1 %v576_v24  ;;  %v3393_v24 = vld [vmem:[%s5812_s3 + $0x18] sm:$0xff] }
  0xcb   :  { %1377 = vmatpush.bf16.msra.mxu1 %v3393_v24  ;;  %3406 = vmatpush.bf16.msra.mxu2 %v3393_v24 }
  0xcc   :  { %v297_v31 = vpop.f32.mrf.mxu3 }
  0xcd   :  { %v3839_v35 = vadd.f32 %v3741_v49, %v297_v31 }
  0xce   :  { %v255_v33 = vpop.f32.mrf.mxu0 }
  0xcf   :  { %494 = vadd.xlane.f32.xlu2 %v3799_v14  ;;  %5835 = vst [vmem:[#allocation13_spill] sm:$0xff] %v3839_v35  ;;  %v3842_v36 = vadd.f32 %v3741_v49, %v255_v33  ;;  %v578_v40 = vmul.f32 %v3839_v35, %v3839_v35 }
  0xd1   :  { %496 = vadd.xlane.f32.xlu0 %v3811_v21  ;;  %v561_v38 = vmul.f32 %v3842_v36, %v3842_v36 }
  0xd2   :  { %498 = vadd.xlane.f32.xlu1 %v3820_v27 }
  0xd4   :  { %v300_v41 = vpop.f32.mrf.mxu3 }
  0xd5   :  { %v3852_v43 = vadd.f32 %v3741_v49, %v300_v41 }
  0xd6   :  { %v257_v39 = vpop.f32.mrf.mxu0 }
  0xd7   :  { %460 = vadd.xlane.f32.xlu2 %v3808_v20  ;;  %5836 = vst [vmem:[#allocation14_spill] sm:$0xff] %v3852_v43  ;;  %v579_v44 = vmul.f32 %v3852_v43, %v3852_v43  ;;  %v3857_v46 = vadd.f32 %v3741_v49, %v257_v39 }
  0xd9   :  { %462 = vadd.xlane.f32.xlu0 %v3826_v29  ;;  %v562_v62 = vmul.f32 %v3857_v46, %v3857_v46 }
  0xda   :  { %464 = vadd.xlane.f32.xlu1 %v3830_v30 }
  0xdc   :  { %v302_v50 = vpop.f32.mrf.mxu3 }
  0xdd   :  { %v3865_v54 = vadd.f32 %v3741_v49, %v302_v50 }
  0xde   :  { %v260_v47 = vpop.f32.mrf.mxu0 }
  0xdf   :  { %597 = vadd.xlane.f32.xlu2 %v559_v32  ;;  %v3862_v52 = vadd.f32 %v3741_v49, %v260_v47  ;;  %5837 = vst [vmem:[#allocation15_spill] sm:$0xff] %v3865_v54  ;;  %v580_v16 = vmul.f32 %v3865_v54, %v3865_v54 }
  0xe1   :  { %599 = vadd.xlane.f32.xlu0 %v560_v34  ;;  %v563_v4 = vmul.f32 %v3862_v52, %v3862_v52 }
  0xe2   :  { %500 = vadd.xlane.f32.xlu1 %v3839_v35 }
  0xe4   :  { %v305_v61 = vpop.f32.mrf.mxu3 }
  0xe5   :  { %v3879_v0 = vadd.f32 %v3741_v49, %v305_v61 }
  0xe6   :  { %v262_v56 = vpop.f32.mrf.mxu0 }
  0xe7   :  { %633 = vadd.xlane.f32.xlu2 %v577_v37  ;;  %v3890_v11 = vadd.f32 %v3741_v49, %v262_v56  ;;  %v581_v22 = vmul.f32 %v3879_v0, %v3879_v0  ;;  %v3390_v56 = vld [vmem:[%s5812_s3] sm:$0xff] }
  0xe9   :  { %635 = vadd.xlane.f32.xlu0 %v578_v40  ;;  %v564_v23 = vmul.f32 %v3890_v11, %v3890_v11  ;;  %v3391_v40 = vld [vmem:[%s5812_s3 + $0x8] sm:$0xff] }
  0xea   :  { %601 = vadd.xlane.f32.xlu1 %v561_v38  ;;  %v3392_v38 = vld [vmem:[%s5812_s3 + $0x10] sm:$0xff] }
  0xeb   :  { %1378 = vmatpush.bf16.msra.mxu1 %v3392_v38  ;;  %3407 = vmatpush.bf16.msra.mxu2 %v3392_v38 }
  0xec   :  { %v307_v26 = vpop.f32.mrf.mxu3 }
  0xed   :  { %v3925_v39 = vadd.f32 %v3741_v49, %v307_v26 }
  0xee   :  { %v265_v7 = vpop.f32.mrf.mxu0 }
  0xef   :  { %466 = vadd.xlane.f32.xlu2 %v3842_v36  ;;  %v3917_v37 = vadd.f32 %v3741_v49, %v265_v7  ;;  %1379 = vmatpush.bf16.msra.mxu1 %v3391_v40  ;;  %v582_v1 = vmul.f32 %v3925_v39, %v3925_v39 }
  0xf0   :  { %3408 = vmatpush.bf16.msra.mxu2 %v3391_v40 }
  0xf1   :  { %468 = vadd.xlane.f32.xlu0 %v3857_v46  ;;  %v565_v55 = vmul.f32 %v3917_v37, %v3917_v37 }
  0xf2   :  { %637 = vadd.xlane.f32.xlu1 %v579_v44 }
  0xf3   :  { %1380 = vmatpush.bf16.msra.mxu1 %v3390_v56 }
  0xf4   :  { %v310_v42 = vpop.f32.mrf.mxu3  ;;  %3409 = vmatpush.bf16.msra.mxu2 %v3390_v56 }
  0xf6   :  { %v267_v31 = vpop.f32.mrf.mxu0 }
  0xf7   :  { %502 = vadd.xlane.f32.xlu2 %v3852_v43  ;;  %v3932_v41 = vadd.f32 %v3741_v49, %v267_v31 }
  0xf9   :  { %504 = vadd.xlane.f32.xlu0 %v3865_v54  ;;  %v566_v58 = vmul.f32 %v3932_v41, %v3932_v41 }
  0xfa   :  { %470 = vadd.xlane.f32.xlu1 %v3862_v52 }
  0xfe   :  { %v270_v44 = vpop.f32.mrf.mxu0 }
  0xff   :  { %603 = vadd.xlane.f32.xlu2 %v562_v62  ;;  %v3968_v24 = vadd.f32 %v3741_v49, %v270_v44 }
 0x101   :  { %605 = vadd.xlane.f32.xlu0 %v563_v4 }
 0x102   :  { %506 = vadd.xlane.f32.xlu1 %v3879_v0 }
 0x104   :  { %v451_v12 = vpop.xlane.xlu0 %450 }
 0x105   :  { %v3896_v15 = vmul.f32 %v3887_v9, %v451_v12  ;;  %v312_v12 = vpop.f32.mrf.mxu3 }
 0x106   :  { %v586_v17 = vpop.xlane.xlu1 %585 }
 0x107   :  { %v681_v18 = vmul.f32 %v3896_v15, %v3896_v15  ;;  %v649_v19 = vmul.f32 %v586_v17, %v3887_v9  ;;  %639 = vadd.xlane.f32.xlu2 %v580_v16  ;;  %v3958_v16 = vadd.f32 %v3741_v49, %v310_v42 }
 0x109   :  { %v713_v25 = vsub.f32 %v649_v19, %v681_v18  ;;  %641 = vadd.xlane.f32.xlu0 %v581_v22  ;;  %v272_v19 = vpop.f32.mrf.mxu0  ;;  %v583_v40 = vmul.f32 %v3958_v16, %v3958_v16 }
 0x10a   :  { %607 = vadd.xlane.f32.xlu1 %v564_v23  ;;  %v3963_v23 = vadd.f32 %v3741_v49, %v312_v12 }
 0x10b   :  { %v745_v28 = vmax.f32 %v713_v25, 0.0 }
 0x10c   :  { %v3910_v32 = vpop.xlane.xlu2 %621  ;;  %v3912_v33 = vpop.xlane.xlu0 %486  ;;  %v584_v44 = vmul.f32 %v3963_v23, %v3963_v23 }
 0x10d   :  { %v3914_v34 = vadd.f32 1e-05, %v745_v28 }
 0x10f   :  { %3421 = vrsqrt.f32 %v3914_v34  ;;  %472 = vadd.xlane.f32.xlu2 %v3890_v11  ;;  %vm847_vm3 = vweird.f32 %v3914_v34 }
 0x111   :  { %474 = vadd.xlane.f32.xlu0 %v3917_v37 }
 0x112   :  { %508 = vadd.xlane.f32.xlu1 %v3925_v39 }
 0x114   :  { %v453_v45 = vpop.xlane.xlu0 %452  ;;  %v588_v47 = vpop.xlane.xlu2 %587 }
 0x115   :  { %v3935_v48 = vpop.eup %3421  ;;  %v3938_v50 = vmul.f32 %v3887_v9, %v453_v45  ;;  %v455_v53 = vpop.xlane.xlu1 %454  ;;  %v650_v62 = vmul.f32 %v588_v47, %v3887_v9  ;;  %v567_v45 = vmul.f32 %v3968_v24, %v3968_v24 }
 0x116   :  { %v842_v59 = vmul.f32 %v3935_v48, %v3914_v34  ;;  %v275_v47 = vpop.f32.mrf.mxu0  ;;  %vm848_vm2 = vweird.f32 %v3935_v48 }
 0x117   :  { %v682_v61 = vmul.f32 %v3938_v50, %v3938_v50  ;;  %609 = vadd.xlane.f32.xlu2 %v565_v55  ;;  %vm849_vm4 = vmor %vm847_vm3, %vm848_vm2  ;;  %v3995_v12 = vadd.f32 %v3741_v49, %v275_v47 }
 0x118   :  { %v843_v5 = vmul.f32 %v3935_v48, %v842_v59 }
 0x119   :  { %v714_v4 = vsub.f32 %v650_v62, %v682_v61  ;;  %611 = vadd.xlane.f32.xlu0 %v566_v58  ;;  %v3985_v61 = vmul.f32 %v3887_v9, %v455_v53 }
 0x11a   :  { %643 = vadd.xlane.f32.xlu1 %v582_v1  ;;  %v844_v22 = vmul.f32 0.5, %v843_v5  ;;  %v777_v1 = vsub.f32 %v3744_v51, %v3896_v15  ;;  %v4001_v51 = vadd.f32 %v3741_v49, %v272_v19 }
 0x11b   :  { %v746_v7 = vmax.f32 %v714_v4, 0.0 }
 0x11c   :  { %v3955_v13 = vpop.xlane.xlu0 %488  ;;  %v845_v26 = vsub.f32 1.5, %v844_v22 }
 0x11d   :  { %v810_v17 = vadd.f32 1e-05, %v746_v7  ;;  %v3960_v18 = vpop.xlane.xlu1 %490  ;;  %v683_v7 = vmul.f32 %v3985_v61, %v3985_v61 }
 0x11e   :  { %v846_v55 = vmul.f32 %v3935_v48, %v845_v26  ;;  %v277_v15 = vpop.f32.mrf.mxu0 }
 0x11f   :  { %3423 = vrsqrt.f32 %v810_v17  ;;  %510 = vadd.xlane.f32.xlu2 %v3958_v16  ;;  %vm857_vm6 = vweird.f32 %v810_v17 }
 0x120   :  { %v850_v62 = vsel %vm849_vm4, %v3935_v48, %v846_v55  ;;  %v778_v48 = vsub.f32 %v3763_v60, %v3938_v50  ;;  %v4009_v60 = vadd.f32 %v3741_v49, %v277_v15 }
 0x121   :  { %512 = vadd.xlane.f32.xlu0 %v3963_v23  ;;  %v1161_v26 = vmul.f32 %v850_v62, %v777_v1  ;;  %v569_v1 = vmul.f32 %v3995_v12, %v3995_v12 }
 0x122   :  { %476 = vadd.xlane.f32.xlu1 %v3932_v41  ;;  %v3971_v25 = vpop.xlane.xlu2 %492 }
 0x123   :  { %v1225_v47 = vmul.f32 0.01, %v1161_v26  ;;  %vm1193_vm8 = vcmp.gt.f32.partialorder %v1161_v26, 0.0 }
 0x124   :  { %v3973_v28 = vpop.xlane.xlu0 %623 }
 0x125   :  { %v3424_v31 = vpop.eup %3423  ;;  %v457_v38 = vpop.xlane.xlu1 %456  ;;  %v1257_v49 = vsel %vm1193_vm8, %v1161_v26, %v1225_v47 }
 0x126   :  { %v852_v42 = vmul.f32 %v3424_v31, %v810_v17  ;;  %vm858_vm5 = vweird.f32 %v3424_v31  ;;  %v4012_v50 = vmul.f32 %v3887_v9, %v457_v38  ;;  %v570_v38 = vmul.f32 %v4009_v60, %v4009_v60 }
 0x127   :  { %645 = vadd.xlane.f32.xlu2 %v583_v40  ;;  %vm859_vm7 = vmor %vm857_vm6, %vm858_vm5 }
 0x128   :  { %v853_v56 = vmul.f32 %v3424_v31, %v852_v42 }
 0x129   :  { %647 = vadd.xlane.f32.xlu0 %v584_v44 }
 0x12a   :  { %v854_v58 = vmul.f32 0.5, %v853_v56  ;;  %613 = vadd.xlane.f32.xlu1 %v567_v45  ;;  %v459_v59 = vpop.xlane.xlu2 %458 }
 0x12c   :  { %v855_v4 = vsub.f32 1.5, %v854_v58  ;;  %v590_v5 = vpop.xlane.xlu0 %589  ;;  %v568_v58 = vmul.f32 %v4001_v51, %v4001_v51 }
 0x12d   :  { %v3992_v34 = vpop.xlane.xlu1 %625  ;;  %v651_v53 = vmul.f32 %v590_v5, %v3887_v9  ;;  %v4025_v5 = vmul.f32 %v3887_v9, %v459_v59 }
 0x12e   :  { %v856_v22 = vmul.f32 %v3424_v31, %v855_v4  ;;  %v684_v4 = vmul.f32 %v4012_v50, %v4012_v50 }
 0x12f   :  { %478 = vadd.xlane.f32.xlu2 %v3968_v24  ;;  %v715_v40 = vsub.f32 %v651_v53, %v683_v7  ;;  %v685_v26 = vmul.f32 %v4025_v5, %v4025_v5 }
 0x130   :  { %v860_v42 = vsel %vm859_vm7, %v3424_v31, %v856_v22 }
 0x131   :  { %480 = vadd.xlane.f32.xlu0 %v4001_v51  ;;  %v1162_v45 = vmul.f32 %v860_v42, %v778_v48  ;;  %v747_v17 = vmax.f32 %v715_v40, 0.0 }
 0x132   :  { %482 = vadd.xlane.f32.xlu1 %v3995_v12  ;;  %v4006_v44 = vpop.xlane.xlu2 %627 }
 0x133   :  { %vm1194_vm9 = vcmp.gt.f32.partialorder %v1162_v45, 0.0  ;;  %v1226_v19 = vmul.f32 0.01, %v1162_v45  ;;  %v811_v55 = vadd.f32 1e-05, %v747_v17 }
 0x134   :  { %v4014_v31 = vpop.xlane.xlu0 %629 }
 0x135   :  { %v592_v56 = vpop.xlane.xlu1 %591  ;;  %v1258_v62 = vsel %vm1194_vm9, %v1162_v45, %v1226_v19  ;;  %3425 = vrsqrt.f32 %v811_v55  ;;  %vm867_vm11 = vweird.f32 %v811_v55 }
 0x136   :  { %v652_v7 = vmul.f32 %v592_v56, %v3887_v9  ;;  %v1289_v53 = vpack.c.bf16 %v1258_v62, %v1257_v49 }
 0x137   :  { %615 = vadd.xlane.f32.xlu2 %v568_v58 }
 0x138   :  { %v716_v22 = vsub.f32 %v652_v7, %v684_v4  ;;  %1381 = vmatmul.bf16.vlgmr.msra.gmra.mxu1 %v1289_v53 }
 0x139   :  { %617 = vadd.xlane.f32.xlu0 %v569_v1 }
 0x13a   :  { %v594_v48 = vpop.xlane.xlu2 %593  ;;  %619 = vadd.xlane.f32.xlu1 %v570_v38  ;;  %v748_v15 = vmax.f32 %v716_v22, 0.0 }
 0x13b   :  { %v653_v40 = vmul.f32 %v594_v48, %v3887_v9  ;;  %v3426_v42 = vpop.eup %3425 }
 0x13c   :  { %v596_v45 = vpop.xlane.xlu0 %595  ;;  %v862_v17 = vmul.f32 %v3426_v42, %v811_v55  ;;  %v812_v59 = vadd.f32 1e-05, %v748_v15  ;;  %vm868_vm10 = vweird.f32 %v3426_v42 }
 0x13d   :  { %v717_v47 = vsub.f32 %v653_v40, %v685_v26  ;;  %v4031_v19 = vpop.xlane.xlu1 %631  ;;  %vm869_vm12 = vmor %vm867_vm11, %vm868_vm10 }
 0x13e   :  { %v863_v56 = vmul.f32 %v3426_v42, %v862_v17  ;;  %3427 = vrsqrt.f32 %v812_v59  ;;  %vm877_vm14 = vweird.f32 %v812_v59 }
 0x13f   :  { %v749_v58 = vmax.f32 %v717_v47, 0.0  ;;  %484 = vadd.xlane.f32.xlu2 %v4009_v60 }
 0x140   :  { %v864_v62 = vmul.f32 0.5, %v863_v56 }
 0x141   :  { %v4034_v1 = vadd.f32 1e-05, %v749_v58 }
 0x142   :  { %v4036_v49 = vpop.xlane.xlu2 %494  ;;  %v865_v7 = vsub.f32 1.5, %v864_v62  ;;  %v654_v62 = vmul.f32 %v596_v45, %v3887_v9  ;;  %v780_v45 = vsub.f32 %v3787_v8, %v4012_v50 }
 0x143   :  { %3429 = vrsqrt.f32 %v4034_v1  ;;  %vm887_vm3 = vweird.f32 %v4034_v1 }
 0x144   :  { %v4038_v38 = vpop.xlane.xlu0 %496  ;;  %v3428_v4 = vpop.eup %3427  ;;  %v866_v26 = vmul.f32 %v3426_v42, %v865_v7  ;;  %v779_v7 = vsub.f32 %v3766_v63, %v3985_v61 }
 0x145   :  { %v4040_v53 = vpop.xlane.xlu1 %498  ;;  %v872_v22 = vmul.f32 %v3428_v4, %v812_v59  ;;  %vm878_vm13 = vweird.f32 %v3428_v4 }
 0x146   :  { %5838 = vst [vmem:[#allocation16_spill] sm:$0xff] %v4040_v53  ;;  %vm879_vm15 = vmor %vm877_vm14, %vm878_vm13 }
 0x147   :  { %v873_v48 = vmul.f32 %v3428_v4, %v872_v22  ;;  %v870_v22 = vsel %vm869_vm12, %v3426_v42, %v866_v26 }
 0x148   :  { %v1163_v27 = vmul.f32 %v870_v22, %v779_v7 }
 0x149   :  { %v874_v15 = vmul.f32 0.5, %v873_v48  ;;  %v4046_v47 = vpop.eup %3429 }
 0x14a   :  { %v461_v40 = vpop.xlane.xlu2 %460  ;;  %v882_v55 = vmul.f32 %v4046_v47, %v4034_v1  ;;  %vm1195_vm0 = vcmp.gt.f32.partialorder %v1163_v27, 0.0  ;;  %v1227_v8 = vmul.f32 0.01, %v1163_v27  ;;  %vm888_vm2 = vweird.f32 %v4046_v47 }
 0x14b   :  { %v4044_v17 = vmul.f32 %v3887_v9, %v461_v40  ;;  %v875_v56 = vsub.f32 1.5, %v874_v15  ;;  %vm4086_vm5 = vmor %vm887_vm3, %vm888_vm2 }
 0x14c   :  { %v463_v58 = vpop.xlane.xlu0 %462  ;;  %v883_v59 = vmul.f32 %v4046_v47, %v882_v55 }
 0x14d   :  { %v686_v43 = vmul.f32 %v4044_v17, %v4044_v17  ;;  %v465_v54 = vpop.xlane.xlu1 %464  ;;  %v4056_v15 = vmul.f32 %v3887_v9, %v463_v58  ;;  %v876_v40 = vmul.f32 %v3428_v4, %v875_v56 }
 0x14e   :  { %v4061_v42 = vmul.f32 %v3887_v9, %v465_v54 }
 0x14f   :  { %v718_v48 = vsub.f32 %v654_v62, %v686_v43  ;;  %v880_v26 = vsel %vm879_vm15, %v3428_v4, %v876_v40  ;;  %v687_v43 = vmul.f32 %v4056_v15, %v4056_v15  ;;  %v1259_v40 = vsel %vm1195_vm0, %v1163_v27, %v1227_v8 }
 0x150   :  { %v1164_v61 = vmul.f32 %v880_v26, %v780_v45  ;;  %v688_v54 = vmul.f32 %v4061_v42, %v4061_v42 }
 0x151   :  { %v750_v35 = vmax.f32 %v718_v48, 0.0 }
 0x152   :  { %v598_v63 = vpop.xlane.xlu2 %597  ;;  %vm1196_vm1 = vcmp.gt.f32.partialorder %v1164_v61, 0.0  ;;  %v1228_v50 = vmul.f32 0.01, %v1164_v61 }
 0x153   :  { %v814_v14 = vadd.f32 1e-05, %v750_v35  ;;  %v655_v56 = vmul.f32 %v598_v63, %v3887_v9  ;;  %v884_v35 = vmul.f32 0.5, %v883_v59 }
 0x154   :  { %v600_v58 = vpop.xlane.xlu0 %599  ;;  %v1260_v48 = vsel %vm1196_vm1, %v1164_v61, %v1228_v50 }
 0x155   :  { %3431 = vrsqrt.f32 %v814_v14  ;;  %v719_v4 = vsub.f32 %v655_v56, %v687_v43  ;;  %v4069_v62 = vpop.xlane.xlu1 %500  ;;  %v656_v22 = vmul.f32 %v600_v58, %v3887_v9  ;;  %v1290_v63 = vpack.c.bf16 %v1260_v48, %v1259_v40 }
 0x156   :  { %5839 = vst [vmem:[#allocation17_spill] sm:$0xff] %v4069_v62  ;;  %v885_v6 = vsub.f32 1.5, %v884_v35  ;;  %vm897_vm6 = vweird.f32 %v814_v14 }
 0x157   :  { %v751_v7 = vmax.f32 %v719_v4, 0.0  ;;  %v720_v55 = vsub.f32 %v656_v22, %v688_v54  ;;  %1386 = vmatmul.bf16.gmra.mxu1 %v1290_v63  ;;  %v782_v63 = vsub.f32 %v3808_v20, %v4044_v17 }
 0x158   :  { %v886_v27 = vmul.f32 %v4046_v47, %v885_v6  ;;  %v781_v6 = vsub.f32 %v3791_v10, %v4025_v5 }
 0x159   :  { %v4072_v45 = vadd.f32 1e-05, %v751_v7  ;;  %v752_v26 = vmax.f32 %v720_v55, 0.0 }
 0x15a   :  { %v4074_v21 = vpop.xlane.xlu2 %633  ;;  %v890_v1 = vsel %vm4086_vm5, %v4046_v47, %v886_v27 }
 0x15b   :  { %5840 = vst [vmem:[#allocation18_spill] sm:$0xff] %v4074_v21  ;;  %v3432_v3 = vpop.eup %3431  ;;  %3433 = vrsqrt.f32 %v4072_v45  ;;  %v816_v43 = vadd.f32 1e-05, %v752_v26  ;;  %v1165_v47 = vmul.f32 %v890_v1, %v781_v6  ;;  %vm907_vm14 = vweird.f32 %v4072_v45 }
 0x15c   :  { %v892_v56 = vmul.f32 %v3432_v3, %v814_v14  ;;  %v4077_v53 = vpop.xlane.xlu0 %635  ;;  %vm898_vm4 = vweird.f32 %v3432_v3 }
 0x15d   :  { %5841 = vst [vmem:[#allocation19_spill] sm:$0xff] %v4077_v53  ;;  %3435 = vrsqrt.f32 %v816_v43  ;;  %v602_v59 = vpop.xlane.xlu1 %601  ;;  %vm899_vm7 = vmor %vm897_vm6, %vm898_vm4  ;;  %v1229_v20 = vmul.f32 0.01, %v1165_v47  ;;  %vm1197_vm9 = vcmp.gt.f32.partialorder %v1165_v47, 0.0  ;;  %vm917_vm11 = vweird.f32 %v816_v43 }
 0x15e   :  { %v893_v58 = vmul.f32 %v3432_v3, %v892_v56  ;;  %v657_v56 = vmul.f32 %v602_v59, %v3887_v9 }
 0x15f   :  { %v1261_v1 = vsel %vm1197_vm9, %v1165_v47, %v1229_v20 }
 0x160   :  { %v894_v61 = vmul.f32 0.5, %v893_v58 }
 0x161   :  { %v4081_v8 = vpop.eup %3433 }
 0x162   :  { %v895_v50 = vsub.f32 1.5, %v894_v61  ;;  %v902_v54 = vmul.f32 %v4081_v8, %v4072_v45  ;;  %v467_v4 = vpop.xlane.xlu2 %466  ;;  %vm908_vm12 = vweird.f32 %v4081_v8 }
 0x163   :  { %v3436_v35 = vpop.eup %3435  ;;  %v4093_v7 = vmul.f32 %v3887_v9, %v467_v4  ;;  %vm909_vm15 = vmor %vm907_vm14, %vm908_vm12 }
 0x164   :  { %v896_v55 = vmul.f32 %v3432_v3, %v895_v50  ;;  %v903_v48 = vmul.f32 %v4081_v8, %v902_v54  ;;  %v912_v40 = vmul.f32 %v3436_v35, %v816_v43  ;;  %v469_v26 = vpop.xlane.xlu0 %468  ;;  %vm918_vm10 = vweird.f32 %v3436_v35 }
 0x165   :  { %v689_v10 = vmul.f32 %v4093_v7, %v4093_v7  ;;  %v4104_v5 = vpop.xlane.xlu1 %637  ;;  %vm4118_vm13 = vmor %vm917_vm11, %vm918_vm10 }
 0x166   :  { %5844 = vst [vmem:[#allocation20_spill] sm:$0xff] %v4104_v5  ;;  %v900_v58 = vsel %vm899_vm7, %v3432_v3, %v896_v55  ;;  %v913_v61 = vmul.f32 %v3436_v35, %v912_v40  ;;  %v904_v14 = vmul.f32 0.5, %v903_v48  ;;  %v4115_v55 = vmul.f32 %v3887_v9, %v469_v26 }
 0x167   :  { %v1166_v27 = vmul.f32 %v900_v58, %v782_v63  ;;  %v721_v50 = vsub.f32 %v657_v56, %v689_v10  ;;  %v4127_v10 = vmul.f32 %v3887_v9, %v3912_v33  ;;  %v784_v26 = vsub.f32 %v3830_v30, %v4061_v42 }
 0x168   :  { %v914_v54 = vmul.f32 0.5, %v913_v61  ;;  %v905_v21 = vsub.f32 1.5, %v904_v14  ;;  %v690_v61 = vmul.f32 %v4115_v55, %v4115_v55  ;;  %v783_v33 = vsub.f32 %v3826_v29, %v4056_v15 }
 0x169   :  { %v753_v4 = vmax.f32 %v721_v50, 0.0  ;;  %vm1198_vm8 = vcmp.gt.f32.partialorder %v1166_v27, 0.0  ;;  %v1230_v17 = vmul.f32 0.01, %v1166_v27  ;;  %5849 = vst [vmem:[#allocation23_spill] sm:$0xff] %v4127_v10  ;;  %v699_v20 = vmul.f32 %v4127_v10, %v4127_v10 }
 0x16a   :  { %v4106_v22 = vpop.xlane.xlu2 %502  ;;  %v915_v59 = vsub.f32 1.5, %v914_v54  ;;  %v906_v40 = vmul.f32 %v4081_v8, %v905_v21  ;;  %v667_v29 = vmul.f32 %v3910_v32, %v3887_v9 }
 0x16b   :  { %5845 = vst [vmem:[#allocation21_spill] sm:$0xff] %v4106_v22  ;;  %v4108_v53 = vadd.f32 1e-05, %v753_v4  ;;  %v1262_v3 = vsel %vm1198_vm8, %v1166_v27, %v1230_v17 }
 0x16c   :  { %v4110_v57 = vpop.xlane.xlu0 %504  ;;  %v1291_v48 = vpack.c.bf16 %v1262_v3, %v1261_v1  ;;  %v916_v63 = vmul.f32 %v3436_v35, %v915_v59 }
 0x16d   :  { %5846 = vst [vmem:[#allocation22_spill] sm:$0xff] %v4110_v57  ;;  %3437 = vrsqrt.f32 %v4108_v53  ;;  %v471_v6 = vpop.xlane.xlu1 %470  ;;  %vm927_vm3 = vweird.f32 %v4108_v53 }
 0x16e   :  { %1391 = vmatmul.bf16.gmra.mxu1 %v1291_v48  ;;  %v920_v43 = vsel %vm4118_vm13, %v3436_v35, %v916_v63  ;;  %v4136_v45 = vmul.f32 %v3887_v9, %v471_v6  ;;  %v910_v35 = vsel %vm909_vm15, %v4081_v8, %v906_v40  ;;  %v731_v48 = vsub.f32 %v667_v29, %v699_v20 }
 0x16f   :  { %v1168_v27 = vmul.f32 %v920_v43, %v784_v26  ;;  %v1167_v17 = vmul.f32 %v910_v35, %v783_v33  ;;  %v4173_v29 = vmul.f32 %v3887_v9, %v3955_v13 }
 0x170   :  { %v691_v14 = vmul.f32 %v4136_v45, %v4136_v45 }
 0x171   :  { %v1232_v3 = vmul.f32 0.01, %v1168_v27  ;;  %vm1200_vm0 = vcmp.gt.f32.partialorder %v1168_v27, 0.0  ;;  %v1231_v63 = vmul.f32 0.01, %v1167_v17  ;;  %vm1199_vm1 = vcmp.gt.f32.partialorder %v1167_v17, 0.0 }
 0x172   :  { %v604_v58 = vpop.xlane.xlu2 %603 }
 0x173   :  { %v4131_v21 = vpop.eup %3437  ;;  %v658_v47 = vmul.f32 %v604_v58, %v3887_v9  ;;  %v1264_v58 = vsel %vm1200_vm0, %v1168_v27, %v1232_v3  ;;  %v1263_v33 = vsel %vm1199_vm1, %v1167_v17, %v1231_v63 }
 0x174   :  { %v922_v30 = vmul.f32 %v4131_v21, %v4108_v53  ;;  %v606_v42 = vpop.xlane.xlu0 %605  ;;  %vm928_vm2 = vweird.f32 %v4131_v21 }
 0x175   :  { %v722_v50 = vsub.f32 %v658_v47, %v690_v61  ;;  %v507_v54 = vpop.xlane.xlu1 %506  ;;  %v659_v4 = vmul.f32 %v606_v42, %v3887_v9  ;;  %vm929_vm4 = vmor %vm927_vm3, %vm928_vm2 }
 0x176   :  { %v923_v15 = vmul.f32 %v4131_v21, %v922_v30  ;;  %v4158_v56 = vmul.f32 %v3887_v9, %v507_v54  ;;  %v763_v30 = vmax.f32 %v731_v48, 0.0 }
 0x177   :  { %v754_v8 = vmax.f32 %v722_v50, 0.0  ;;  %v723_v59 = vsub.f32 %v659_v4, %v691_v14  ;;  %v1292_v14 = vpack.c.bf16 %v1264_v58, %v1263_v33  ;;  %v668_v58 = vmul.f32 %v3973_v28, %v3887_v9 }
 0x178   :  { %v924_v32 = vmul.f32 0.5, %v923_v15  ;;  %v709_v61 = vmul.f32 %v4158_v56, %v4158_v56 }
 0x179   :  { %v4152_v6 = vadd.f32 1e-05, %v754_v8  ;;  %v755_v1 = vmax.f32 %v723_v59, 0.0  ;;  %v4169_v59 = vadd.f32 1e-05, %v763_v30 }
 0x17a   :  { %v4154_v40 = vpop.xlane.xlu2 %639  ;;  %v925_v50 = vsub.f32 1.5, %v924_v32 }
 0x17b   :  { %5850 = vst [vmem:[#allocation24_spill] sm:$0xff] %v4154_v40  ;;  %3439 = vrsqrt.f32 %v4152_v6  ;;  %v4160_v43 = vadd.f32 1e-05, %v755_v1  ;;  %vm937_vm6 = vweird.f32 %v4152_v6 }
 0x17c   :  { %v642_v26 = vpop.xlane.xlu0 %641  ;;  %v926_v15 = vmul.f32 %v4131_v21, %v925_v50 }
 0x17d   :  { %3441 = vrsqrt.f32 %v4160_v43  ;;  %v677_v47 = vmul.f32 %v642_v26, %v3887_v9  ;;  %v608_v35 = vpop.xlane.xlu1 %607  ;;  %vm947_vm11 = vweird.f32 %v4160_v43 }
 0x17e   :  { %1396 = vmatmul.bf16.gmra.mxu1 %v1292_v14  ;;  %v660_v32 = vmul.f32 %v608_v35, %v3887_v9  ;;  %3443 = vrsqrt.f32 %v4169_v59  ;;  %v930_v30 = vsel %vm929_vm4, %v4131_v21, %v926_v15 }
 0x17f   :  { %v741_v42 = vsub.f32 %v677_v47, %v709_v61  ;;  %v700_v47 = vmul.f32 %v4173_v29, %v4173_v29 }
 0x181   :  { %v3440_v54 = vpop.eup %3439  ;;  %v773_v4 = vmax.f32 %v741_v42, 0.0  ;;  %v785_v42 = vsub.f32 %v3842_v36, %v4093_v7  ;;  %v732_v50 = vsub.f32 %v668_v58, %v700_v47 }
 0x182   :  { %v932_v20 = vmul.f32 %v3440_v54, %v4152_v6  ;;  %v473_v8 = vpop.xlane.xlu2 %472  ;;  %vm938_vm5 = vweird.f32 %v3440_v54 }
 0x183   :  { %v4167_v27 = vpop.eup %3441  ;;  %v4176_v17 = vmul.f32 %v3887_v9, %v473_v8  ;;  %v4180_v1 = vadd.f32 1e-05, %v773_v4  ;;  %v1169_v8 = vmul.f32 %v930_v30, %v785_v42  ;;  %vm939_vm7 = vmor %vm937_vm6, %vm938_vm5  ;;  %v764_v30 = vmax.f32 %v732_v50, 0.0 }
 0x184   :  { %v933_v3 = vmul.f32 %v3440_v54, %v932_v20  ;;  %v475_v48 = vpop.xlane.xlu0 %474  ;;  %v942_v63 = vmul.f32 %v4167_v27, %v4160_v43  ;;  %v4212_v6 = vpop.eup %3443  ;;  %vm948_vm10 = vweird.f32 %v4167_v27 }
 0x185   :  { %v692_v13 = vmul.f32 %v4176_v17, %v4176_v17  ;;  %v509_v26 = vpop.xlane.xlu1 %508  ;;  %3445 = vrsqrt.f32 %v4180_v1  ;;  %v4199_v14 = vmul.f32 %v3887_v9, %v475_v48  ;;  %vm1201_vm8 = vcmp.gt.f32.partialorder %v1169_v8, 0.0  ;;  %vm4268_vm12 = vmor %vm947_vm11, %vm948_vm10 }
 0x186   :  { %v934_v61 = vmul.f32 0.5, %v933_v3  ;;  %v943_v28 = vmul.f32 %v4167_v27, %v942_v63  ;;  %v4203_v4 = vmul.f32 %v3887_v9, %v509_v26  ;;  %v786_v3 = vsub.f32 %v3857_v46, %v4115_v55 }
 0x187   :  { %v724_v33 = vsub.f32 %v660_v32, %v692_v13  ;;  %v693_v36 = vmul.f32 %v4199_v14, %v4199_v14  ;;  %v1233_v46 = vmul.f32 0.01, %v1169_v8  ;;  %v4222_v55 = vmul.f32 %v3887_v9, %v3960_v18 }
 0x188   :  { %v935_v35 = vsub.f32 1.5, %v934_v61  ;;  %v944_v32 = vmul.f32 0.5, %v943_v28  ;;  %v710_v61 = vmul.f32 %v4203_v4, %v4203_v4  ;;  %v788_v5 = vsub.f32 %v3890_v11, %v4176_v17 }
 0x189   :  { %v756_v53 = vmax.f32 %v724_v33, 0.0  ;;  %5851 = vst [vmem:[#allocation25_spill] sm:$0xff] %v4222_v55  ;;  %v1265_v18 = vsel %vm1201_vm8, %v1169_v8, %v1233_v46  ;;  %vm1127_vm15 = vweird.f32 %v4180_v1 }
 0x18a   :  { %v610_v21 = vpop.xlane.xlu2 %609  ;;  %v936_v20 = vmul.f32 %v3440_v54, %v935_v35  ;;  %v945_v42 = vsub.f32 1.5, %v944_v32  ;;  %v4237_v32 = vmul.f32 %v4212_v6, %v4169_v59 }
 0x18b   :  { %v4205_v15 = vadd.f32 1e-05, %v756_v53  ;;  %v661_v7 = vmul.f32 %v610_v21, %v3887_v9  ;;  %v4215_v58 = vpop.eup %3445 }
 0x18c   :  { %v612_v48 = vpop.xlane.xlu0 %611  ;;  %v940_v63 = vsel %vm939_vm7, %v3440_v54, %v936_v20  ;;  %v1122_v28 = vmul.f32 %v4215_v58, %v4180_v1  ;;  %v4230_v20 = vmul.f32 %v3887_v9, %v3971_v25  ;;  %vm1128_vm3 = vweird.f32 %v4215_v58 }
 0x18d   :  { %3447 = vrsqrt.f32 %v4205_v15  ;;  %v725_v13 = vsub.f32 %v661_v7, %v693_v36  ;;  %v644_v26 = vpop.xlane.xlu1 %643  ;;  %v1170_v33 = vmul.f32 %v940_v63, %v786_v3  ;;  %v4232_v3 = vadd.f32 1e-05, %v764_v30  ;;  %vm4328_vm5 = vmor %vm1127_vm15, %vm1128_vm3 }
 0x18e   :  { %v678_v47 = vmul.f32 %v644_v26, %v3887_v9  ;;  %5852 = vst [vmem:[#allocation26_spill] sm:$0xff] %v4230_v20  ;;  %v1123_v30 = vmul.f32 %v4215_v58, %v1122_v28  ;;  %v787_v28 = vsub.f32 %v3862_v52, %v4136_v45  ;;  %vm957_vm14 = vweird.f32 %v4205_v15 }
 0x18f   :  { %v757_v35 = vmax.f32 %v725_v13, 0.0  ;;  %vm1202_vm9 = vcmp.gt.f32.partialorder %v1170_v33, 0.0  ;;  %v1234_v21 = vmul.f32 0.01, %v1170_v33 }
 0x190   :  { %v742_v54 = vsub.f32 %v678_v47, %v710_v61  ;;  %v4244_v47 = vmul.f32 %v4222_v55, %v4222_v55 }
 0x191   :  { %v4226_v53 = vadd.f32 1e-05, %v757_v35  ;;  %v1266_v63 = vsel %vm1202_vm9, %v1170_v33, %v1234_v21  ;;  %v946_v33 = vmul.f32 %v4167_v27, %v945_v42  ;;  %v4251_v35 = vmul.f32 %v4230_v20, %v4230_v20 }
 0x192   :  { %v774_v50 = vmax.f32 %v742_v54, 0.0  ;;  %v511_v36 = vpop.xlane.xlu2 %510  ;;  %v1293_v61 = vpack.c.bf16 %v1266_v63, %v1265_v18  ;;  %v4260_v21 = vmul.f32 %v3992_v34, %v3887_v9  ;;  %v662_v63 = vmul.f32 %v612_v48, %v3887_v9 }
 0x193   :  { %v3448_v7 = vpop.eup %3447  ;;  %3449 = vrsqrt.f32 %v4226_v53  ;;  %v4264_v42 = vmul.f32 %v3887_v9, %v511_v36  ;;  %v1124_v36 = vmul.f32 0.5, %v1123_v30  ;;  %v950_v52 = vsel %vm4268_vm12, %v4167_v27, %v946_v33 }
 0x194   :  { %v952_v13 = vmul.f32 %v3448_v7, %v4205_v15  ;;  %v4240_v26 = vadd.f32 1e-05, %v774_v50  ;;  %v513_v25 = vpop.xlane.xlu0 %512  ;;  %1401 = vmatmul.bf16.gmra.mxu1 %v1293_v61  ;;  %vm958_vm13 = vweird.f32 %v3448_v7  ;;  %vm967_vm6 = vweird.f32 %v4226_v53 }
 0x195   :  { %v477_v8 = vpop.xlane.xlu1 %476  ;;  %v4280_v61 = vmul.f32 %v3887_v9, %v513_v25  ;;  %v711_v25 = vmul.f32 %v4264_v42, %v4264_v42  ;;  %vm959_vm0 = vmor %vm957_vm14, %vm958_vm13 }
 0x196   :  { %v953_v46 = vmul.f32 %v3448_v7, %v952_v13  ;;  %3451 = vrsqrt.f32 %v4240_v26  ;;  %v4255_v54 = vmul.f32 %v3887_v9, %v477_v8  ;;  %vm1137_vm9 = vweird.f32 %v4240_v26 }
 0x197   :  { %3453 = vrsqrt.f32 %v4232_v3  ;;  %v712_v17 = vmul.f32 %v4280_v61, %v4280_v61 }
 0x198   :  { %v954_v18 = vmul.f32 0.5, %v953_v46  ;;  %v694_v13 = vmul.f32 %v4255_v54, %v4255_v54 }
 0x199   :  { %v4275_v34 = vpop.eup %3449 }
 0x19a   :  { %v955_v45 = vsub.f32 1.5, %v954_v18  ;;  %v962_v48 = vmul.f32 %v4275_v34, %v4226_v53  ;;  %v726_v8 = vsub.f32 %v662_v63, %v694_v13  ;;  %v646_v46 = vpop.xlane.xlu2 %645  ;;  %v1171_v63 = vmul.f32 %v950_v52, %v787_v28 }
 0x19b   :  { %v679_v30 = vmul.f32 %v646_v46, %v3887_v9  ;;  %vm968_vm4 = vweird.f32 %v4275_v34 }
 0x19c   :  { %v4293_v43 = vpop.eup %3451  ;;  %v956_v27 = vmul.f32 %v3448_v7, %v955_v45  ;;  %v963_v33 = vmul.f32 %v4275_v34, %v962_v48  ;;  %v758_v50 = vmax.f32 %v726_v8, 0.0  ;;  %v648_v18 = vpop.xlane.xlu0 %647  ;;  %v1125_v45 = vsub.f32 1.5, %v1124_v36  ;;  %vm4342_vm7 = vmor %vm967_vm6, %vm968_vm4 }
 0x19d   :  { %v4297_v13 = vpop.eup %3453  ;;  %v1132_v11 = vmul.f32 %v4293_v43, %v4240_v26  ;;  %v743_v15 = vsub.f32 %v679_v30, %v711_v25  ;;  %v680_v46 = vmul.f32 %v648_v18, %v3887_v9  ;;  %v614_v40 = vpop.xlane.xlu1 %613  ;;  %vm1203_vm1 = vcmp.gt.f32.partialorder %v1171_v63, 0.0 }
 0x19e   :  { %v960_v55 = vsel %vm959_vm0, %v3448_v7, %v956_v27  ;;  %v964_v48 = vmul.f32 0.5, %v963_v33  ;;  %v4305_v8 = vadd.f32 1e-05, %v758_v50  ;;  %v1235_v10 = vmul.f32 0.01, %v1171_v63 }
 0x19f   :  { %v1172_v28 = vmul.f32 %v960_v55, %v788_v5  ;;  %v1133_v52 = vmul.f32 %v4293_v43, %v1132_v11  ;;  %v775_v57 = vmax.f32 %v743_v15, 0.0  ;;  %v744_v22 = vsub.f32 %v680_v46, %v712_v17 }
 0x1a0   :  { %v965_v20 = vsub.f32 1.5, %v964_v48  ;;  %3455 = vrsqrt.f32 %v4305_v8  ;;  %v806_v7 = vsub.f32 %v3925_v39, %v4203_v4  ;;  %v1126_v36 = vmul.f32 %v4215_v58, %v1125_v45 }
 0x1a1   :  { %v1134_v62 = vmul.f32 0.5, %v1133_v52  ;;  %v4309_v25 = vadd.f32 1e-05, %v775_v57  ;;  %v776_v30 = vmax.f32 %v744_v22, 0.0  ;;  %vm1204_vm2 = vcmp.gt.f32.partialorder %v1172_v28, 0.0 }
 0x1a2   :  { %v479_v5 = vpop.xlane.xlu2 %478  ;;  %v1236_v55 = vmul.f32 0.01, %v1172_v28  ;;  %v966_v33 = vmul.f32 %v4275_v34, %v965_v20  ;;  %v789_v57 = vsub.f32 %v3917_v37, %v4199_v14  ;;  %v1267_v39 = vsel %vm1203_vm1, %v1171_v63, %v1235_v10 }
 0x1a3   :  { %3457 = vrsqrt.f32 %v4309_v25  ;;  %v4316_v27 = vadd.f32 1e-05, %v776_v30  ;;  %v4323_v22 = vmul.f32 %v3887_v9, %v479_v5  ;;  %v1135_v20 = vsub.f32 1.5, %v1134_v62 }
 0x1a4   :  { %v481_v50 = vpop.xlane.xlu0 %480  ;;  %v1268_v4 = vsel %vm1204_vm2, %v1172_v28, %v1236_v55  ;;  %v663_v14 = vmul.f32 %v614_v40, %v3887_v9  ;;  %v1130_v62 = vsel %vm4328_vm5, %v4215_v58, %v1126_v36  ;;  %vm1138_vm8 = vweird.f32 %v4293_v43 }
 0x1a5   :  { %3459 = vrsqrt.f32 %v4316_v27  ;;  %v1294_v11 = vpack.c.bf16 %v1268_v4, %v1267_v39  ;;  %v695_v17 = vmul.f32 %v4323_v22, %v4323_v22  ;;  %v4338_v10 = vmul.f32 %v3887_v9, %v481_v50  ;;  %v483_v1 = vpop.xlane.xlu1 %482  ;;  %vm4369_vm11 = vmor %vm1137_vm9, %vm1138_vm8 }
 0x1a6   :  { %v3456_v37 = vpop.eup %3455  ;;  %v807_v40 = vsub.f32 %v3958_v16, %v4264_v42  ;;  %v970_v15 = vsel %vm4342_vm7, %v4275_v34, %v966_v33  ;;  %v790_v46 = vsub.f32 %v3932_v41, %v4255_v54  ;;  %vm977_vm10 = vweird.f32 %v4305_v8 }
 0x1a7   :  { %v972_v53 = vmul.f32 %v3456_v37, %v4305_v8  ;;  %1406 = vmatmul.bf16.gmra.mxu1 %v1294_v11  ;;  %v727_v58 = vsub.f32 %v663_v14, %v695_v17  ;;  %v4363_v28 = vmul.f32 %v3887_v9, %v483_v1  ;;  %v1136_v52 = vmul.f32 %v4293_v43, %v1135_v20 }
 0x1a8   :  { %v5859_v30 = vsub.f32 %v3879_v0, %v4158_v56  ;;  %v696_v5 = vmul.f32 %v4338_v10, %v4338_v10  ;;  %v1173_v36 = vmul.f32 %v970_v15, %v789_v57  ;;  %vm978_vm12 = vweird.f32 %v3456_v37 }
 0x1a9   :  { %v4360_v45 = vpop.eup %3457  ;;  %v973_v48 = vmul.f32 %v3456_v37, %v972_v53  ;;  %v759_v54 = vmax.f32 %v727_v58, 0.0  ;;  %v697_v0 = vmul.f32 %v4363_v28, %v4363_v28  ;;  %v1140_v39 = vsel %vm4369_vm11, %v4293_v43, %v1136_v52  ;;  %vm979_vm15 = vmor %vm977_vm10, %vm978_vm12 }
 0x1aa   :  { %v1189_v34 = vmul.f32 %v1130_v62, %v5859_v30  ;;  %v1142_v41 = vmul.f32 %v4360_v45, %v4309_v25  ;;  %v616_v55 = vpop.xlane.xlu2 %615  ;;  %vm1147_vm13 = vweird.f32 %v4309_v25  ;;  %v1190_v1 = vmul.f32 %v1140_v39, %v806_v7 }
 0x1ab   :  { %v4377_v33 = vpop.eup %3459  ;;  %v974_v50 = vmul.f32 0.5, %v973_v48  ;;  %v664_v56 = vmul.f32 %v616_v55, %v3887_v9  ;;  %v4388_v20 = vadd.f32 1e-05, %v759_v54  ;;  %v1237_v43 = vmul.f32 0.01, %v1173_v36 }
 0x1ac   :  { %v1143_v4 = vmul.f32 %v4360_v45, %v1142_v41  ;;  %v1152_v18 = vmul.f32 %v4377_v33, %v4316_v27  ;;  %v618_v57 = vpop.xlane.xlu0 %617  ;;  %vm1205_vm14 = vcmp.gt.f32.partialorder %v1173_v36, 0.0  ;;  %vm1222_vm0 = vcmp.gt.f32.partialorder %v1190_v1, 0.0 }
 0x1ad   :  { %v975_v11 = vsub.f32 1.5, %v974_v50  ;;  %v728_v14 = vsub.f32 %v664_v56, %v696_v5  ;;  %v665_v17 = vmul.f32 %v618_v57, %v3887_v9  ;;  %3461 = vrsqrt.f32 %v4388_v20  ;;  %v620_v56 = vpop.xlane.xlu1 %619 }
 0x1ae   :  { %v1144_v63 = vmul.f32 0.5, %v1143_v4  ;;  %v1153_v62 = vmul.f32 %v4377_v33, %v1152_v18  ;;  %v1253_v30 = vmul.f32 0.01, %v1189_v34  ;;  %v1254_v54 = vmul.f32 0.01, %v1190_v1 }
 0x1af   :  { %v976_v53 = vmul.f32 %v3456_v37, %v975_v11  ;;  %v760_v15 = vmax.f32 %v728_v14, 0.0  ;;  %v729_v58 = vsub.f32 %v665_v17, %v697_v0  ;;  %vm1148_vm1 = vweird.f32 %v4360_v45 }
 0x1b0   :  { %v1145_v48 = vsub.f32 1.5, %v1144_v63  ;;  %v1154_v52 = vmul.f32 0.5, %v1153_v62  ;;  %v1269_v50 = vsel %vm1205_vm14, %v1173_v36, %v1237_v43  ;;  %vm1221_vm2 = vcmp.gt.f32.partialorder %v1189_v34, 0.0  ;;  %vm1149_vm5 = vmor %vm1147_vm13, %vm1148_vm1 }
 0x1b1   :  { %v980_v26 = vsel %vm979_vm15, %v3456_v37, %v976_v53  ;;  %v4397_v7 = vadd.f32 1e-05, %v760_v15  ;;  %v761_v41 = vmax.f32 %v729_v58, 0.0  ;;  %v4409_v37 = vld [vmem:[%s5813_s4] ss:$0 sm:$0xff]  ;;  %v4414_v36 = vsel %vm1222_vm0, %v1190_v1, %v1254_v54 }
 0x1b2   :  { %v1174_v5 = vmul.f32 %v980_v26, %v790_v46  ;;  %v485_v55 = vpop.xlane.xlu2 %484  ;;  %v1155_v0 = vsub.f32 1.5, %v1154_v52  ;;  %v1146_v18 = vmul.f32 %v4360_v45, %v1145_v48  ;;  %vm1158_vm4 = vweird.f32 %v4377_v33 }
 0x1b3   :  { %3463 = vrsqrt.f32 %v4397_v7  ;;  %v4401_v8 = vadd.f32 1e-05, %v761_v41  ;;  %v4404_v39 = vmul.f32 %v3887_v9, %v485_v55  ;;  %v4411_v46 = vpop.eup %3461  ;;  %v4421_v11 = vsel %vm1221_vm2, %v1189_v34, %v1253_v30 }
 0x1b4   :  { %vm1206_vm3 = vcmp.gt.f32.partialorder %v1174_v5, 0.0  ;;  %v1238_v4 = vmul.f32 0.01, %v1174_v5  ;;  %v982_v57 = vmul.f32 %v4411_v46, %v4388_v20  ;;  %v666_v14 = vmul.f32 %v620_v56, %v3887_v9 }
 0x1b5   :  { %3465 = vrsqrt.f32 %v4401_v8  ;;  %v698_v17 = vmul.f32 %v4404_v39, %v4404_v39  ;;  %v1382_v1 = vpop.f32.mrf.mxu1  ;;  %v1303_v62 = vpack.c.bf16 %v4414_v36, %v4421_v11  ;;  %v1150_v15 = vsel %vm1149_vm5, %v4360_v45, %v1146_v18 }
 0x1b6   :  { %v1270_v63 = vsel %vm1206_vm3, %v1174_v5, %v1238_v4  ;;  %v983_v43 = vmul.f32 %v4411_v46, %v982_v57  ;;  %v4434_v34 = vadd.f32 %v4409_v37, %v1382_v1  ;;  %vm1157_vm6 = vweird.f32 %v4316_v27 }
 0x1b7   :  { %v1295_v53 = vpack.c.bf16 %v1270_v63, %v1269_v50  ;;  %v730_v25 = vsub.f32 %v666_v14, %v698_v17  ;;  %v1156_v58 = vmul.f32 %v4377_v33, %v1155_v0  ;;  %v1191_v48 = vmul.f32 %v1150_v15, %v807_v40  ;;  %vm1159_vm7 = vmor %vm1157_vm6, %vm1158_vm4 }
 0x1b8   :  { %v733_v30 = vsub.f32 %v4260_v21, %v4244_v47  ;;  %v808_v26 = vsub.f32 %v3963_v23, %v4280_v61  ;;  %v984_v45 = vmul.f32 0.5, %v983_v43  ;;  %1462 = vadd.xlane.f32.xlu1 %v4434_v34  ;;  %v1558_v27 = vmul.f32 %v4434_v34, %v4434_v34 }
 0x1b9   :  { %v3464_v52 = vpop.eup %3463  ;;  %1411 = vmatmul.bf16.gmra.mxu1 %v1295_v53  ;;  %v670_v16 = vmul.f32 %v4006_v44, %v3887_v9  ;;  %v762_v40 = vmax.f32 %v730_v25, 0.0  ;;  %v1160_v47 = vsel %vm1159_vm7, %v4377_v33, %v1156_v58  ;;  %vm988_vm8 = vweird.f32 %v4411_v46 }
 0x1ba   :  { %v992_v42 = vmul.f32 %v3464_v52, %v4397_v7  ;;  %v985_v23 = vsub.f32 1.5, %v984_v45  ;;  %1590 = vadd.xlane.f32.xlu2 %v1558_v27  ;;  %v1192_v61 = vmul.f32 %v1160_v47, %v808_v26  ;;  %v1255_v41 = vmul.f32 0.01, %v1191_v48  ;;  %v5865_v47 = vld [vmem:[#allocation23_spill] sm:$0xff] }
 0x1bb   :  { %v4455_v21 = vpop.eup %3465  ;;  %v4460_v55 = vadd.f32 1e-05, %v762_v40  ;;  %vm1223_vm9 = vcmp.gt.f32.partialorder %v1191_v48, 0.0  ;;  %vm987_vm10 = vweird.f32 %v4388_v20  ;;  %v734_v50 = vsub.f32 %v670_v16, %v4251_v35 }
 0x1bc   :  { %v993_v54 = vmul.f32 %v3464_v52, %v992_v42  ;;  %v1002_v5 = vmul.f32 %v4455_v21, %v4401_v8  ;;  %v986_v44 = vmul.f32 %v4411_v46, %v985_v23  ;;  %vm1224_vm11 = vcmp.gt.f32.partialorder %v1192_v61, 0.0  ;;  %vm989_vm12 = vmor %vm987_vm10, %vm988_vm8 }
 0x1bd   :  { %v1256_v33 = vmul.f32 0.01, %v1192_v61  ;;  %3467 = vrsqrt.f32 %v4460_v55  ;;  %v1384_v4 = vpop.f32.mrf.mxu1  ;;  %v791_v18 = vsub.f32 %v3968_v24, %v4323_v22  ;;  %v4470_v14 = vsel %vm1223_vm9, %v1191_v48, %v1255_v41 }
 0x1be   :  { %v994_v0 = vmul.f32 0.5, %v993_v54  ;;  %v1003_v56 = vmul.f32 %v4455_v21, %v1002_v5  ;;  %v990_v57 = vsel %vm989_vm12, %v4411_v46, %v986_v44  ;;  %vm998_vm13 = vweird.f32 %v3464_v52 }
 0x1bf   :  { %v4472_v17 = vsel %vm1224_vm11, %v1192_v61, %v1256_v33  ;;  %v1032_v63 = vmul.f32 %v4297_v13, %v4232_v3  ;;  %v1175_v43 = vmul.f32 %v990_v57, %v791_v18  ;;  %v4479_v53 = vadd.f32 %v4409_v37, %v1384_v4 }
 0x1c0   :  { %v995_v20 = vsub.f32 1.5, %v994_v0  ;;  %v1004_v1 = vmul.f32 0.5, %v1003_v56  ;;  %v1304_v35 = vpack.c.bf16 %v4472_v17, %v4470_v14  ;;  %v766_v24 = vmax.f32 %v734_v50, 0.0 }
 0x1c1   :  { %vm997_vm14 = vweird.f32 %v4397_v7  ;;  %v792_v15 = vsub.f32 %v4001_v51, %v4338_v10  ;;  %v1023_v58 = vmul.f32 %v4212_v6, %v4237_v32  ;;  %v765_v48 = vmax.f32 %v733_v30, 0.0 }
 0x1c2   :  { %v1005_v22 = vsub.f32 1.5, %v1004_v1  ;;  %v996_v46 = vmul.f32 %v3464_v52, %v995_v20  ;;  %vm999_vm15 = vmor %vm997_vm14, %vm998_vm13  ;;  %1464 = vadd.xlane.f32.xlu2 %v4479_v53  ;;  %vm1008_vm0 = vweird.f32 %v4455_v21  ;;  %v1239_v7 = vmul.f32 0.01, %v1175_v43 }
 0x1c3   :  { %v3468_v25 = vpop.eup %3467  ;;  %v1033_v42 = vmul.f32 %v4297_v13, %v1032_v63  ;;  %v4491_v51 = vadd.f32 1e-05, %v766_v24  ;;  %v4495_v10 = vmul.f32 %v3887_v9, %v4038_v38  ;;  %vm1207_vm1 = vcmp.gt.f32.partialorder %v1175_v43, 0.0 }
 0x1c4   :  { %v1000_v26 = vsel %vm999_vm15, %v3464_v52, %v996_v46  ;;  %v1012_v45 = vmul.f32 %v3468_v25, %v4460_v55  ;;  %v1006_v16 = vmul.f32 %v4455_v21, %v1005_v22  ;;  %vm1007_vm2 = vweird.f32 %v4401_v8 }
 0x1c5   :  { %v1176_v27 = vmul.f32 %v1000_v26, %v792_v15  ;;  %v4498_v30 = vadd.f32 1e-05, %v765_v48  ;;  %v4502_v40 = vmul.f32 %v3887_v9, %v4036_v49  ;;  %vm4506_vm4 = vmor %vm1007_vm2, %vm1008_vm0  ;;  %v1559_v38 = vmul.f32 %v4479_v53, %v4479_v53 }
 0x1c6   :  { %v1013_v32 = vmul.f32 %v3468_v25, %v1012_v45  ;;  %v1271_v8 = vsel %vm1207_vm1, %v1175_v43, %v1239_v7  ;;  %v1010_v41 = vsel %vm4506_vm4, %v4455_v21, %v1006_v16  ;;  %3469 = vrsqrt.f32 %v4491_v51 }
 0x1c7   :  { %vm1208_vm3 = vcmp.gt.f32.partialorder %v1176_v27, 0.0  ;;  %v1240_v52 = vmul.f32 0.01, %v1176_v27  ;;  %v704_v49 = vmul.f32 %v4495_v10, %v4495_v10  ;;  %v793_v54 = vsub.f32 %v3995_v12, %v4363_v28 }
 0x1c8   :  { %v1014_v23 = vmul.f32 0.5, %v1013_v32  ;;  %v1024_v44 = vmul.f32 0.5, %v1023_v58  ;;  %v1034_v33 = vmul.f32 0.5, %v1033_v42  ;;  %vm1018_vm5 = vweird.f32 %v3468_v25  ;;  %v5864_v32 = vld [vmem:[#allocation17_spill] sm:$0xff] }
 0x1c9   :  { %v1272_v61 = vsel %vm1208_vm3, %v1176_v27, %v1240_v52  ;;  %3471 = vrsqrt.f32 %v4498_v30  ;;  %v672_v0 = vmul.f32 %v4031_v19, %v3887_v9  ;;  %v703_v21 = vmul.f32 %v4502_v40, %v4502_v40 }
 0x1ca   :  { %v1296_v5 = vpack.c.bf16 %v1272_v61, %v1271_v8  ;;  %v1015_v50 = vsub.f32 1.5, %v1014_v23  ;;  %1592 = vadd.xlane.f32.xlu2 %v1559_v38  ;;  %v1177_v56 = vmul.f32 %v1010_v41, %v793_v54  ;;  %vm1017_vm6 = vweird.f32 %v4460_v55  ;;  %v5866_v38 = vld [vmem:[#allocation7_spill] sm:$0xff]  ;;  %v5868_v54 = vld [vmem:[#allocation16_spill] sm:$0xff] }
 0x1cb   :  { %v671_v12 = vmul.f32 %v4014_v31, %v3887_v9  ;;  %v736_v28 = vsub.f32 %v672_v0, %v704_v49  ;;  %v794_v18 = vsub.f32 %v4009_v60, %v4404_v39  ;;  %vm1019_vm7 = vmor %vm1017_vm6, %vm1018_vm5  ;;  %v1035_v57 = vsub.f32 1.5, %v1034_v33  ;;  %v5869_v33 = vld [vmem:[#allocation18_spill] sm:$0xff] }
 0x1cc   :  { %1416 = vmatmul.bf16.gmra.mxu1 %v1296_v5  ;;  %v1016_v4 = vmul.f32 %v3468_v25, %v1015_v50  ;;  %v4530_v1 = vpop.eup %3469  ;;  %v1025_v19 = vsub.f32 1.5, %v1024_v44  ;;  %v1241_v24 = vmul.f32 0.01, %v1177_v56  ;;  %vm1209_vm8 = vcmp.gt.f32.partialorder %v1177_v56, 0.0 }
 0x1cd   :  { %v735_v63 = vsub.f32 %v671_v12, %v703_v21  ;;  %v768_v55 = vmax.f32 %v736_v28, 0.0  ;;  %vm1028_vm10 = vweird.f32 %v4212_v6  ;;  %v1052_v60 = vmul.f32 %v4530_v1, %v4491_v51 }
 0x1ce   :  { %v1020_v20 = vsel %vm1019_vm7, %v3468_v25, %v1016_v4  ;;  %v1036_v31 = vmul.f32 %v4297_v13, %v1035_v57  ;;  %vm1038_vm11 = vweird.f32 %v4297_v13  ;;  %v1026_v39 = vmul.f32 %v4212_v6, %v1025_v19 }
 0x1cf   :  { %v1178_v43 = vmul.f32 %v1020_v20, %v794_v18  ;;  %v4532_v22 = vpop.eup %3471  ;;  %v767_v15 = vmax.f32 %v735_v63, 0.0  ;;  %v1273_v25 = vsel %vm1209_vm8, %v1177_v56, %v1241_v24  ;;  %vm1037_vm12 = vweird.f32 %v4232_v3 }
 0x1d0   :  { %v1042_v48 = vmul.f32 %v4532_v22, %v4498_v30  ;;  %vm1027_vm13 = vweird.f32 %v4169_v59  ;;  %v4544_v45 = vadd.f32 1e-05, %v768_v55  ;;  %vm1039_vm14 = vmor %vm1037_vm12, %vm1038_vm11  ;;  %v1053_v27 = vmul.f32 %v4530_v1, %v1052_v60 }
 0x1d1   :  { %vm1210_vm9 = vcmp.gt.f32.partialorder %v1178_v43, 0.0  ;;  %v1242_v46 = vmul.f32 0.01, %v1178_v43  ;;  %vm1029_vm15 = vmor %vm1027_vm13, %vm1028_vm10  ;;  %v1040_v7 = vsel %vm1039_vm14, %v4297_v13, %v1036_v31  ;;  %v796_v3 = vsub.f32 %v3773_v2, %v4173_v29 }
 0x1d2   :  { %v1030_v16 = vsel %vm1029_vm15, %v4212_v6, %v1026_v39  ;;  %v4551_v42 = vadd.f32 1e-05, %v767_v15  ;;  %v4555_v52 = vmul.f32 %v3887_v9, %v5864_v32  ;;  %v795_v23 = vsub.f32 %v5866_v38, %v5865_v47  ;;  %v5867_v6 = vld [vmem:[#allocation19_spill] sm:$0xff]  ;;  %v5875_v38 = vld [vmem:[#allocation22_spill] sm:$0xff] }
 0x1d3   :  { %v1274_v58 = vsel %vm1210_vm9, %v1178_v43, %v1242_v46  ;;  %v1043_v8 = vmul.f32 %v4532_v22, %v1042_v48  ;;  %3473 = vrsqrt.f32 %v4544_v45  ;;  %v674_v2 = vmul.f32 %v5867_v6, %v3887_v9  ;;  %v5876_v6 = vld [vmem:[#allocation25_spill] sm:$0xff] }
 0x1d4   :  { %v1297_v26 = vpack.c.bf16 %v1274_v58, %v1273_v25  ;;  %v1387_v59 = vpop.f32.mrf.mxu1  ;;  %v1180_v29 = vmul.f32 %v1040_v7, %v796_v3  ;;  %v1179_v13 = vmul.f32 %v1030_v16, %v795_v23  ;;  %v1054_v41 = vmul.f32 0.5, %v1053_v27  ;;  %v5872_v7 = vld [vmem:[#allocation26_spill] sm:$0xff]  ;;  %v5873_v16 = vld [vmem:[#allocation9_spill] sm:$0xff] }
 0x1d5   :  { %v4561_v61 = vadd.f32 %v4409_v37, %v1387_v59  ;;  %3475 = vrsqrt.f32 %v4551_v42  ;;  %v4572_v5 = vmul.f32 %v3887_v9, %v5868_v54  ;;  %v706_v44 = vmul.f32 %v4555_v52, %v4555_v52  ;;  %v5874_v59 = vld [vmem:[#allocation21_spill] sm:$0xff] }
 0x1d6   :  { %1421 = vmatmul.bf16.vlgmr.msra.gmra.mxu2 %v1297_v26  ;;  %v673_v50 = vmul.f32 %v5869_v33, %v3887_v9  ;;  %v1044_v0 = vmul.f32 0.5, %v1043_v8  ;;  %v1244_v4 = vmul.f32 0.01, %v1180_v29  ;;  %v1055_v12 = vsub.f32 1.5, %v1054_v41 }
 0x1d7   :  { %1466 = vadd.xlane.f32.xlu0 %v4561_v61  ;;  %v1560_v49 = vmul.f32 %v4561_v61, %v4561_v61  ;;  %v705_v21 = vmul.f32 %v4572_v5, %v4572_v5  ;;  %v738_v56 = vsub.f32 %v674_v2, %v706_v44  ;;  %vm1212_vm0 = vcmp.gt.f32.partialorder %v1180_v29, 0.0  ;;  %v5877_v2 = vld [vmem:[#allocation8_spill] sm:$0xff] }
 0x1d8   :  { %v1243_v20 = vmul.f32 0.01, %v1179_v13  ;;  %v1045_v19 = vsub.f32 1.5, %v1044_v0  ;;  %vm1211_vm1 = vcmp.gt.f32.partialorder %v1179_v13, 0.0  ;;  %v1276_v55 = vsel %vm1212_vm0, %v1180_v29, %v1244_v4  ;;  %v5879_v0 = vld [vmem:[#allocation20_spill] sm:$0xff] }
 0x1d9   :  { %1594 = vadd.xlane.f32.xlu2 %v1560_v49  ;;  %v4580_v28 = vpop.eup %3473  ;;  %v737_v18 = vsub.f32 %v673_v50, %v705_v21  ;;  %v770_v24 = vmax.f32 %v738_v56, 0.0  ;;  %v1056_v60 = vmul.f32 %v4530_v1, %v1055_v12  ;;  %vm1058_vm2 = vweird.f32 %v4530_v1 }
 0x1da   :  { %v1072_v46 = vmul.f32 %v4580_v28, %v4544_v45  ;;  %vm1057_vm3 = vweird.f32 %v4491_v51  ;;  %v1275_v39 = vsel %vm1211_vm1, %v1179_v13, %v1243_v20  ;;  %v1046_v58 = vmul.f32 %v4532_v22, %v1045_v19  ;;  %v5878_v13 = vld [vmem:[#allocation24_spill] sm:$0xff] }
 0x1db   :  { %v4585_v43 = vpop.eup %3475  ;;  %v769_v31 = vmax.f32 %v737_v18, 0.0  ;;  %v1298_v25 = vpack.c.bf16 %v1276_v55, %v1275_v39  ;;  %vm1048_vm4 = vweird.f32 %v4532_v22  ;;  %v4597_v48 = vadd.f32 1e-05, %v770_v24  ;;  %vm4599_vm5 = vmor %vm1057_vm3, %vm1058_vm2 }
 0x1dc   :  { %v1389_v57 = vpop.f32.mrf.mxu1  ;;  %v1062_v15 = vmul.f32 %v4585_v43, %v4551_v42  ;;  %vm1047_vm6 = vweird.f32 %v4498_v30  ;;  %v1073_v51 = vmul.f32 %v4580_v28, %v1072_v46  ;;  %v1060_v27 = vsel %vm4599_vm5, %v4530_v1, %v1056_v60 }
 0x1dd   :  { %v4583_v63 = vadd.f32 %v4409_v37, %v1389_v57  ;;  %v798_v3 = vsub.f32 %v5873_v16, %v5872_v7  ;;  %v4610_v32 = vadd.f32 1e-05, %v769_v31  ;;  %v4614_v47 = vmul.f32 %v3887_v9, %v5874_v59  ;;  %vm1049_vm7 = vmor %vm1047_vm6, %vm1048_vm4 }
 0x1de   :  { %v4618_v23 = vmul.f32 %v3887_v9, %v5875_v38  ;;  %v1063_v30 = vmul.f32 %v4585_v43, %v1062_v15  ;;  %v1050_v1 = vsel %vm1049_vm7, %v4532_v22, %v1046_v58  ;;  %v797_v29 = vsub.f32 %v5877_v2, %v5876_v6 }
 0x1df   :  { %1468 = vadd.xlane.f32.xlu1 %v4583_v63  ;;  %v1561_v8 = vmul.f32 %v4583_v63, %v4583_v63  ;;  %3477 = vrsqrt.f32 %v4597_v48  ;;  %v676_v41 = vmul.f32 %v5878_v13, %v3887_v9  ;;  %v1182_v49 = vmul.f32 %v1060_v27, %v798_v3 }
 0x1e0   :  { %v1074_v54 = vmul.f32 0.5, %v1073_v51  ;;  %3479 = vrsqrt.f32 %v4610_v32  ;;  %v707_v44 = vmul.f32 %v4614_v47, %v4614_v47  ;;  %v708_v33 = vmul.f32 %v4618_v23, %v4618_v23 }
 0x1e1   :  { %v1181_v22 = vmul.f32 %v1050_v1, %v797_v29  ;;  %v1064_v50 = vmul.f32 0.5, %v1063_v30  ;;  %v675_v21 = vmul.f32 %v5879_v0, %v3887_v9  ;;  %v1246_v12 = vmul.f32 0.01, %v1182_v49  ;;  %v5883_v29 = vld [vmem:[#allocation10_spill] sm:$0xff] }
 0x1e2   :  { %v740_v56 = vsub.f32 %v676_v41, %v708_v33  ;;  %v1075_v18 = vsub.f32 1.5, %v1074_v54  ;;  %vm1214_vm8 = vcmp.gt.f32.partialorder %v1182_v49, 0.0  ;;  %vm1078_vm10 = vweird.f32 %v4580_v28 }
 0x1e3   :  { %v739_v19 = vsub.f32 %v675_v21, %v707_v44  ;;  %v1245_v24 = vmul.f32 0.01, %v1181_v22  ;;  %v1065_v55 = vsub.f32 1.5, %v1064_v50  ;;  %vm1213_vm9 = vcmp.gt.f32.partialorder %v1181_v22, 0.0 }
 0x1e4   :  { %v772_v31 = vmax.f32 %v740_v56, 0.0  ;;  %v1278_v39 = vsel %vm1214_vm8, %v1182_v49, %v1246_v12  ;;  %v1076_v15 = vmul.f32 %v4580_v28, %v1075_v18  ;;  %vm1077_vm11 = vweird.f32 %v4544_v45 }
 0x1e5   :  { %v4639_v20 = vpop.eup %3477  ;;  %v771_v58 = vmax.f32 %v739_v19, 0.0  ;;  %v1277_v26 = vsel %vm1213_vm9, %v1181_v22, %v1245_v24  ;;  %v1066_v51 = vmul.f32 %v4585_v43, %v1065_v55  ;;  %vm1068_vm12 = vweird.f32 %v4585_v43  ;;  %vm4655_vm13 = vmor %vm1077_vm11, %vm1078_vm10 }
 0x1e6   :  { %1426 = vmatmul.bf16.gmra.mxu2 %v1298_v25  ;;  %v4644_v60 = vpop.eup %3479  ;;  %v1092_v25 = vmul.f32 %v4639_v20, %v4597_v48  ;;  %v1299_v7 = vpack.c.bf16 %v1278_v39, %v1277_v26  ;;  %v4659_v3 = vadd.f32 1e-05, %v772_v31  ;;  %vm1067_vm14 = vweird.f32 %v4551_v42 }
 0x1e7   :  { %1596 = vadd.xlane.f32.xlu1 %v1561_v8  ;;  %v1082_v27 = vmul.f32 %v4644_v60, %v4610_v32  ;;  %v1080_v45 = vsel %vm4655_vm13, %v4580_v28, %v1076_v15  ;;  %vm1069_vm15 = vmor %vm1067_vm14, %vm1068_vm12  ;;  %v5882_v8 = vld [vmem:[#allocation11_spill] sm:$0xff]  ;;  %v4671_v6 = vadd.f32 1e-05, %v771_v58  ;;  %v799_v13 = vsub.f32 %v5883_v29, %v4502_v40 }
 0x1e8   :  { %v1093_v38 = vmul.f32 %v4639_v20, %v1092_v25  ;;  %v800_v1 = vsub.f32 %v5882_v8, %v4495_v10  ;;  %v1070_v2 = vsel %vm1069_vm15, %v4585_v43, %v1066_v51  ;;  %3481 = vrsqrt.f32 %v4659_v3  ;;  %v5884_v25 = vld [vmem:[#allocation13_spill] sm:$0xff] }
 0x1e9   :  { %v1083_v42 = vmul.f32 %v4644_v60, %v1082_v27  ;;  %v1183_v10 = vmul.f32 %v1070_v2, %v799_v13  ;;  %3483 = vrsqrt.f32 %v4671_v6  ;;  %vm1098_vm2 = vweird.f32 %v4639_v20  ;;  %v5885_v27 = vld [vmem:[#allocation12_spill] sm:$0xff] }
 0x1ea   :  { %v1184_v41 = vmul.f32 %v1080_v45, %v800_v1  ;;  %v1094_v49 = vmul.f32 0.5, %v1093_v38  ;;  %vm1097_vm3 = vweird.f32 %v4597_v48  ;;  %vm1088_vm4 = vweird.f32 %v4644_v60 }
 0x1eb   :  { %v1392_v4 = vpop.f32.mrf.mxu1  ;;  %v1084_v54 = vmul.f32 0.5, %v1083_v42  ;;  %v1247_v0 = vmul.f32 0.01, %v1183_v10  ;;  %vm1215_vm1 = vcmp.gt.f32.partialorder %v1183_v10, 0.0  ;;  %vm1099_vm5 = vmor %vm1097_vm3, %vm1098_vm2  ;;  %vm1087_vm6 = vweird.f32 %v4610_v32 }
 0x1ec   :  { %v4637_v57 = vadd.f32 %v4409_v37, %v1392_v4  ;;  %v1248_v44 = vmul.f32 0.01, %v1184_v41  ;;  %v1095_v33 = vsub.f32 1.5, %v1094_v49  ;;  %vm1216_vm0 = vcmp.gt.f32.partialorder %v1184_v41, 0.0  ;;  %vm1089_vm7 = vmor %vm1087_vm6, %vm1088_vm4 }
 0x1ed   :  { %v1085_v40 = vsub.f32 1.5, %v1084_v54  ;;  %v1279_v19 = vsel %vm1215_vm1, %v1183_v10, %v1247_v0  ;;  %v802_v58 = vsub.f32 %v5884_v25, %v4555_v52  ;;  %vm1117_vm12 = vweird.f32 %v4659_v3  ;;  %v5886_v10 = vld [vmem:[#allocation15_spill] sm:$0xff] }
 0x1ee   :  { %1470 = vadd.xlane.f32.xlu2 %v4637_v57  ;;  %v1562_v46 = vmul.f32 %v4637_v57, %v4637_v57  ;;  %v4685_v50 = vpop.eup %3481  ;;  %v1280_v4 = vsel %vm1216_vm0, %v1184_v41, %v1248_v44  ;;  %v1096_v18 = vmul.f32 %v4639_v20, %v1095_v33  ;;  %vm1107_vm14 = vweird.f32 %v4671_v6 }
 0x1ef   :  { %v3484_v56 = vpop.eup %3483  ;;  %v1112_v12 = vmul.f32 %v4685_v50, %v4659_v3  ;;  %v1300_v55 = vpack.c.bf16 %v1280_v4, %v1279_v19  ;;  %vm1118_vm10 = vweird.f32 %v4685_v50  ;;  %v804_v54 = vsub.f32 %v5886_v10, %v4618_v23  ;;  %v5887_v3 = vld [vmem:[#allocation14_spill] sm:$0xff] }
 0x1f0   :  { %1598 = vadd.xlane.f32.xlu1 %v1562_v46  ;;  %v1102_v24 = vmul.f32 %v3484_v56, %v4671_v6  ;;  %v1086_v46 = vmul.f32 %v4644_v60, %v1085_v40  ;;  %v1100_v48 = vsel %vm1099_vm5, %v4639_v20, %v1096_v18  ;;  %vm1108_vm11 = vweird.f32 %v3484_v56  ;;  %vm1119_vm13 = vmor %vm1117_vm12, %vm1118_vm10 }
 0x1f1   :  { %v1113_v39 = vmul.f32 %v4685_v50, %v1112_v12  ;;  %v1186_v16 = vmul.f32 %v1100_v48, %v802_v58  ;;  %vm1109_vm15 = vmor %vm1107_vm14, %vm1108_vm11  ;;  %v803_v44 = vsub.f32 %v5887_v3, %v4614_v47 }
 0x1f2   :  { %v1103_v26 = vmul.f32 %v3484_v56, %v1102_v24  ;;  %v1090_v32 = vsel %vm1089_vm7, %v4644_v60, %v1086_v46 }
 0x1f3   :  { %v1394_v59 = vpop.f32.mrf.mxu1  ;;  %v1250_v38 = vmul.f32 0.01, %v1186_v16  ;;  %vm1218_vm8 = vcmp.gt.f32.partialorder %v1186_v16, 0.0 }
 0x1f4   :  { %v4667_v30 = vadd.f32 %v4409_v37, %v1394_v59  ;;  %v1114_v59 = vmul.f32 0.5, %v1113_v39  ;;  %v1104_v20 = vmul.f32 0.5, %v1103_v26 }
 0x1f5   :  { %v1282_v2 = vsel %vm1218_vm8, %v1186_v16, %v1250_v38 }
 0x1f6   :  { %1431 = vmatmul.bf16.gmra.mxu2 %v1299_v7  ;;  %1472 = vadd.xlane.f32.xlu0 %v4667_v30  ;;  %v1563_v28 = vmul.f32 %v4667_v30, %v4667_v30  ;;  %v801_v7 = vsub.f32 %v5885_v27, %v4572_v5  ;;  %v1115_v8 = vsub.f32 1.5, %v1114_v59  ;;  %v1105_v1 = vsub.f32 1.5, %v1104_v20 }
 0x1f8   :  { %1600 = vadd.xlane.f32.xlu1 %v1563_v28  ;;  %v1185_v45 = vmul.f32 %v1090_v32, %v801_v7  ;;  %v1116_v28 = vmul.f32 %v4685_v50, %v1115_v8  ;;  %v1106_v29 = vmul.f32 %v3484_v56, %v1105_v1 }
 0x1fa   :  { %v1249_v52 = vmul.f32 0.01, %v1185_v45  ;;  %vm1217_vm9 = vcmp.gt.f32.partialorder %v1185_v45, 0.0  ;;  %v1120_v49 = vsel %vm1119_vm13, %v4685_v50, %v1116_v28 }
 0x1fb   :  { %v1397_v43 = vpop.f32.mrf.mxu1  ;;  %v1188_v33 = vmul.f32 %v1120_v49, %v804_v54 }
 0x1fc   :  { %v4683_v22 = vadd.f32 %v4409_v37, %v1397_v43  ;;  %v1281_v5 = vsel %vm1217_vm9, %v1185_v45, %v1249_v52  ;;  %v1110_v43 = vsel %vm1109_vm15, %v3484_v56, %v1106_v29 }
 0x1fd   :  { %v1301_v13 = vpack.c.bf16 %v1282_v2, %v1281_v5  ;;  %v1187_v40 = vmul.f32 %v1110_v43, %v803_v44  ;;  %v1252_v50 = vmul.f32 0.01, %v1188_v33  ;;  %vm1220_vm0 = vcmp.gt.f32.partialorder %v1188_v33, 0.0 }
 0x1fe   :  { %v1564_v21 = vmul.f32 %v4683_v22, %v4683_v22 }
 0x1ff   :  { %v1251_v23 = vmul.f32 0.01, %v1187_v40  ;;  %vm1219_vm1 = vcmp.gt.f32.partialorder %v1187_v40, 0.0  ;;  %v1284_v56 = vsel %vm1220_vm0, %v1188_v33, %v1252_v50 }
 0x200   :  { %1602 = vadd.xlane.f32.xlu0 %v1564_v21  ;;  %1474 = vadd.xlane.f32.xlu1 %v4683_v22 }
 0x201   :  { %v1283_v12 = vsel %vm1219_vm1, %v1187_v40, %v1251_v23 }
 0x202   :  { %v1302_v18 = vpack.c.bf16 %v1284_v56, %v1283_v12 }
 0x203   :  { %v1399_v31 = vpop.f32.mrf.mxu1 }
 0x204   :  { %v4701_v15 = vadd.f32 %v4409_v37, %v1399_v31 }
 0x206   :  { %1436 = vmatmul.bf16.gmra.mxu2 %v1300_v55  ;;  %1476 = vadd.xlane.f32.xlu2 %v4701_v15  ;;  %v1565_v51 = vmul.f32 %v4701_v15, %v4701_v15 }
 0x208   :  { %1604 = vadd.xlane.f32.xlu1 %v1565_v51 }
 0x211   :  { %v1402_v42 = vpop.f32.mrf.mxu1 }
 0x212   :  { %v4715_v60 = vadd.f32 %v4409_v37, %v1402_v42 }
 0x214   :  { %1478 = vadd.xlane.f32.xlu0 %v4715_v60  ;;  %v1566_v41 = vmul.f32 %v4715_v60, %v4715_v60 }
 0x216   :  { %1441 = vmatmul.bf16.gmra.mxu2 %v1301_v13  ;;  %1606 = vadd.xlane.f32.xlu2 %v1566_v41 }
 0x219   :  { %v1404_v0 = vpop.f32.mrf.mxu1 }
 0x21a   :  { %v4728_v21 = vadd.f32 %v4409_v37, %v1404_v0 }
 0x21c   :  { %1480 = vadd.xlane.f32.xlu1 %v4728_v21  ;;  %v1567_v6 = vmul.f32 %v4728_v21, %v4728_v21 }
 0x21e   :  { %1608 = vadd.xlane.f32.xlu0 %v1567_v6 }
 0x224   :  { %v1407_v4 = vpop.f32.mrf.mxu1 }
 0x225   :  { %v4734_v47 = vadd.f32 %v4409_v37, %v1407_v4 }
 0x226   :  { %1446 = vmatmul.bf16.gmra.mxu2 %v1302_v18 }
 0x227   :  { %1482 = vadd.xlane.f32.xlu2 %v4734_v47  ;;  %v1568_v19 = vmul.f32 %v4734_v47, %v4734_v47 }
 0x229   :  { %1610 = vadd.xlane.f32.xlu1 %v1568_v19 }
 0x22b   :  { %v1463_v55 = vpop.xlane.xlu1 %1462 }
 0x22c   :  { %v1409_v24 = vpop.f32.mrf.mxu1  ;;  %v4743_v31 = vmul.f32 %v1463_v55, %v3887_v9 }
 0x22d   :  { %v4740_v46 = vadd.f32 %v4409_v37, %v1409_v24  ;;  %v1591_v39 = vpop.xlane.xlu2 %1590 }
 0x22e   :  { %v1686_v25 = vmul.f32 %v4743_v31, %v4743_v31  ;;  %v1654_v58 = vmul.f32 %v1591_v39, %v3887_v9 }
 0x22f   :  { %1484 = vadd.xlane.f32.xlu0 %v4740_v46  ;;  %v1569_v48 = vmul.f32 %v4740_v46, %v4740_v46 }
 0x230   :  { %v1718_v26 = vsub.f32 %v1654_v58, %v1686_v25 }
 0x231   :  { %1612 = vadd.xlane.f32.xlu2 %v1569_v48 }
 0x232   :  { %v1750_v16 = vmax.f32 %v1718_v26, 0.0 }
 0x234   :  { %v1814_v45 = vadd.f32 1e-05, %v1750_v16 }
 0x235   :  { %v1465_v32 = vpop.xlane.xlu2 %1464 }
 0x236   :  { %v1412_v51 = vpop.f32.mrf.mxu1  ;;  %1451 = vmatmul.bf16.gmra.mxu2 %v1303_v62  ;;  %v4761_v59 = vmul.f32 %v1465_v32, %v3887_v9  ;;  %3485 = vrsqrt.f32 %v1814_v45  ;;  %vm1852_vm3 = vweird.f32 %v1814_v45 }
 0x237   :  { %v4752_v27 = vadd.f32 %v4409_v37, %v1412_v51  ;;  %v1782_v51 = vsub.f32 %v4434_v34, %v4743_v31 }
 0x238   :  { %v1687_v36 = vmul.f32 %v4761_v59, %v4761_v59 }
 0x239   :  { %1486 = vadd.xlane.f32.xlu1 %v4752_v27  ;;  %v1570_v7 = vmul.f32 %v4752_v27, %v4752_v27 }
 0x23b   :  { %1614 = vadd.xlane.f32.xlu0 %v1570_v7 }
 0x23c   :  { %v3486_v2 = vpop.eup %3485 }
 0x23d   :  { %v1593_v38 = vpop.xlane.xlu2 %1592  ;;  %v1847_v5 = vmul.f32 %v3486_v2, %v1814_v45  ;;  %vm1853_vm2 = vweird.f32 %v3486_v2 }
 0x23e   :  { %v1414_v20 = vpop.f32.mrf.mxu1  ;;  %v1655_v52 = vmul.f32 %v1593_v38, %v3887_v9  ;;  %vm1854_vm4 = vmor %vm1852_vm3, %vm1853_vm2 }
 0x23f   :  { %v4764_v8 = vadd.f32 %v4409_v37, %v1414_v20  ;;  %v1848_v49 = vmul.f32 %v3486_v2, %v1847_v5 }
 0x240   :  { %v1719_v62 = vsub.f32 %v1655_v52, %v1687_v36 }
 0x241   :  { %1488 = vadd.xlane.f32.xlu2 %v4764_v8  ;;  %v1571_v11 = vmul.f32 %v4764_v8, %v4764_v8  ;;  %v1849_v3 = vmul.f32 0.5, %v1848_v49 }
 0x242   :  { %v1751_v1 = vmax.f32 %v1719_v62, 0.0 }
 0x243   :  { %1616 = vadd.xlane.f32.xlu1 %v1571_v11  ;;  %v1850_v6 = vsub.f32 1.5, %v1849_v3 }
 0x244   :  { %v4778_v29 = vadd.f32 1e-05, %v1751_v1 }
 0x245   :  { %v1851_v19 = vmul.f32 %v3486_v2, %v1850_v6 }
 0x246   :  { %1456 = vmatmul.bf16.gmra.mxu2 %v1304_v35  ;;  %3487 = vrsqrt.f32 %v4778_v29  ;;  %vm1862_vm7 = vweird.f32 %v4778_v29 }
 0x247   :  { %v1855_v26 = vsel %vm1854_vm4, %v3486_v2, %v1851_v19 }
 0x248   :  { %v2166_v20 = vmul.f32 %v1855_v26, %v1782_v51 }
 0x249   :  { %v1417_v42 = vpop.f32.mrf.mxu1 }
 0x24a   :  { %v4776_v28 = vadd.f32 %v4409_v37, %v1417_v42  ;;  %v1467_v41 = vpop.xlane.xlu0 %1466  ;;  %v2230_v42 = vmul.f32 0.01, %v2166_v20  ;;  %vm2198_vm5 = vcmp.gt.f32.partialorder %v2166_v20, 0.0 }
 0x24b   :  { %v4785_v14 = vmul.f32 %v1467_v41, %v3887_v9 }
 0x24c   :  { %1490 = vadd.xlane.f32.xlu0 %v4776_v28  ;;  %v1572_v13 = vmul.f32 %v4776_v28, %v4776_v28  ;;  %v1595_v17 = vpop.xlane.xlu2 %1594  ;;  %v4794_v33 = vpop.eup %3487 }
 0x24d   :  { %v1688_v35 = vmul.f32 %v4785_v14, %v4785_v14  ;;  %v1656_v10 = vmul.f32 %v1595_v17, %v3887_v9  ;;  %v1857_v23 = vmul.f32 %v4794_v33, %v4778_v29  ;;  %vm1863_vm6 = vweird.f32 %v4794_v33  ;;  %v4843_v17 = vld [vmem:[%s5814_s5] ss:$0 sm:$0xff] }
 0x24e   :  { %1618 = vadd.xlane.f32.xlu2 %v1572_v13  ;;  %vm4846_vm8 = vmor %vm1862_vm7, %vm1863_vm6 }
 0x24f   :  { %v1720_v44 = vsub.f32 %v1656_v10, %v1688_v35  ;;  %v1858_v24 = vmul.f32 %v4794_v33, %v1857_v23 }
 0x251   :  { %v1419_v54 = vpop.f32.mrf.mxu1  ;;  %v1752_v0 = vmax.f32 %v1720_v44, 0.0  ;;  %v1859_v32 = vmul.f32 0.5, %v1858_v24 }
 0x252   :  { %v4791_v43 = vadd.f32 %v4409_v37, %v1419_v54  ;;  %v1469_v40 = vpop.xlane.xlu1 %1468  ;;  %v2262_v54 = vsel %vm2198_vm5, %v2166_v20, %v2230_v42 }
 0x253   :  { %v4796_v50 = vadd.f32 1e-05, %v1752_v0  ;;  %v4804_v12 = vmul.f32 %v1469_v40, %v3887_v9  ;;  %v1860_v36 = vsub.f32 1.5, %v1859_v32  ;;  %v2298_v19 = vmul.f32 %v4843_v17, %v2262_v54 }
 0x254   :  { %1492 = vadd.xlane.f32.xlu1 %v4791_v43  ;;  %v1573_v4 = vmul.f32 %v4791_v43, %v4791_v43 }
 0x255   :  { %3489 = vrsqrt.f32 %v4796_v50  ;;  %v1689_v25 = vmul.f32 %v4804_v12, %v4804_v12  ;;  %v1861_v49 = vmul.f32 %v4794_v33, %v1860_v36  ;;  %vm1872_vm10 = vweird.f32 %v4796_v50 }
 0x257   :  { %v1865_v6 = vsel %vm4846_vm8, %v4794_v33, %v1861_v49 }
 0x259   :  { %v1422_v56 = vpop.f32.mrf.mxu2 }
 0x25a   :  { %v4807_v18 = vadd.f32 %v4409_v37, %v1422_v56  ;;  %v1597_v39 = vpop.xlane.xlu1 %1596  ;;  %v1783_v56 = vsub.f32 %v4479_v53, %v4761_v59 }
 0x25b   :  { %v4813_v48 = vpop.eup %3489  ;;  %v1657_v58 = vmul.f32 %v1597_v39, %v3887_v9 }
 0x25c   :  { %1620 = vadd.xlane.f32.xlu1 %v1573_v4  ;;  %1494 = vadd.xlane.f32.xlu2 %v4807_v18  ;;  %v1574_v55 = vmul.f32 %v4807_v18, %v4807_v18  ;;  %v1867_v7 = vmul.f32 %v4813_v48, %v4796_v50  ;;  %v2167_v53 = vmul.f32 %v1865_v6, %v1783_v56  ;;  %vm1873_vm9 = vweird.f32 %v4813_v48 }
 0x25d   :  { %v1721_v16 = vsub.f32 %v1657_v58, %v1689_v25  ;;  %vm4877_vm11 = vmor %vm1872_vm10, %vm1873_vm9 }
 0x25e   :  { %1622 = vadd.xlane.f32.xlu0 %v1574_v55  ;;  %v1868_v11 = vmul.f32 %v4813_v48, %v1867_v7  ;;  %vm2199_vm12 = vcmp.gt.f32.partialorder %v2167_v53, 0.0  ;;  %v2231_v20 = vmul.f32 0.01, %v2167_v53 }
 0x25f   :  { %v1753_v38 = vmax.f32 %v1721_v16, 0.0 }
 0x260   :  { %v1869_v13 = vmul.f32 0.5, %v1868_v11 }
 0x261   :  { %v1424_v45 = vpop.f32.mrf.mxu2  ;;  %v1471_v62 = vpop.xlane.xlu2 %1470  ;;  %v4826_v1 = vadd.f32 1e-05, %v1753_v38 }
 0x262   :  { %v4823_v52 = vadd.f32 %v4409_v37, %v1424_v45  ;;  %v4829_v2 = vmul.f32 %v1471_v62, %v3887_v9  ;;  %v1870_v44 = vsub.f32 1.5, %v1869_v13  ;;  %v2263_v13 = vsel %vm2199_vm12, %v2167_v53, %v2231_v20 }
 0x263   :  { %v1599_v31 = vpop.xlane.xlu1 %1598  ;;  %3491 = vrsqrt.f32 %v4826_v1  ;;  %vm1882_vm14 = vweird.f32 %v4826_v1  ;;  %v2299_v3 = vmul.f32 %v4843_v17, %v2263_v13 }
 0x264   :  { %v1575_v34 = vmul.f32 %v4823_v52, %v4823_v52  ;;  %v1690_v5 = vmul.f32 %v4829_v2, %v4829_v2  ;;  %v1658_v41 = vmul.f32 %v1599_v31, %v3887_v9  ;;  %v1871_v58 = vmul.f32 %v4813_v48, %v1870_v44 }
 0x265   :  { %v1786_v53 = vsub.f32 %v4637_v57, %v4829_v2 }
 0x266   :  { %1624 = vadd.xlane.f32.xlu1 %v1575_v34  ;;  %1496 = vadd.xlane.f32.xlu0 %v4823_v52  ;;  %v1722_v35 = vsub.f32 %v1658_v41, %v1690_v5  ;;  %v1875_v38 = vsel %vm4877_vm11, %v4813_v48, %v1871_v58 }
 0x268   :  { %v1754_v0 = vmax.f32 %v1722_v35, 0.0 }
 0x269   :  { %v1427_v10 = vpop.f32.mrf.mxu2  ;;  %v1473_v40 = vpop.xlane.xlu0 %1472 }
 0x26a   :  { %v4853_v23 = vpop.eup %3491  ;;  %v4858_v29 = vmul.f32 %v1473_v40, %v3887_v9  ;;  %v4861_v4 = vadd.f32 %v4409_v37, %v1427_v10  ;;  %v4866_v55 = vadd.f32 1e-05, %v1754_v0 }
 0x26b   :  { %v1877_v24 = vmul.f32 %v4853_v23, %v4826_v1  ;;  %v1601_v39 = vpop.xlane.xlu1 %1600  ;;  %vm1883_vm13 = vweird.f32 %v4853_v23  ;;  %v4921_v1 = vld [vmem:[%s5813_s4] ss:$0 sm:$0xff] }
 0x26c   :  { %v1691_v33 = vmul.f32 %v4858_v29, %v4858_v29  ;;  %v1659_v25 = vmul.f32 %v1601_v39, %v3887_v9  ;;  %3493 = vrsqrt.f32 %v4866_v55  ;;  %v1576_v62 = vmul.f32 %v4861_v4, %v4861_v4  ;;  %vm4909_vm15 = vmor %vm1882_vm14, %vm1883_vm13 }
 0x26d   :  { %v1878_v59 = vmul.f32 %v4853_v23, %v1877_v24  ;;  %vm1892_vm2 = vweird.f32 %v4866_v55 }
 0x26e   :  { %1498 = vadd.xlane.f32.xlu1 %v4861_v4  ;;  %2330 = vadd.xlane.f32.xlu0 %v2298_v19  ;;  %v1723_v26 = vsub.f32 %v1659_v25, %v1691_v33  ;;  %v1785_v25 = vsub.f32 %v4583_v63, %v4804_v12 }
 0x26f   :  { %v1879_v51 = vmul.f32 0.5, %v1878_v59 }
 0x270   :  { %v1755_v16 = vmax.f32 %v1723_v26, 0.0 }
 0x271   :  { %v1429_v32 = vpop.f32.mrf.mxu2  ;;  %v1880_v36 = vsub.f32 1.5, %v1879_v51 }
 0x272   :  { %v4882_v45 = vadd.f32 %v4409_v37, %v1429_v32  ;;  %v4887_v11 = vadd.f32 1e-05, %v1755_v16  ;;  %v3494_v34 = vpop.eup %3493  ;;  %v1784_v37 = vsub.f32 %v4561_v61, %v4785_v14 }
 0x273   :  { %v1475_v31 = vpop.xlane.xlu1 %1474  ;;  %v1887_v42 = vmul.f32 %v3494_v34, %v4866_v55  ;;  %v1603_v48 = vpop.xlane.xlu0 %1602  ;;  %v1881_v35 = vmul.f32 %v4853_v23, %v1880_v36  ;;  %vm1893_vm0 = vweird.f32 %v3494_v34 }
 0x274   :  { %1500 = vadd.xlane.f32.xlu2 %v4882_v45  ;;  %v1577_v50 = vmul.f32 %v4882_v45, %v4882_v45  ;;  %3495 = vrsqrt.f32 %v4887_v11  ;;  %v4899_v5 = vmul.f32 %v1475_v31, %v3887_v9  ;;  %v2168_v41 = vmul.f32 %v1875_v38, %v1784_v37  ;;  %vm1894_vm3 = vmor %vm1892_vm2, %vm1893_vm0 }
 0x275   :  { %v1888_v49 = vmul.f32 %v3494_v34, %v1887_v42  ;;  %v1660_v61 = vmul.f32 %v1603_v48, %v3887_v9  ;;  %v1885_v33 = vsel %vm4909_vm15, %v4853_v23, %v1881_v35  ;;  %vm1902_vm7 = vweird.f32 %v4887_v11 }
 0x276   :  { %1628 = vadd.xlane.f32.xlu1 %v1577_v50  ;;  %1626 = vadd.xlane.f32.xlu0 %v1576_v62  ;;  %v1692_v14 = vmul.f32 %v4899_v5, %v4899_v5  ;;  %vm2200_vm1 = vcmp.gt.f32.partialorder %v2168_v41, 0.0  ;;  %v2232_v6 = vmul.f32 0.01, %v2168_v41  ;;  %v2169_v2 = vmul.f32 %v1885_v33, %v1785_v25 }
 0x277   :  { %v1889_v54 = vmul.f32 0.5, %v1888_v49 }
 0x278   :  { %v1724_v0 = vsub.f32 %v1660_v61, %v1692_v14  ;;  %v2264_v12 = vsel %vm2200_vm1, %v2168_v41, %v2232_v6  ;;  %v2233_v31 = vmul.f32 0.01, %v2169_v2  ;;  %vm2201_vm4 = vcmp.gt.f32.partialorder %v2169_v2, 0.0 }
 0x279   :  { %v1432_v10 = vpop.f32.mrf.mxu2  ;;  %v1477_v40 = vpop.xlane.xlu2 %1476  ;;  %v1890_v19 = vsub.f32 1.5, %v1889_v54  ;;  %v2300_v62 = vmul.f32 %v4843_v17, %v2264_v12 }
 0x27a   :  { %v4913_v56 = vpop.eup %3495  ;;  %v4916_v24 = vmul.f32 %v1477_v40, %v3887_v9  ;;  %v4924_v39 = vadd.f32 %v4921_v1, %v1432_v10  ;;  %v1756_v58 = vmax.f32 %v1724_v0, 0.0  ;;  %v2265_v41 = vsel %vm2201_vm4, %v2169_v2, %v2233_v31 }
 0x27b   :  { %v1897_v59 = vmul.f32 %v4913_v56, %v4887_v11  ;;  %v1605_v26 = vpop.xlane.xlu1 %1604  ;;  %v1891_v23 = vmul.f32 %v3494_v34, %v1890_v19  ;;  %vm1903_vm6 = vweird.f32 %v4913_v56  ;;  %v2301_v40 = vmul.f32 %v4843_v17, %v2265_v41 }
 0x27c   :  { %2332 = vadd.xlane.f32.xlu2 %v2299_v3  ;;  %v1693_v51 = vmul.f32 %v4916_v24, %v4916_v24  ;;  %v1661_v32 = vmul.f32 %v1605_v26, %v3887_v9  ;;  %v4942_v57 = vadd.f32 1e-05, %v1756_v58  ;;  %vm4963_vm8 = vmor %vm1902_vm7, %vm1903_vm6 }
 0x27d   :  { %v1898_v63 = vmul.f32 %v4913_v56, %v1897_v59  ;;  %v1895_v16 = vsel %vm1894_vm3, %v3494_v34, %v1891_v23  ;;  %v1578_v34 = vmul.f32 %v4924_v39, %v4924_v39 }
 0x27e   :  { %1502 = vadd.xlane.f32.xlu0 %v4924_v39  ;;  %v1725_v7 = vsub.f32 %v1661_v32, %v1693_v51  ;;  %3497 = vrsqrt.f32 %v4942_v57  ;;  %v2170_v38 = vmul.f32 %v1895_v16, %v1786_v53  ;;  %v1787_v53 = vsub.f32 %v4667_v30, %v4858_v29 }
 0x27f   :  { %v1899_v55 = vmul.f32 0.5, %v1898_v63  ;;  %vm1912_vm10 = vweird.f32 %v4942_v57 }
 0x280   :  { %v1757_v36 = vmax.f32 %v1725_v7, 0.0  ;;  %v2234_v42 = vmul.f32 0.01, %v2170_v38  ;;  %vm2202_vm5 = vcmp.gt.f32.partialorder %v2170_v38, 0.0 }
 0x281   :  { %v1434_v20 = vpop.f32.mrf.mxu2  ;;  %v1900_v37 = vsub.f32 1.5, %v1899_v55 }
 0x282   :  { %v4947_v50 = vadd.f32 %v4921_v1, %v1434_v20  ;;  %v4950_v48 = vadd.f32 1e-05, %v1757_v36  ;;  %v2266_v49 = vsel %vm2202_vm5, %v2170_v38, %v2234_v42  ;;  %v1788_v42 = vsub.f32 %v4683_v22, %v4899_v5 }
 0x283   :  { %v1901_v35 = vmul.f32 %v4913_v56, %v1900_v37  ;;  %v2302_v6 = vmul.f32 %v4843_v17, %v2266_v49 }
 0x284   :  { %1504 = vadd.xlane.f32.xlu1 %v4947_v50  ;;  %2334 = vadd.xlane.f32.xlu2 %v2300_v62  ;;  %3499 = vrsqrt.f32 %v4950_v48  ;;  %v3498_v13 = vpop.eup %3497  ;;  %v1579_v38 = vmul.f32 %v4947_v50, %v4947_v50  ;;  %vm1922_vm14 = vweird.f32 %v4950_v48 }
 0x285   :  { %v1907_v61 = vmul.f32 %v3498_v13, %v4942_v57  ;;  %v1905_v11 = vsel %vm4963_vm8, %v4913_v56, %v1901_v35  ;;  %vm1913_vm9 = vweird.f32 %v3498_v13 }
 0x286   :  { %1630 = vadd.xlane.f32.xlu0 %v1578_v34  ;;  %v2171_v23 = vmul.f32 %v1905_v11, %v1787_v53  ;;  %vm1914_vm11 = vmor %vm1912_vm10, %vm1913_vm9 }
 0x287   :  { %v1479_v14 = vpop.xlane.xlu0 %1478  ;;  %v1908_v44 = vmul.f32 %v3498_v13, %v1907_v61 }
 0x288   :  { %v4961_v10 = vmul.f32 %v1479_v14, %v3887_v9  ;;  %v2235_v36 = vmul.f32 0.01, %v2171_v23  ;;  %vm2203_vm12 = vcmp.gt.f32.partialorder %v2171_v23, 0.0 }
 0x289   :  { %v1437_v54 = vpop.f32.mrf.mxu2  ;;  %v1607_v0 = vpop.xlane.xlu2 %1606  ;;  %v1909_v59 = vmul.f32 0.5, %v1908_v44 }
 0x28a   :  { %v1694_v19 = vmul.f32 %v4961_v10, %v4961_v10  ;;  %v1662_v33 = vmul.f32 %v1607_v0, %v3887_v9  ;;  %v4975_v25 = vpop.eup %3499  ;;  %v4980_v58 = vadd.f32 %v4921_v1, %v1437_v54  ;;  %v2267_v49 = vsel %vm2203_vm12, %v2171_v23, %v2235_v36 }
 0x28b   :  { %v1917_v26 = vmul.f32 %v4975_v25, %v4950_v48  ;;  %v1910_v32 = vsub.f32 1.5, %v1909_v59  ;;  %vm1923_vm13 = vweird.f32 %v4975_v25  ;;  %v2303_v44 = vmul.f32 %v4843_v17, %v2267_v49 }
 0x28c   :  { %2336 = vadd.xlane.f32.xlu2 %v2301_v40  ;;  %2338 = vadd.xlane.f32.xlu1 %v2302_v6  ;;  %v1726_v51 = vsub.f32 %v1662_v33, %v1694_v19  ;;  %v1580_v57 = vmul.f32 %v4980_v58, %v4980_v58  ;;  %vm1924_vm0 = vmor %vm1922_vm14, %vm1923_vm13 }
 0x28d   :  { %v1918_v56 = vmul.f32 %v4975_v25, %v1917_v26  ;;  %v1911_v12 = vmul.f32 %v3498_v13, %v1910_v32  ;;  %v1789_v26 = vsub.f32 %v4701_v15, %v4916_v24 }
 0x28e   :  { %1506 = vadd.xlane.f32.xlu0 %v4980_v58  ;;  %v1758_v63 = vmax.f32 %v1726_v51, 0.0 }
 0x28f   :  { %v1481_v30 = vpop.xlane.xlu1 %1480  ;;  %v1919_v16 = vmul.f32 0.5, %v1918_v56  ;;  %v1915_v62 = vsel %vm1914_vm11, %v3498_v13, %v1911_v12 }
 0x290   :  { %v4987_v29 = vadd.f32 1e-05, %v1758_v63  ;;  %v4990_v2 = vmul.f32 %v1481_v30, %v3887_v9  ;;  %v2172_v35 = vmul.f32 %v1915_v62, %v1788_v42 }
 0x291   :  { %v1439_v7 = vpop.f32.mrf.mxu2  ;;  %v1609_v55 = vpop.xlane.xlu0 %1608  ;;  %v1920_v34 = vsub.f32 1.5, %v1919_v16 }
 0x292   :  { %v4993_v20 = vadd.f32 %v4921_v1, %v1439_v7  ;;  %3501 = vrsqrt.f32 %v4987_v29  ;;  %v1695_v37 = vmul.f32 %v4990_v2, %v4990_v2  ;;  %v1663_v31 = vmul.f32 %v1609_v55, %v3887_v9 }
 0x293   :  { %v1921_v40 = vmul.f32 %v4975_v25, %v1920_v34  ;;  %v2236_v19 = vmul.f32 0.01, %v2172_v35  ;;  %vm2204_vm15 = vcmp.gt.f32.partialorder %v2172_v35, 0.0  ;;  %vm1932_vm3 = vweird.f32 %v4987_v29 }
 0x294   :  { %1632 = vadd.xlane.f32.xlu2 %v1579_v38  ;;  %1508 = vadd.xlane.f32.xlu1 %v4993_v20  ;;  %v1727_v41 = vsub.f32 %v1663_v31, %v1695_v37  ;;  %v1581_v3 = vmul.f32 %v4993_v20, %v4993_v20 }
 0x295   :  { %v1925_v59 = vsel %vm1924_vm0, %v4975_v25, %v1921_v40  ;;  %v2268_v32 = vsel %vm2204_vm15, %v2172_v35, %v2236_v19 }
 0x296   :  { %1634 = vadd.xlane.f32.xlu0 %v1580_v57  ;;  %v1759_v61 = vmax.f32 %v1727_v41, 0.0  ;;  %v2173_v12 = vmul.f32 %v1925_v59, %v1789_v26  ;;  %v2304_v25 = vmul.f32 %v4843_v17, %v2268_v32 }
 0x298   :  { %v5006_v14 = vpop.eup %3501  ;;  %v5014_v5 = vadd.f32 1e-05, %v1759_v61  ;;  %v2237_v42 = vmul.f32 0.01, %v2173_v12  ;;  %vm2205_vm1 = vcmp.gt.f32.partialorder %v2173_v12, 0.0 }
 0x299   :  { %v1442_v54 = vpop.f32.mrf.mxu2  ;;  %v1927_v22 = vmul.f32 %v5006_v14, %v4987_v29  ;;  %vm1933_vm2 = vweird.f32 %v5006_v14 }
 0x29a   :  { %v1483_v13 = vpop.xlane.xlu2 %1482  ;;  %3503 = vrsqrt.f32 %v5014_v5  ;;  %v5025_v11 = vadd.f32 %v4921_v1, %v1442_v54  ;;  %vm1934_vm4 = vmor %vm1932_vm3, %vm1933_vm2  ;;  %vm1942_vm7 = vweird.f32 %v5014_v5 }
 0x29b   :  { %v5017_v0 = vmul.f32 %v1483_v13, %v3887_v9  ;;  %v1928_v48 = vmul.f32 %v5006_v14, %v1927_v22  ;;  %v2269_v13 = vsel %vm2205_vm1, %v2173_v12, %v2237_v42 }
 0x29c   :  { %v1611_v6 = vpop.xlane.xlu1 %1610  ;;  %1636 = vadd.xlane.f32.xlu2 %v1581_v3  ;;  %2340 = vadd.xlane.f32.xlu1 %v2303_v44  ;;  %v1582_v62 = vmul.f32 %v5025_v11, %v5025_v11 }
 0x29d   :  { %v1696_v33 = vmul.f32 %v5017_v0, %v5017_v0  ;;  %v1664_v53 = vmul.f32 %v1611_v6, %v3887_v9  ;;  %v1929_v7 = vmul.f32 0.5, %v1928_v48  ;;  %v2305_v6 = vmul.f32 %v4843_v17, %v2269_v13 }
 0x29e   :  { %1510 = vadd.xlane.f32.xlu0 %v5025_v11 }
 0x29f   :  { %v1728_v51 = vsub.f32 %v1664_v53, %v1696_v33  ;;  %v1930_v34 = vsub.f32 1.5, %v1929_v7 }
 0x2a0   :  { %v5035_v30 = vpop.eup %3503 }
 0x2a1   :  { %v1760_v23 = vmax.f32 %v1728_v51, 0.0  ;;  %v1444_v63 = vpop.f32.mrf.mxu2  ;;  %v1937_v15 = vmul.f32 %v5035_v30, %v5014_v5  ;;  %v1931_v3 = vmul.f32 %v5006_v14, %v1930_v34  ;;  %v1790_v51 = vsub.f32 %v4715_v60, %v4961_v10 }
 0x2a2   :  { %v1485_v56 = vpop.xlane.xlu0 %1484  ;;  %v5041_v55 = vadd.f32 %v4921_v1, %v1444_v63  ;;  %vm1943_vm5 = vweird.f32 %v5035_v30 }
 0x2a3   :  { %v5038_v16 = vmul.f32 %v1485_v56, %v3887_v9  ;;  %v1824_v24 = vadd.f32 1e-05, %v1760_v23  ;;  %v1938_v31 = vmul.f32 %v5035_v30, %v1937_v15  ;;  %v1935_v29 = vsel %vm1934_vm4, %v5006_v14, %v1931_v3  ;;  %vm5083_vm8 = vmor %vm1942_vm7, %vm1943_vm5 }
 0x2a4   :  { %v1613_v38 = vpop.xlane.xlu2 %1612  ;;  %2342 = vadd.xlane.f32.xlu1 %v2304_v25  ;;  %v1583_v37 = vmul.f32 %v5041_v55, %v5041_v55  ;;  %v2174_v12 = vmul.f32 %v1935_v29, %v1790_v51 }
 0x2a5   :  { %v1697_v36 = vmul.f32 %v5038_v16, %v5038_v16  ;;  %v1665_v57 = vmul.f32 %v1613_v38, %v3887_v9  ;;  %3505 = vrsqrt.f32 %v1824_v24  ;;  %v1939_v35 = vmul.f32 0.5, %v1938_v31 }
 0x2a6   :  { %1638 = vadd.xlane.f32.xlu0 %v1582_v62  ;;  %1640 = vadd.xlane.f32.xlu2 %v1583_v37  ;;  %v1792_v62 = vsub.f32 %v4734_v47, %v5017_v0  ;;  %vm1952_vm9 = vweird.f32 %v1824_v24  ;;  %vm2206_vm11 = vcmp.gt.f32.partialorder %v2174_v12, 0.0 }
 0x2a7   :  { %v1729_v41 = vsub.f32 %v1665_v57, %v1697_v36  ;;  %v1940_v19 = vsub.f32 1.5, %v1939_v35  ;;  %v1791_v35 = vsub.f32 %v4728_v21, %v4990_v2 }
 0x2a9   :  { %v1761_v49 = vmax.f32 %v1729_v41, 0.0  ;;  %v1447_v61 = vpop.f32.mrf.mxu2  ;;  %v1941_v7 = vmul.f32 %v5035_v30, %v1940_v19  ;;  %v2238_v41 = vmul.f32 0.01, %v2174_v12 }
 0x2aa   :  { %v5066_v59 = vadd.f32 %v4921_v1, %v1447_v61 }
 0x2ab   :  { %v5055_v54 = vadd.f32 1e-05, %v1761_v49  ;;  %v3506_v44 = vpop.eup %3505 }
 0x2ac   :  { %v1487_v22 = vpop.xlane.xlu1 %1486  ;;  %v1947_v40 = vmul.f32 %v3506_v44, %v1824_v24  ;;  %1512 = vadd.xlane.f32.xlu1 %v5041_v55  ;;  %vm1953_vm6 = vweird.f32 %v3506_v44  ;;  %v1584_v60 = vmul.f32 %v5066_v59, %v5066_v59  ;;  %v1945_v24 = vsel %vm5083_vm8, %v5035_v30, %v1941_v7 }
 0x2ad   :  { %3507 = vrsqrt.f32 %v5055_v54  ;;  %v5063_v33 = vmul.f32 %v1487_v22, %v3887_v9  ;;  %vm1954_vm10 = vmor %vm1952_vm9, %vm1953_vm6  ;;  %v2175_v19 = vmul.f32 %v1945_v24, %v1791_v35  ;;  %vm1962_vm13 = vweird.f32 %v5055_v54 }
 0x2ae   :  { %v1615_v53 = vpop.xlane.xlu0 %1614  ;;  %v1948_v48 = vmul.f32 %v3506_v44, %v1947_v40  ;;  %2344 = vadd.xlane.f32.xlu0 %v2305_v6  ;;  %v2270_v6 = vsel %vm2206_vm11, %v2174_v12, %v2238_v41 }
 0x2af   :  { %v1666_v26 = vmul.f32 %v1615_v53, %v3887_v9  ;;  %v1698_v32 = vmul.f32 %v5063_v33, %v5063_v33  ;;  %v2306_v51 = vmul.f32 %v4843_v17, %v2270_v6  ;;  %vm2207_vm0 = vcmp.gt.f32.partialorder %v2175_v19, 0.0 }
 0x2b0   :  { %v1949_v23 = vmul.f32 0.5, %v1948_v48 }
 0x2b1   :  { %v1730_v56 = vsub.f32 %v1666_v26, %v1698_v32  ;;  %v1449_v63 = vpop.f32.mrf.mxu2 }
 0x2b2   :  { %v1950_v15 = vsub.f32 1.5, %v1949_v23  ;;  %v5077_v38 = vadd.f32 %v4921_v1, %v1449_v63  ;;  %v1793_v23 = vsub.f32 %v4740_v46, %v5038_v16 }
 0x2b3   :  { %v3508_v25 = vpop.eup %3507  ;;  %v1762_v14 = vmax.f32 %v1730_v56, 0.0  ;;  %v2239_v56 = vmul.f32 0.01, %v2175_v19 }
 0x2b4   :  { %v1957_v10 = vmul.f32 %v3508_v25, %v5055_v54  ;;  %v1489_v36 = vpop.xlane.xlu2 %1488  ;;  %1516 = vadd.xlane.f32.xlu2 %v5077_v38  ;;  %1642 = vadd.xlane.f32.xlu1 %v1584_v60  ;;  %v1951_v31 = vmul.f32 %v3506_v44, %v1950_v15  ;;  %vm1963_vm12 = vweird.f32 %v3508_v25  ;;  %v1585_v30 = vmul.f32 %v5077_v38, %v5077_v38 }
 0x2b5   :  { %v5090_v37 = vmul.f32 %v1489_v36, %v3887_v9  ;;  %v5093_v42 = vadd.f32 1e-05, %v1762_v14  ;;  %vm5111_vm14 = vmor %vm1962_vm13, %vm1963_vm12  ;;  %v2271_v36 = vsel %vm2207_vm0, %v2175_v19, %v2239_v56 }
 0x2b6   :  { %v1958_v5 = vmul.f32 %v3508_v25, %v1957_v10  ;;  %v1617_v34 = vpop.xlane.xlu1 %1616  ;;  %1514 = vadd.xlane.f32.xlu0 %v5066_v59  ;;  %v1955_v0 = vsel %vm1954_vm10, %v3506_v44, %v1951_v31 }
 0x2b7   :  { %v1699_v49 = vmul.f32 %v5090_v37, %v5090_v37  ;;  %v1667_v47 = vmul.f32 %v1617_v34, %v3887_v9  ;;  %3509 = vrsqrt.f32 %v5093_v42  ;;  %v2176_v13 = vmul.f32 %v1955_v0, %v1792_v62 }
 0x2b8   :  { %v1959_v61 = vmul.f32 0.5, %v1958_v5  ;;  %vm1972_vm3 = vweird.f32 %v5093_v42 }
 0x2b9   :  { %v1731_v3 = vsub.f32 %v1667_v47, %v1699_v49  ;;  %v1452_v40 = vpop.f32.mrf.mxu2  ;;  %v2240_v21 = vmul.f32 0.01, %v2176_v13  ;;  %vm2208_vm15 = vcmp.gt.f32.partialorder %v2176_v13, 0.0  ;;  %v2307_v47 = vmul.f32 %v4843_v17, %v2271_v36 }
 0x2ba   :  { %v1960_v22 = vsub.f32 1.5, %v1959_v61  ;;  %v5106_v44 = vadd.f32 %v4921_v1, %v1452_v40 }
 0x2bb   :  { %v1763_v53 = vmax.f32 %v1731_v3, 0.0  ;;  %v2272_v15 = vsel %vm2208_vm15, %v2176_v13, %v2240_v21 }
 0x2bc   :  { %v1961_v2 = vmul.f32 %v3508_v25, %v1960_v22  ;;  %1644 = vadd.xlane.f32.xlu2 %v1585_v30  ;;  %v1586_v29 = vmul.f32 %v5106_v44, %v5106_v44  ;;  %v2308_v62 = vmul.f32 %v4843_v17, %v2272_v15 }
 0x2bd   :  { %v1827_v26 = vadd.f32 1e-05, %v1763_v53  ;;  %v5118_v32 = vpop.eup %3509 }
 0x2be   :  { %v1965_v54 = vsel %vm5111_vm14, %v3508_v25, %v1961_v2  ;;  %v1967_v63 = vmul.f32 %v5118_v32, %v5093_v42  ;;  %1646 = vadd.xlane.f32.xlu1 %v1586_v29  ;;  %2346 = vadd.xlane.f32.xlu0 %v2306_v51  ;;  %vm1973_vm2 = vweird.f32 %v5118_v32  ;;  %v1794_v29 = vsub.f32 %v4752_v27, %v5063_v33 }
 0x2bf   :  { %3511 = vrsqrt.f32 %v1827_v26  ;;  %v1491_v12 = vpop.xlane.xlu0 %1490  ;;  %v2177_v60 = vmul.f32 %v1965_v54, %v1793_v23  ;;  %vm5145_vm4 = vmor %vm1972_vm3, %vm1973_vm2  ;;  %vm1982_vm6 = vweird.f32 %v1827_v26  ;;  %v1795_v23 = vsub.f32 %v4764_v8, %v5090_v37 }
 0x2c0   :  { %v5127_v7 = vmul.f32 %v1491_v12, %v3887_v9  ;;  %v1968_v10 = vmul.f32 %v5118_v32, %v1967_v63 }
 0x2c1   :  { %v1619_v46 = vpop.xlane.xlu2 %1618  ;;  %v1454_v14 = vpop.f32.mrf.mxu2  ;;  %vm2209_vm1 = vcmp.gt.f32.partialorder %v2177_v60, 0.0  ;;  %v2241_v31 = vmul.f32 0.01, %v2177_v60 }
 0x2c2   :  { %v1700_v16 = vmul.f32 %v5127_v7, %v5127_v7  ;;  %v1668_v25 = vmul.f32 %v1619_v46, %v3887_v9  ;;  %v1969_v57 = vmul.f32 0.5, %v1968_v10  ;;  %v5140_v19 = vadd.f32 %v4921_v1, %v1454_v14 }
 0x2c3   :  { %v2273_v49 = vsel %vm2209_vm1, %v2177_v60, %v2241_v31 }
 0x2c4   :  { %v1732_v5 = vsub.f32 %v1668_v25, %v1700_v16  ;;  %v1970_v41 = vsub.f32 1.5, %v1969_v57  ;;  %2350 = vadd.xlane.f32.xlu2 %v2308_v62  ;;  %v2309_v35 = vmul.f32 %v4843_v17, %v2273_v49  ;;  %v1587_v16 = vmul.f32 %v5140_v19, %v5140_v19 }
 0x2c5   :  { %v3512_v34 = vpop.eup %3511 }
 0x2c6   :  { %v1977_v0 = vmul.f32 %v3512_v34, %v1827_v26  ;;  %v1764_v24 = vmax.f32 %v1732_v5, 0.0  ;;  %2348 = vadd.xlane.f32.xlu0 %v2307_v47  ;;  %2352 = vadd.xlane.f32.xlu1 %v2309_v35  ;;  %v1971_v22 = vmul.f32 %v5118_v32, %v1970_v41  ;;  %vm1983_vm5 = vweird.f32 %v3512_v34 }
 0x2c7   :  { %v1493_v61 = vpop.xlane.xlu1 %1492  ;;  %vm1984_vm7 = vmor %vm1982_vm6, %vm1983_vm5 }
 0x2c8   :  { %v1978_v13 = vmul.f32 %v3512_v34, %v1977_v0  ;;  %v1828_v3 = vadd.f32 1e-05, %v1764_v24  ;;  %v5150_v2 = vmul.f32 %v1493_v61, %v3887_v9  ;;  %v1975_v48 = vsel %vm5145_vm4, %v5118_v32, %v1971_v22 }
 0x2c9   :  { %v1457_v6 = vpop.f32.mrf.mxu2  ;;  %v2178_v15 = vmul.f32 %v1975_v48, %v1794_v29  ;;  %v1796_v0 = vsub.f32 %v4776_v28, %v5127_v7  ;;  %v5189_v29 = vstv %s5815_s6 }
 0x2ca   :  { %v1979_v40 = vmul.f32 0.5, %v1978_v13  ;;  %3513 = vrsqrt.f32 %v1828_v3  ;;  %v5143_v53 = vadd.f32 %v4921_v1, %v1457_v6  ;;  %v1701_v63 = vmul.f32 %v5150_v2, %v5150_v2 }
 0x2cb   :  { %v2242_v36 = vmul.f32 0.01, %v2178_v15  ;;  %vm2210_vm8 = vcmp.gt.f32.partialorder %v2178_v15, 0.0  ;;  %vm1992_vm11 = vweird.f32 %v1828_v3 }
 0x2cc   :  { %v1980_v21 = vsub.f32 1.5, %v1979_v40  ;;  %1520 = vadd.xlane.f32.xlu2 %v5140_v19  ;;  %v1588_v42 = vmul.f32 %v5143_v53, %v5143_v53 }
 0x2cd   :  { %v2274_v49 = vsel %vm2210_vm8, %v2178_v15, %v2242_v36 }
 0x2ce   :  { %v1981_v51 = vmul.f32 %v3512_v34, %v1980_v21  ;;  %1518 = vadd.xlane.f32.xlu0 %v5106_v44  ;;  %1650 = vadd.xlane.f32.xlu1 %v1588_v42  ;;  %v2310_v13 = vmul.f32 %v4843_v17, %v2274_v49 }
 0x2cf   :  { %v1621_v54 = vpop.xlane.xlu1 %1620  ;;  %v1495_v12 = vpop.xlane.xlu2 %1494 }
 0x2d0   :  { %v3514_v56 = vpop.eup %3513  ;;  %v1669_v32 = vmul.f32 %v1621_v54, %v3887_v9  ;;  %v1985_v60 = vsel %vm1984_vm7, %v3512_v34, %v1981_v51  ;;  %v5167_v33 = vmul.f32 %v1495_v12, %v3887_v9 }
 0x2d1   :  { %v1987_v27 = vmul.f32 %v3514_v56, %v1828_v3  ;;  %v1623_v8 = vpop.xlane.xlu0 %1622  ;;  %v2179_v37 = vmul.f32 %v1985_v60, %v1795_v23  ;;  %vm1993_vm9 = vweird.f32 %v3514_v56  ;;  %v1459_v21 = vpop.f32.mrf.mxu2 }
 0x2d2   :  { %v1733_v26 = vsub.f32 %v1669_v32, %v1701_v63  ;;  %v1702_v46 = vmul.f32 %v5167_v33, %v5167_v33  ;;  %v1670_v14 = vmul.f32 %v1623_v8, %v3887_v9  ;;  %vm1994_vm12 = vmor %vm1992_vm11, %vm1993_vm9  ;;  %v5184_v48 = vadd.f32 %v4921_v1, %v1459_v21 }
 0x2d3   :  { %v1988_v10 = vmul.f32 %v3514_v56, %v1987_v27  ;;  %v2243_v5 = vmul.f32 0.01, %v2179_v37  ;;  %vm2211_vm10 = vcmp.gt.f32.partialorder %v2179_v37, 0.0 }
 0x2d4   :  { %v1765_v25 = vmax.f32 %v1733_v26, 0.0  ;;  %1648 = vadd.xlane.f32.xlu2 %v1587_v16  ;;  %v1734_v31 = vsub.f32 %v1670_v14, %v1702_v46  ;;  %v1589_v27 = vmul.f32 %v5184_v48, %v5184_v48 }
 0x2d5   :  { %v1989_v57 = vmul.f32 0.5, %v1988_v10  ;;  %v2275_v61 = vsel %vm2211_vm10, %v2179_v37, %v2243_v5 }
 0x2d6   :  { %v5174_v62 = vadd.f32 1e-05, %v1765_v25  ;;  %1522 = vadd.xlane.f32.xlu0 %v5143_v53  ;;  %v1766_v41 = vmax.f32 %v1734_v31, 0.0  ;;  %v2311_v6 = vmul.f32 %v4843_v17, %v2275_v61 }
 0x2d7   :  { %v1990_v34 = vsub.f32 1.5, %v1989_v57 }
 0x2d8   :  { %3515 = vrsqrt.f32 %v5174_v62  ;;  %v1830_v24 = vadd.f32 1e-05, %v1766_v41  ;;  %vm2002_vm0 = vweird.f32 %v5174_v62 }
 0x2d9   :  { %v1991_v47 = vmul.f32 %v3514_v56, %v1990_v34  ;;  %v1497_v35 = vpop.xlane.xlu0 %1496  ;;  %v1625_v12 = vpop.xlane.xlu1 %1624  ;;  %v1797_v34 = vsub.f32 %v4791_v43, %v5150_v2 }
 0x2da   :  { %3517 = vrsqrt.f32 %v1830_v24  ;;  %v5193_v32 = vmul.f32 %v1497_v35, %v3887_v9  ;;  %v1671_v41 = vmul.f32 %v1625_v12, %v3887_v9  ;;  %vm2012_vm3 = vweird.f32 %v1830_v24 }
 0x2db   :  { %v1995_v22 = vsel %vm1994_vm12, %v3514_v56, %v1991_v47 }
 0x2dc   :  { %v2180_v40 = vmul.f32 %v1995_v22, %v1796_v0  ;;  %2354 = vadd.xlane.f32.xlu2 %v2310_v13  ;;  %v1703_v37 = vmul.f32 %v5193_v32, %v5193_v32 }
 0x2de   :  { %v3516_v30 = vpop.eup %3515  ;;  %vm2212_vm13 = vcmp.gt.f32.partialorder %v2180_v40, 0.0  ;;  %v2244_v3 = vmul.f32 0.01, %v2180_v40  ;;  %2356 = vadd.xlane.f32.xlu0 %v2311_v6  ;;  %v1735_v61 = vsub.f32 %v1671_v41, %v1703_v37 }
 0x2df   :  { %v1997_v42 = vmul.f32 %v3516_v30, %v5174_v62  ;;  %vm2003_vm15 = vweird.f32 %v3516_v30 }
 0x2e0   :  { %v2276_v28 = vsel %vm2212_vm13, %v2180_v40, %v2244_v3  ;;  %v3518_v23 = vpop.eup %3517  ;;  %vm2004_vm2 = vmor %vm2002_vm0, %vm2003_vm15  ;;  %v1798_v40 = vsub.f32 %v4807_v18, %v5167_v33 }
 0x2e1   :  { %v1998_v7 = vmul.f32 %v3516_v30, %v1997_v42  ;;  %v2312_v51 = vmul.f32 %v4843_v17, %v2276_v28  ;;  %v2331_v54 = vpop.xlane.xlu0 %2330  ;;  %v2007_v63 = vmul.f32 %v3518_v23, %v1830_v24  ;;  %vm2013_vm1 = vweird.f32 %v3518_v23  ;;  %v1499_v62 = vpop.xlane.xlu1 %1498 }
 0x2e2   :  { %v2396_v15 = vadd.f32 %v5189_v29, %v2331_v54  ;;  %vm2014_vm4 = vmor %vm2012_vm3, %vm2013_vm1 }
 0x2e3   :  { %v1999_v56 = vmul.f32 0.5, %v1998_v7  ;;  %2358 = vadd.xlane.f32.xlu1 %v2312_v51  ;;  %v2008_v60 = vmul.f32 %v3518_v23, %v2007_v63 }
 0x2e4   :  { %1524 = vadd.xlane.f32.xlu2 %v5184_v48  ;;  %vm2428_vm14 = vcmp.gt.f32.partialorder %v2396_v15, 0.0  ;;  %v2460_v26 = vmul.f32 0.01, %v2396_v15 }
 0x2e5   :  { %v2000_v1 = vsub.f32 1.5, %v1999_v56  ;;  %v2009_v8 = vmul.f32 0.5, %v2008_v60  ;;  %v5217_v56 = vmul.f32 %v1499_v62, %v3887_v9 }
 0x2e6   :  { %1652 = vadd.xlane.f32.xlu0 %v1589_v27  ;;  %v2492_v10 = vsel %vm2428_vm14, %v2396_v15, %v2460_v26 }
 0x2e7   :  { %v5201_v46 = vpop.xlane.xlu2 %1500  ;;  %v2001_v16 = vmul.f32 %v3516_v30, %v2000_v1  ;;  %v2010_v25 = vsub.f32 1.5, %v2009_v8  ;;  %v2556_v14 = vperm.slane %v2492_v10, 0  ;;  %v2557_v36 = vperm.slane %v2492_v10, 1 }
 0x2e8   :  { %v2558_v57 = vperm.slane %v2492_v10, 2  ;;  %v2559_v31 = vperm.slane %v2492_v10, 3  ;;  %v2560_v49 = vperm.slane %v2492_v10, 4  ;;  %v2561_v47 = vperm.slane %v2492_v10, 5 }
 0x2e9   :  { %v1627_v5 = vpop.xlane.xlu0 %1626  ;;  %2812 = vst [vmem:[#allocation1] ss:$9 sm:$0xff] %v2556_v14  ;;  %v2005_v0 = vsel %vm2004_vm2, %v3516_v30, %v2001_v16  ;;  %v2011_v35 = vmul.f32 %v3518_v23, %v2010_v25  ;;  %v2562_v13 = vperm.slane %v2492_v10, 6  ;;  %v2563_v43 = vperm.slane %v2492_v10, 7  ;;  %v1629_v12 = vpop.xlane.xlu1 %1628 }
 0x2ea   :  { %2814 = vst [vmem:[#allocation1 + $0x1] ss:$9 sm:$0xff] %v2557_v36  ;;  %v2181_v22 = vmul.f32 %v2005_v0, %v1797_v34  ;;  %v1767_v30 = vmax.f32 %v1735_v61, 0.0  ;;  %v1672_v60 = vmul.f32 %v1627_v5, %v3887_v9  ;;  %v1704_v10 = vmul.f32 %v5217_v56, %v5217_v56 }
 0x2eb   :  { %2816 = vst [vmem:[#allocation1 + $0x2] ss:$9 sm:$0xff] %v2558_v57  ;;  %v2015_v2 = vsel %vm2014_vm4, %v3518_v23, %v2011_v35  ;;  %v3579_v25 = vmov 0   ;;  %v5232_v0 = vmul.f32 %v5201_v46, %v3887_v9 }
 0x2ec   :  { %2818 = vst [vmem:[#allocation1 + $0x3] ss:$9 sm:$0xff] %v2559_v31  ;;  %vm2213_vm5 = vcmp.gt.f32.partialorder %v2181_v22, 0.0  ;;  %v2245_v6 = vmul.f32 0.01, %v2181_v22  ;;  %v2182_v21 = vmul.f32 %v2015_v2, %v1798_v40  ;;  %3413 = vset.pattern.permute.xlu1 %v3579_v25  ;;  %3415 = vset.pattern.permute.xlu0 %v3579_v25  ;;  %v1736_v36 = vsub.f32 %v1672_v60, %v1704_v10 }
 0x2ed   :  { %2820 = vst [vmem:[#allocation1 + $0x4] ss:$9 sm:$0xff] %v2560_v49  ;;  %v5213_v23 = vadd.f32 1e-05, %v1767_v30  ;;  %3414 = vset.pattern.permute.xlu2 %v3579_v25  ;;  %v1705_v62 = vmul.f32 %v5232_v0, %v5232_v0 }
 0x2ee   :  { %2822 = vst [vmem:[#allocation1 + $0x5] ss:$9 sm:$0xff] %v2561_v47  ;;  %v2277_v42 = vsel %vm2213_vm5, %v2181_v22, %v2245_v6  ;;  %vm2214_vm6 = vcmp.gt.f32.partialorder %v2182_v21, 0.0  ;;  %v2246_v7 = vmul.f32 0.01, %v2182_v21  ;;  %v1768_v47 = vmax.f32 %v1736_v36, 0.0 }
 0x2ef   :  { %v2333_v24 = vpop.xlane.xlu2 %2332  ;;  %2824 = vst [vmem:[#allocation1 + $0x6] ss:$9 sm:$0xff] %v2562_v13  ;;  %v2313_v28 = vmul.f32 %v4843_v17, %v2277_v42  ;;  %3519 = vrsqrt.f32 %v5213_v23  ;;  %v1673_v22 = vmul.f32 %v1629_v12, %v3887_v9  ;;  %vm2022_vm11 = vweird.f32 %v5213_v23 }
 0x2f0   :  { %v2397_v3 = vadd.f32 %v5189_v29, %v2333_v24  ;;  %2826 = vst [vmem:[#allocation1 + $0x7] ss:$9 sm:$0xff] %v2563_v43  ;;  %v2278_v51 = vsel %vm2214_vm6, %v2182_v21, %v2246_v7  ;;  %v5236_v13 = vadd.f32 1e-05, %v1768_v47 }
 0x2f1   :  { %v5211_v18 = vpop.xlane.xlu0 %1502  ;;  %2360 = vadd.xlane.f32.xlu2 %v2313_v28  ;;  %v2314_v54 = vmul.f32 %v4843_v17, %v2278_v51 }
 0x2f2   :  { %vm2429_vm7 = vcmp.gt.f32.partialorder %v2397_v3, 0.0  ;;  %v2461_v33 = vmul.f32 0.01, %v2397_v3  ;;  %3521 = vrsqrt.f32 %v5236_v13  ;;  %vm2032_vm0 = vweird.f32 %v5236_v13 }
 0x2f3   :  { %2362 = vadd.xlane.f32.xlu0 %v2314_v54 }
 0x2f4   :  { %v2493_v63 = vsel %vm2429_vm7, %v2397_v3, %v2461_v33  ;;  %v1737_v3 = vsub.f32 %v1673_v22, %v1705_v62 }
 0x2f5   :  { %v2564_v15 = vperm.slane %v2493_v63, 0  ;;  %v2565_v1 = vperm.slane %v2493_v63, 1  ;;  %v2566_v27 = vperm.slane %v2493_v63, 2  ;;  %v2567_v37 = vperm.slane %v2493_v63, 3  ;;  %v5226_v41 = vpop.eup %3519 }
 0x2f6   :  { %v2568_v17 = vperm.slane %v2493_v63, 4  ;;  %v2569_v14 = vperm.slane %v2493_v63, 5  ;;  %v2570_v57 = vperm.slane %v2493_v63, 6  ;;  %v2571_v31 = vperm.slane %v2493_v63, 7 }
 0x2f7   :  { %v2335_v26 = vpop.xlane.xlu2 %2334  ;;  %v2827_v8 = vld [vmem:[#allocation1] sm:$0xff]  ;;  %v5228_v49 = vpop.xlane.xlu1 %1504  ;;  %v2017_v35 = vmul.f32 %v5226_v41, %v5213_v23  ;;  %v1769_v12 = vmax.f32 %v1737_v3, 0.0  ;;  %vm2023_vm10 = vweird.f32 %v5226_v41 }
 0x2f8   :  { %2828 = vst [vmem:[#allocation1] ss:$9 sm:$0xff] %v2564_v15  ;;  %v2398_v16 = vadd.f32 %v5189_v29, %v2335_v26  ;;  %vm5259_vm12 = vmor %vm2022_vm11, %vm2023_vm10 }
 0x2f9   :  { %2829 = vst [vmem:[#allocation1 + $0x1] ss:$9 sm:$0xff] %v2565_v1  ;;  %v5224_v5 = vpop.xlane.xlu0 %1630  ;;  %v2018_v43 = vmul.f32 %v5226_v41, %v2017_v35  ;;  %v5244_v1 = vpop.eup %3521  ;;  %v5248_v26 = vadd.f32 1e-05, %v1769_v12  ;;  %v1799_v35 = vsub.f32 %v4823_v52, %v5193_v32 }
 0x2fa   :  { %2830 = vst [vmem:[#allocation1 + $0x2] ss:$9 sm:$0xff] %v2566_v27  ;;  %v2462_v34 = vmul.f32 0.01, %v2398_v16  ;;  %vm2430_vm8 = vcmp.gt.f32.partialorder %v2398_v16, 0.0  ;;  %v2027_v27 = vmul.f32 %v5244_v1, %v5236_v13  ;;  %vm2033_vm15 = vweird.f32 %v5244_v1 }
 0x2fb   :  { %2831 = vst [vmem:[#allocation1 + $0x3] ss:$9 sm:$0xff] %v2567_v37  ;;  %v2019_v33 = vmul.f32 0.5, %v2018_v43  ;;  %3523 = vrsqrt.f32 %v5248_v26  ;;  %vm5288_vm1 = vmor %vm2032_vm0, %vm2033_vm15  ;;  %vm2042_vm5 = vweird.f32 %v5248_v26 }
 0x2fc   :  { %3108 = vperm.xlu1 %3413, %v2827_v8   ;;  %2832 = vst [vmem:[#allocation1 + $0x4] ss:$9 sm:$0xff] %v2568_v17  ;;  %v2494_v61 = vsel %vm2430_vm8, %v2398_v16, %v2462_v34 }
 0x2fd   :  { %2833 = vst [vmem:[#allocation1 + $0x5] ss:$9 sm:$0xff] %v2569_v14  ;;  %v2572_v40 = vperm.slane %v2494_v61, 0  ;;  %v2573_v2 = vperm.slane %v2494_v61, 1  ;;  %v2574_v24 = vperm.slane %v2494_v61, 2  ;;  %v2575_v30 = vperm.slane %v2494_v61, 3 }
 0x2fe   :  { %2834 = vst [vmem:[#allocation1 + $0x6] ss:$9 sm:$0xff] %v2570_v57  ;;  %v2576_v42 = vperm.slane %v2494_v61, 4  ;;  %v2577_v51 = vperm.slane %v2494_v61, 5  ;;  %v2578_v54 = vperm.slane %v2494_v61, 6  ;;  %v2579_v63 = vperm.slane %v2494_v61, 7 }
 0x2ff   :  { %2835 = vst [vmem:[#allocation1 + $0x7] ss:$9 sm:$0xff] %v2571_v31  ;;  %v2337_v6 = vpop.xlane.xlu2 %2336  ;;  %v2339_v7 = vpop.xlane.xlu1 %2338  ;;  %v2020_v60 = vsub.f32 1.5, %v2019_v33  ;;  %v2028_v57 = vmul.f32 %v5244_v1, %v2027_v27 }
 0x300   :  { %v2399_v28 = vadd.f32 %v5189_v29, %v2337_v6 }
 0x301   :  { %v1507_v46 = vpop.xlane.xlu0 %1506  ;;  %v2021_v10 = vmul.f32 %v5226_v41, %v2020_v60  ;;  %v2029_v43 = vmul.f32 0.5, %v2028_v57 }
 0x302   :  { %v2463_v15 = vmul.f32 0.01, %v2399_v28  ;;  %vm2431_vm9 = vcmp.gt.f32.partialorder %v2399_v28, 0.0  ;;  %v5253_v17 = vmul.f32 %v1507_v46, %v3887_v9  ;;  %v2400_v46 = vadd.f32 %v5189_v29, %v2339_v7 }
 0x303   :  { %v2025_v23 = vsel %vm5259_vm12, %v5226_v41, %v2021_v10 }
 0x304   :  { %v2495_v8 = vsel %vm2431_vm9, %v2399_v28, %v2463_v15  ;;  %v1708_v47 = vmul.f32 %v5253_v17, %v5253_v17  ;;  %v2183_v6 = vmul.f32 %v2025_v23, %v1799_v35  ;;  %v2464_v33 = vmul.f32 0.01, %v2400_v46 }
 0x305   :  { %v2580_v25 = vperm.slane %v2495_v8, 0  ;;  %v2581_v31 = vperm.slane %v2495_v8, 1  ;;  %v2582_v34 = vperm.slane %v2495_v8, 2  ;;  %v2583_v62 = vperm.slane %v2495_v8, 3 }
 0x306   :  { %v2836_v21 = vld [vmem:[#allocation1] sm:$0xff]  ;;  %v2584_v22 = vperm.slane %v2495_v8, 4  ;;  %v2587_v41 = vperm.slane %v2495_v8, 7  ;;  %vm2215_vm13 = vcmp.gt.f32.partialorder %v2183_v6, 0.0  ;;  %vm2432_vm14 = vcmp.gt.f32.partialorder %v2400_v46, 0.0 }
 0x307   :  { %2837 = vst [vmem:[#allocation1] ss:$9 sm:$0xff] %v2572_v40  ;;  %v5255_v16 = vpop.xlane.xlu1 %1508  ;;  %v2496_v15 = vsel %vm2432_vm14, %v2400_v46, %v2464_v33 }
 0x308   :  { %2838 = vst [vmem:[#allocation1 + $0x1] ss:$9 sm:$0xff] %v2573_v2  ;;  %v2585_v2 = vperm.slane %v2495_v8, 5  ;;  %v2588_v10 = vperm.slane %v2496_v15, 0  ;;  %v2589_v57 = vperm.slane %v2496_v15, 1  ;;  %v2595_v46 = vperm.slane %v2496_v15, 7 }
 0x309   :  { %2839 = vst [vmem:[#allocation1 + $0x2] ss:$9 sm:$0xff] %v2574_v24  ;;  %3111 = vperm.xlu2 %3414, %v2836_v21   ;;  %v1635_v37 = vpop.xlane.xlu0 %1634  ;;  %v2586_v24 = vperm.slane %v2495_v8, 6  ;;  %v5273_v21 = vpop.eup %3523  ;;  %v5296_v8 = vld [vmem:[%s5814_s5] ss:$0 sm:$0xff] }
 0x30a   :  { %2840 = vst [vmem:[#allocation1 + $0x3] ss:$9 sm:$0xff] %v2575_v30  ;;  %v1676_v14 = vmul.f32 %v1635_v37, %v3887_v9  ;;  %v2030_v30 = vsub.f32 1.5, %v2029_v43  ;;  %v2037_v28 = vmul.f32 %v5273_v21, %v5248_v26  ;;  %vm2043_vm4 = vweird.f32 %v5273_v21 }
 0x30b   :  { %2841 = vst [vmem:[#allocation1 + $0x4] ss:$9 sm:$0xff] %v2576_v42  ;;  %v2247_v42 = vmul.f32 0.01, %v2183_v6  ;;  %vm2044_vm6 = vmor %vm2042_vm5, %vm2043_vm4 }
 0x30c   :  { %2842 = vst [vmem:[#allocation1 + $0x5] ss:$9 sm:$0xff] %v2577_v51  ;;  %v1740_v40 = vsub.f32 %v1676_v14, %v1708_v47  ;;  %v5277_v51 = vpop.xlane.xlu2 %1632  ;;  %v2038_v12 = vmul.f32 %v5273_v21, %v2037_v28 }
 0x30d   :  { %2843 = vst [vmem:[#allocation1 + $0x6] ss:$9 sm:$0xff] %v2578_v54  ;;  %v2031_v54 = vmul.f32 %v5244_v1, %v2030_v30 }
 0x30e   :  { %2844 = vst [vmem:[#allocation1 + $0x7] ss:$9 sm:$0xff] %v2579_v63  ;;  %v1772_v52 = vmax.f32 %v1740_v40, 0.0  ;;  %v2279_v63 = vsel %vm2215_vm13, %v2183_v6, %v2247_v42  ;;  %v2039_v14 = vmul.f32 0.5, %v2038_v12  ;;  %v2594_v6 = vperm.slane %v2496_v15, 6 }
 0x30f   :  { %v2341_v3 = vpop.xlane.xlu1 %2340  ;;  %v2315_v37 = vmul.f32 %v5296_v8, %v2279_v63  ;;  %v2035_v13 = vsel %vm5288_vm1, %v5244_v1, %v2031_v54 }
 0x310   :  { %v5279_v7 = vadd.f32 1e-05, %v1772_v52  ;;  %v2401_v47 = vadd.f32 %v5189_v29, %v2341_v3  ;;  %v2040_v43 = vsub.f32 1.5, %v2039_v14  ;;  %v5322_v52 = vmul.f32 %v5211_v18, %v3887_v9 }
 0x311   :  { %v1511_v32 = vpop.xlane.xlu0 %1510  ;;  %v1674_v3 = vmul.f32 %v5224_v5, %v3887_v9  ;;  %v1801_v5 = vsub.f32 %v4882_v45, %v5232_v0 }
 0x312   :  { %v5286_v60 = vmul.f32 %v1511_v32, %v3887_v9  ;;  %3525 = vrsqrt.f32 %v5279_v7  ;;  %vm2433_vm2 = vcmp.gt.f32.partialorder %v2401_v47, 0.0  ;;  %v2041_v30 = vmul.f32 %v5273_v21, %v2040_v43 }
 0x313   :  { %v1706_v33 = vmul.f32 %v5322_v52, %v5322_v52  ;;  %vm2072_vm10 = vweird.f32 %v5279_v7 }
 0x314   :  { %v5309_v23 = vmul.f32 %v5286_v60, %v5286_v60  ;;  %v2045_v27 = vsel %vm2044_vm6, %v5273_v21, %v2041_v30 }
 0x315   :  { %v2845_v61 = vld [vmem:[#allocation1] sm:$0xff]  ;;  %v1738_v26 = vsub.f32 %v1674_v3, %v1706_v33 }
 0x316   :  { %2846 = vst [vmem:[#allocation1] ss:$9 sm:$0xff] %v2580_v25  ;;  %3114 = vperm.xlu0 %3415, %v2845_v61   ;;  %v1800_v25 = vsub.f32 %v4861_v4, %v5217_v56  ;;  %v2591_v61 = vperm.slane %v2496_v15, 3  ;;  %v5314_v4 = vpop.xlane.xlu2 %1636 }
 0x317   :  { %2847 = vst [vmem:[#allocation1 + $0x1] ss:$9 sm:$0xff] %v2581_v31  ;;  %v2343_v35 = vpop.xlane.xlu1 %2342 }
 0x318   :  { %2848 = vst [vmem:[#allocation1 + $0x2] ss:$9 sm:$0xff] %v2582_v34  ;;  %v2590_v34 = vperm.slane %v2496_v15, 2  ;;  %v2184_v56 = vmul.f32 %v2035_v13, %v1800_v25  ;;  %v5318_v40 = vpop.eup %3525 }
 0x319   :  { %2849 = vst [vmem:[#allocation1 + $0x3] ss:$9 sm:$0xff] %v2583_v62  ;;  %v1639_v31 = vpop.xlane.xlu0 %1638  ;;  %v2592_v62 = vperm.slane %v2496_v15, 4  ;;  %v2067_v32 = vmul.f32 %v5318_v40, %v5279_v7  ;;  %vm2073_vm9 = vweird.f32 %v5318_v40 }
 0x31a   :  { %2850 = vst [vmem:[#allocation1 + $0x4] ss:$9 sm:$0xff] %v2584_v22  ;;  %v5312_v1 = vmul.f32 %v1639_v31, %v3887_v9  ;;  %vm2216_vm3 = vcmp.gt.f32.partialorder %v2184_v56, 0.0  ;;  %v2185_v31 = vmul.f32 %v2045_v27, %v1801_v5  ;;  %v1804_v5 = vsub.f32 %v4980_v58, %v5253_v17  ;;  %vm2074_vm11 = vmor %vm2072_vm10, %vm2073_vm9 }
 0x31b   :  { %2851 = vst [vmem:[#allocation1 + $0x5] ss:$9 sm:$0xff] %v2585_v2  ;;  %v2593_v2 = vperm.slane %v2496_v15, 5  ;;  %v2068_v54 = vmul.f32 %v5318_v40, %v2067_v32 }
 0x31c   :  { %2852 = vst [vmem:[#allocation1 + $0x6] ss:$9 sm:$0xff] %v2586_v24  ;;  %v1742_v22 = vsub.f32 %v5312_v1, %v5309_v23  ;;  %v2465_v24 = vmul.f32 0.01, %v2401_v47  ;;  %v2249_v43 = vmul.f32 0.01, %v2185_v31 }
 0x31d   :  { %2853 = vst [vmem:[#allocation1 + $0x7] ss:$9 sm:$0xff] %v2587_v41  ;;  %v2248_v41 = vmul.f32 0.01, %v2184_v56  ;;  %v2069_v14 = vmul.f32 0.5, %v2068_v54  ;;  %vm2217_vm7 = vcmp.gt.f32.partialorder %v2185_v31, 0.0 }
 0x31e   :  { %v2497_v42 = vsel %vm2433_vm2, %v2401_v47, %v2465_v24  ;;  %v5331_v28 = vpop.xlane.xlu2 %1640  ;;  %v2402_v47 = vadd.f32 %v5189_v29, %v2343_v35  ;;  %v2281_v30 = vsel %vm2217_vm7, %v2185_v31, %v2249_v43 }
 0x31f   :  { %v2280_v18 = vsel %vm2216_vm3, %v2184_v56, %v2248_v41  ;;  %v5336_v63 = vpop.xlane.xlu1 %1512  ;;  %v2596_v15 = vperm.slane %v2497_v42, 0  ;;  %v2598_v13 = vperm.slane %v2497_v42, 2  ;;  %v2601_v56 = vperm.slane %v2497_v42, 5 }
 0x320   :  { %v2602_v21 = vperm.slane %v2497_v42, 6  ;;  %v2070_v45 = vsub.f32 1.5, %v2069_v14  ;;  %v2603_v0 = vperm.slane %v2497_v42, 7  ;;  %vm2434_vm8 = vcmp.gt.f32.partialorder %v2402_v47, 0.0 }
 0x321   :  { %v5338_v12 = vpop.xlane.xlu0 %2344  ;;  %v5352_v41 = vmul.f32 %v5228_v49, %v3887_v9  ;;  %v1675_v49 = vmul.f32 %v5277_v51, %v3887_v9 }
 0x322   :  { %v2071_v32 = vmul.f32 %v5318_v40, %v2070_v45 }
 0x323   :  { %v1707_v27 = vmul.f32 %v5352_v41, %v5352_v41 }
 0x324   :  { %v5304_v36 = vld [vmem:[#allocation1] sm:$0xff] }
 0x325   :  { %2855 = vst [vmem:[#allocation1] ss:$9 sm:$0xff] %v2588_v10  ;;  %v2316_v10 = vmul.f32 %v5296_v8, %v2280_v18  ;;  %v1739_v58 = vsub.f32 %v1675_v49, %v1707_v27 }
 0x326   :  { %2364 = vadd.xlane.f32.xlu1 %v2315_v37  ;;  %2856 = vst [vmem:[#allocation1 + $0x1] ss:$9 sm:$0xff] %v2589_v57  ;;  %v2597_v37 = vperm.slane %v2497_v42, 1  ;;  %v2599_v57 = vperm.slane %v2497_v42, 3 }
 0x327   :  { %2857 = vst [vmem:[#allocation1 + $0x2] ss:$9 sm:$0xff] %v2590_v34  ;;  %v2600_v34 = vperm.slane %v2497_v42, 4  ;;  %v1643_v24 = vpop.xlane.xlu1 %1642 }
 0x328   :  { %2858 = vst [vmem:[#allocation1 + $0x3] ss:$9 sm:$0xff] %v2591_v61  ;;  %v1770_v61 = vmax.f32 %v1738_v26, 0.0  ;;  %v1680_v18 = vmul.f32 %v1643_v24, %v3887_v9 }
 0x329   :  { %2859 = vst [vmem:[#allocation1 + $0x4] ss:$9 sm:$0xff] %v2592_v62  ;;  %v1517_v62 = vpop.xlane.xlu2 %1516 }
 0x32a   :  { %2860 = vst [vmem:[#allocation1 + $0x5] ss:$9 sm:$0xff] %v2593_v2  ;;  %v2466_v2 = vmul.f32 0.01, %v2402_v47  ;;  %v5357_v42 = vmul.f32 %v1517_v62, %v3887_v9 }
 0x32b   :  { %2861 = vst [vmem:[#allocation1 + $0x6] ss:$9 sm:$0xff] %v2594_v6  ;;  %v5345_v6 = vadd.f32 1e-05, %v1770_v61 }
 0x32c   :  { %2862 = vst [vmem:[#allocation1 + $0x7] ss:$9 sm:$0xff] %v2595_v46  ;;  %v1515_v46 = vpop.xlane.xlu0 %1514  ;;  %v2498_v3 = vsel %vm2434_vm8, %v2402_v47, %v2466_v2  ;;  %v5375_v51 = vmul.f32 %v5357_v42, %v5357_v42 }
 0x32d   :  { %v5348_v35 = vmul.f32 %v1515_v46, %v3887_v9  ;;  %3527 = vrsqrt.f32 %v5345_v6  ;;  %v2604_v26 = vperm.slane %v2498_v3, 0  ;;  %v2606_v14 = vperm.slane %v2498_v3, 2 }
 0x32e   :  { %v2607_v31 = vperm.slane %v2498_v3, 3  ;;  %v2611_v2 = vperm.slane %v2498_v3, 7  ;;  %v1771_v46 = vmax.f32 %v1739_v58, 0.0  ;;  %vm2052_vm3 = vweird.f32 %v5345_v6 }
 0x32f   :  { %v1712_v33 = vmul.f32 %v5348_v35, %v5348_v35 }
 0x331   :  { %v1744_v54 = vsub.f32 %v1680_v18, %v1712_v33  ;;  %v5391_v18 = vadd.f32 1e-05, %v1771_v46  ;;  %v5416_v23 = vpop.xlane.xlu1 %1646 }
 0x332   :  { %2366 = vadd.xlane.f32.xlu2 %v2316_v10  ;;  %v1645_v10 = vpop.xlane.xlu2 %1644 }
 0x333   :  { %v2863_v25 = vld [vmem:[#allocation1] sm:$0xff]  ;;  %v1776_v7 = vmax.f32 %v1744_v54, 0.0  ;;  %v5383_v61 = vpop.eup %3527  ;;  %vm2062_vm8 = vweird.f32 %v5391_v18 }
 0x334   :  { %2864 = vst [vmem:[#allocation1] ss:$9 sm:$0xff] %v2596_v15  ;;  %v2317_v15 = vmul.f32 %v5296_v8, %v2281_v30  ;;  %v2047_v43 = vmul.f32 %v5383_v61, %v5345_v6  ;;  %vm2053_vm1 = vweird.f32 %v5383_v61 }
 0x335   :  { %2865 = vst [vmem:[#allocation1 + $0x1] ss:$9 sm:$0xff] %v2597_v37  ;;  %v2605_v37 = vperm.slane %v2498_v3, 1  ;;  %vm2054_vm4 = vmor %vm2052_vm3, %vm2053_vm1 }
 0x336   :  { %2866 = vst [vmem:[#allocation1 + $0x2] ss:$9 sm:$0xff] %v2598_v13  ;;  %v5378_v13 = vmul.f32 %v1645_v10, %v3887_v9  ;;  %v2048_v30 = vmul.f32 %v5383_v61, %v2047_v43 }
 0x337   :  { %2867 = vst [vmem:[#allocation1 + $0x3] ss:$9 sm:$0xff] %v2599_v57 }
 0x338   :  { %2868 = vst [vmem:[#allocation1 + $0x4] ss:$9 sm:$0xff] %v2600_v34  ;;  %v1840_v34 = vadd.f32 1e-05, %v1776_v7  ;;  %v1745_v47 = vsub.f32 %v5378_v13, %v5375_v51  ;;  %v2049_v54 = vmul.f32 0.5, %v2048_v30  ;;  %v1677_v51 = vmul.f32 %v5314_v4, %v3887_v9 }
 0x339   :  { %2869 = vst [vmem:[#allocation1 + $0x5] ss:$9 sm:$0xff] %v2601_v56  ;;  %v2608_v56 = vperm.slane %v2498_v3, 4  ;;  %v1679_v13 = vmul.f32 %v5331_v28, %v3887_v9 }
 0x33a   :  { %2870 = vst [vmem:[#allocation1 + $0x6] ss:$9 sm:$0xff] %v2602_v21  ;;  %v2403_v21 = vadd.f32 %v5189_v29, %v5338_v12  ;;  %3529 = vrsqrt.f32 %v1840_v34  ;;  %vm2112_vm15 = vweird.f32 %v1840_v34  ;;  %v5418_v1 = vpop.xlane.xlu2 %2350 }
 0x33b   :  { %2871 = vst [vmem:[#allocation1 + $0x7] ss:$9 sm:$0xff] %v2603_v0  ;;  %v2609_v0 = vperm.slane %v2498_v3, 5  ;;  %3531 = vrsqrt.f32 %v5391_v18 }
 0x33c   :  { %vm2435_vm13 = vcmp.gt.f32.partialorder %v2403_v21, 0.0 }
 0x33f   :  { %3120 = vperm.xlu1 %3413, %v2863_v25   ;;  %v2075_v25 = vsel %vm2074_vm11, %v5318_v40, %v2071_v32  ;;  %v2610_v40 = vperm.slane %v2498_v3, 6  ;;  %v2467_v32 = vmul.f32 0.01, %v2403_v21 }
 0x340   :  { %2368 = vadd.xlane.f32.xlu0 %v2317_v15  ;;  %v2188_v57 = vmul.f32 %v2075_v25, %v1804_v5  ;;  %v3530_v12 = vpop.eup %3529 }
 0x341   :  { %v2499_v33 = vsel %vm2435_vm13, %v2403_v21, %v2467_v32  ;;  %v2107_v49 = vmul.f32 %v3530_v12, %v1840_v34  ;;  %vm2113_vm14 = vweird.f32 %v3530_v12  ;;  %v1808_v21 = vsub.f32 %v5066_v59, %v5348_v35 }
 0x342   :  { %v2872_v17 = vld [vmem:[#allocation1] sm:$0xff]  ;;  %vm2220_vm12 = vcmp.gt.f32.partialorder %v2188_v57, 0.0  ;;  %v2252_v45 = vmul.f32 0.01, %v2188_v57  ;;  %v2612_v15 = vperm.slane %v2499_v33, 0  ;;  %v2613_v27 = vperm.slane %v2499_v33, 1  ;;  %vm2114_vm0 = vmor %vm2112_vm15, %vm2113_vm14 }
 0x343   :  { %2873 = vst [vmem:[#allocation1] ss:$9 sm:$0xff] %v2604_v26  ;;  %v2108_v3 = vmul.f32 %v3530_v12, %v2107_v49  ;;  %v2347_v26 = vpop.xlane.xlu0 %2346  ;;  %v2615_v7 = vperm.slane %v2499_v33, 3  ;;  %v1774_v34 = vmax.f32 %v1742_v22, 0.0  ;;  %v1802_v35 = vsub.f32 %v4924_v39, %v5322_v52 }
 0x344   :  { %2874 = vst [vmem:[#allocation1 + $0x1] ss:$9 sm:$0xff] %v2605_v37  ;;  %v2284_v62 = vsel %vm2220_vm12, %v2188_v57, %v2252_v45  ;;  %v2614_v37 = vperm.slane %v2499_v33, 2  ;;  %v2616_v57 = vperm.slane %v2499_v33, 4  ;;  %v2404_v58 = vadd.f32 %v5189_v29, %v2347_v26  ;;  %v5400_v45 = vpop.eup %3531  ;;  %v5428_v26 = vpop.xlane.xlu1 %2352 }
 0x345   :  { %2875 = vst [vmem:[#allocation1 + $0x2] ss:$9 sm:$0xff] %v2606_v14  ;;  %v2320_v24 = vmul.f32 %v5296_v8, %v2284_v62  ;;  %v2109_v5 = vmul.f32 0.5, %v2108_v3  ;;  %v2050_v14 = vsub.f32 1.5, %v2049_v54  ;;  %v2057_v59 = vmul.f32 %v5400_v45, %v5391_v18 }
 0x346   :  { %2876 = vst [vmem:[#allocation1 + $0x3] ss:$9 sm:$0xff] %v2607_v31  ;;  %v2468_v43 = vmul.f32 0.01, %v2404_v58  ;;  %vm2436_vm2 = vcmp.gt.f32.partialorder %v2404_v58, 0.0  ;;  %vm2063_vm7 = vweird.f32 %v5400_v45 }
 0x347   :  { %2877 = vst [vmem:[#allocation1 + $0x4] ss:$9 sm:$0xff] %v2608_v56  ;;  %v2110_v25 = vsub.f32 1.5, %v2109_v5  ;;  %v2618_v56 = vperm.slane %v2499_v33, 6  ;;  %v2051_v62 = vmul.f32 %v5383_v61, %v2050_v14  ;;  %v5420_v22 = vadd.f32 1e-05, %v1774_v34  ;;  %vm5451_vm9 = vmor %vm2062_vm8, %vm2063_vm7 }
 0x348   :  { %2878 = vst [vmem:[#allocation1 + $0x5] ss:$9 sm:$0xff] %v2609_v0  ;;  %2374 = vadd.xlane.f32.xlu0 %v2320_v24  ;;  %v2619_v0 = vperm.slane %v2499_v33, 7  ;;  %v2058_v32 = vmul.f32 %v5400_v45, %v2057_v59  ;;  %v1777_v59 = vmax.f32 %v1745_v47, 0.0 }
 0x349   :  { %2879 = vst [vmem:[#allocation1 + $0x6] ss:$9 sm:$0xff] %v2610_v40  ;;  %v2111_v31 = vmul.f32 %v3530_v12, %v2110_v25  ;;  %v2055_v6 = vsel %vm2054_vm4, %v5383_v61, %v2051_v62  ;;  %3533 = vrsqrt.f32 %v5420_v22  ;;  %v5449_v62 = vmul.f32 %v5255_v16, %v3887_v9 }
 0x34a   :  { %2880 = vst [vmem:[#allocation1 + $0x7] ss:$9 sm:$0xff] %v2611_v2  ;;  %3117 = vperm.xlu2 %3414, %v5304_v36   ;;  %v2617_v36 = vperm.slane %v2499_v33, 5  ;;  %v2500_v2 = vsel %vm2436_vm2, %v2404_v58, %v2468_v43  ;;  %v2186_v46 = vmul.f32 %v2055_v6, %v1802_v35  ;;  %v2059_v33 = vmul.f32 0.5, %v2058_v32 }
 0x34b   :  { %v2115_v40 = vsel %vm2114_vm0, %v3530_v12, %v2111_v31  ;;  %v2349_v24 = vpop.xlane.xlu0 %2348  ;;  %v2620_v12 = vperm.slane %v2500_v2, 0  ;;  %v2621_v39 = vperm.slane %v2500_v2, 1  ;;  %v2622_v30 = vperm.slane %v2500_v2, 2 }
 0x34c   :  { %v2250_v52 = vmul.f32 0.01, %v2186_v46  ;;  %vm2218_vm5 = vcmp.gt.f32.partialorder %v2186_v46, 0.0  ;;  %v2623_v3 = vperm.slane %v2500_v2, 3  ;;  %v2624_v54 = vperm.slane %v2500_v2, 4 }
 0x34d   :  { %v2625_v61 = vperm.slane %v2500_v2, 5  ;;  %v2626_v5 = vperm.slane %v2500_v2, 6  ;;  %v2060_v25 = vsub.f32 1.5, %v2059_v33  ;;  %v2627_v14 = vperm.slane %v2500_v2, 7 }
 0x34e   :  { %vm2092_vm13 = vweird.f32 %v5420_v22 }
 0x351   :  { %v5395_v10 = vld [vmem:[#allocation1] sm:$0xff] }
 0x352   :  { %2882 = vst [vmem:[#allocation1] ss:$9 sm:$0xff] %v2612_v15  ;;  %3123 = vperm.xlu2 %3414, %v2872_v17   ;;  %v5407_v17 = vmul.f32 %v2115_v40, %v1808_v21  ;;  %v2405_v15 = vadd.f32 %v5189_v29, %v2349_v24  ;;  %v2061_v21 = vmul.f32 %v5400_v45, %v2060_v25 }
 0x353   :  { %2883 = vst [vmem:[#allocation1 + $0x1] ss:$9 sm:$0xff] %v2613_v27  ;;  %v2282_v27 = vsel %vm2218_vm5, %v2186_v46, %v2250_v52  ;;  %v5432_v58 = vpop.xlane.xlu0 %1518  ;;  %v1803_v24 = vsub.f32 %v4947_v50, %v5352_v41  ;;  %v1651_v46 = vpop.xlane.xlu1 %1650  ;;  %v5484_v41 = vadd.f32 1e-05, %v1777_v59 }
 0x354   :  { %2884 = vst [vmem:[#allocation1 + $0x2] ss:$9 sm:$0xff] %v2614_v37  ;;  %v1521_v37 = vpop.xlane.xlu2 %1520  ;;  %vm2437_vm6 = vcmp.gt.f32.partialorder %v2405_v15, 0.0  ;;  %v2065_v6 = vsel %vm5451_vm9, %v5400_v45, %v2061_v21 }
 0x355   :  { %2885 = vst [vmem:[#allocation1 + $0x3] ss:$9 sm:$0xff] %v2615_v7  ;;  %v5430_v7 = vpop.eup %3533  ;;  %v2187_v28 = vmul.f32 %v2065_v6, %v1803_v24  ;;  %3535 = vrsqrt.f32 %v5484_v41  ;;  %vm2122_vm4 = vweird.f32 %v5484_v41 }
 0x356   :  { %2886 = vst [vmem:[#allocation1 + $0x4] ss:$9 sm:$0xff] %v2616_v57  ;;  %v2469_v57 = vmul.f32 0.01, %v2405_v15  ;;  %v2087_v31 = vmul.f32 %v5430_v7, %v5420_v22  ;;  %vm2093_vm12 = vweird.f32 %v5430_v7 }
 0x357   :  { %2887 = vst [vmem:[#allocation1 + $0x5] ss:$9 sm:$0xff] %v2617_v36  ;;  %v2318_v36 = vmul.f32 %v5296_v8, %v2282_v27  ;;  %vm2219_vm10 = vcmp.gt.f32.partialorder %v2187_v28, 0.0  ;;  %vm2094_vm14 = vmor %vm2092_vm13, %vm2093_vm12 }
 0x358   :  { %2888 = vst [vmem:[#allocation1 + $0x6] ss:$9 sm:$0xff] %v2618_v56  ;;  %v5439_v56 = vmul.f32 %v5336_v63, %v3887_v9  ;;  %v2501_v40 = vsel %vm2437_vm6, %v2405_v15, %v2469_v57  ;;  %v2088_v34 = vmul.f32 %v5430_v7, %v2087_v31  ;;  %v2251_v57 = vmul.f32 0.01, %v2187_v28 }
 0x359   :  { %2889 = vst [vmem:[#allocation1 + $0x7] ss:$9 sm:$0xff] %v2619_v0  ;;  %v5444_v0 = vmul.f32 %v1521_v37, %v3887_v9  ;;  %v2628_v2 = vperm.slane %v2501_v40, 0  ;;  %v2629_v47 = vperm.slane %v2501_v40, 1  ;;  %v2633_v27 = vperm.slane %v2501_v40, 5 }
 0x35a   :  { %v1711_v43 = vmul.f32 %v5439_v56, %v5439_v56  ;;  %v2089_v33 = vmul.f32 0.5, %v2088_v34  ;;  %v2634_v37 = vperm.slane %v2501_v40, 6 }
 0x35b   :  { %v5463_v18 = vmul.f32 %v5444_v0, %v5444_v0  ;;  %v1523_v32 = vpop.xlane.xlu0 %1522 }
 0x35c   :  { %v1649_v35 = vpop.xlane.xlu2 %1648  ;;  %v5482_v45 = vmul.f32 %v1523_v32, %v3887_v9  ;;  %v1743_v50 = vsub.f32 %v1679_v13, %v1711_v43 }
 0x35d   :  { %v5466_v16 = vmul.f32 %v1649_v35, %v3887_v9  ;;  %v5498_v35 = vpop.eup %3535 }
 0x35e   :  { %v1716_v15 = vmul.f32 %v5482_v45, %v5482_v45  ;;  %v1775_v31 = vmax.f32 %v1743_v50, 0.0  ;;  %v2117_v13 = vmul.f32 %v5498_v35, %v5484_v41  ;;  %vm2123_vm3 = vweird.f32 %v5498_v35 }
 0x35f   :  { %v1747_v52 = vsub.f32 %v5466_v16, %v5463_v18  ;;  %vm2124_vm5 = vmor %vm2122_vm4, %vm2123_vm3 }
 0x360   :  { %v5425_v49 = vld [vmem:[#allocation1] sm:$0xff] }
 0x361   :  { %2891 = vst [vmem:[#allocation1] ss:$9 sm:$0xff] %v2620_v12  ;;  %v1709_v12 = vmul.f32 %v5449_v62, %v5449_v62 }
 0x362   :  { %2892 = vst [vmem:[#allocation1 + $0x1] ss:$9 sm:$0xff] %v2621_v39  ;;  %v2630_v39 = vperm.slane %v2501_v40, 2 }
 0x363   :  { %2893 = vst [vmem:[#allocation1 + $0x2] ss:$9 sm:$0xff] %v2622_v30  ;;  %v2631_v30 = vperm.slane %v2501_v40, 3 }
 0x364   :  { %2894 = vst [vmem:[#allocation1 + $0x3] ss:$9 sm:$0xff] %v2623_v3  ;;  %v2632_v3 = vperm.slane %v2501_v40, 4 }
 0x365   :  { %2895 = vst [vmem:[#allocation1 + $0x4] ss:$9 sm:$0xff] %v2624_v54  ;;  %v1684_v54 = vmul.f32 %v1651_v46, %v3887_v9 }
 0x366   :  { %2896 = vst [vmem:[#allocation1 + $0x5] ss:$9 sm:$0xff] %v2625_v61  ;;  %v1741_v61 = vsub.f32 %v1677_v51, %v1709_v12  ;;  %v1806_v51 = vsub.f32 %v5025_v11, %v5286_v60  ;;  %v2118_v60 = vmul.f32 %v5498_v35, %v2117_v13 }
 0x367   :  { %2897 = vst [vmem:[#allocation1 + $0x6] ss:$9 sm:$0xff] %v2626_v5  ;;  %v2406_v5 = vadd.f32 %v5189_v29, %v5418_v1  ;;  %v1748_v25 = vsub.f32 %v1684_v54, %v1716_v15  ;;  %v2283_v1 = vsel %vm2219_vm10, %v2187_v28, %v2251_v57 }
 0x368   :  { %2898 = vst [vmem:[#allocation1 + $0x7] ss:$9 sm:$0xff] %v2627_v14  ;;  %v2635_v14 = vperm.slane %v2501_v40, 7  ;;  %v1773_v63 = vmax.f32 %v1741_v61, 0.0  ;;  %v5496_v40 = vadd.f32 1e-05, %v1775_v31  ;;  %v2319_v24 = vmul.f32 %v5296_v8, %v2283_v1 }
 0x369   :  { %2370 = vadd.xlane.f32.xlu1 %v2318_v36  ;;  %v2090_v36 = vsub.f32 1.5, %v2089_v33  ;;  %v1780_v21 = vmax.f32 %v1748_v25, 0.0  ;;  %v2470_v34 = vmul.f32 0.01, %v2406_v5  ;;  %vm2438_vm11 = vcmp.gt.f32.partialorder %v2406_v5, 0.0 }
 0x36a   :  { %vm2102_vm9 = vweird.f32 %v5496_v40 }
 0x36b   :  { %v1844_v43 = vadd.f32 1e-05, %v1780_v21  ;;  %v2091_v59 = vmul.f32 %v5430_v7, %v2090_v36  ;;  %v2502_v6 = vsel %vm2438_vm11, %v2406_v5, %v2470_v34 }
 0x36c   :  { %v2636_v46 = vperm.slane %v2502_v6, 0  ;;  %v2637_v12 = vperm.slane %v2502_v6, 1  ;;  %v2638_v50 = vperm.slane %v2502_v6, 2  ;;  %v2640_v28 = vperm.slane %v2502_v6, 4 }
 0x36d   :  { %3537 = vrsqrt.f32 %v1844_v43  ;;  %v2641_v54 = vperm.slane %v2502_v6, 5  ;;  %v2642_v61 = vperm.slane %v2502_v6, 6  ;;  %vm2152_vm1 = vweird.f32 %v1844_v43 }
 0x36e   :  { %3539 = vrsqrt.f32 %v5496_v40 }
 0x36f   :  { %v5486_v4 = vld [vmem:[#allocation1] sm:$0xff] }
 0x370   :  { %2900 = vst [vmem:[#allocation1] ss:$9 sm:$0xff] %v2628_v2  ;;  %v5500_v2 = vadd.f32 1e-05, %v1773_v63 }
 0x371   :  { %2901 = vst [vmem:[#allocation1 + $0x1] ss:$9 sm:$0xff] %v2629_v47  ;;  %v2095_v47 = vsel %vm2094_vm14, %v5430_v7, %v2091_v59  ;;  %v2407_v7 = vadd.f32 %v5189_v29, %v5428_v26 }
 0x372   :  { %2902 = vst [vmem:[#allocation1 + $0x2] ss:$9 sm:$0xff] %v2630_v39  ;;  %3541 = vrsqrt.f32 %v5500_v2  ;;  %v5511_v32 = vmul.f32 %v2095_v47, %v1806_v51  ;;  %v1809_v47 = vsub.f32 %v5077_v38, %v5357_v42  ;;  %vm2082_vm10 = vweird.f32 %v5500_v2 }
 0x373   :  { %2903 = vst [vmem:[#allocation1 + $0x3] ss:$9 sm:$0xff] %v2631_v30  ;;  %v3538_v22 = vpop.eup %3537  ;;  %v2639_v30 = vperm.slane %v2502_v6, 3  ;;  %v2471_v25 = vmul.f32 0.01, %v2407_v7  ;;  %vm2439_vm0 = vcmp.gt.f32.partialorder %v2407_v7, 0.0 }
 0x374   :  { %2904 = vst [vmem:[#allocation1 + $0x4] ss:$9 sm:$0xff] %v2632_v3  ;;  %v2147_v11 = vmul.f32 %v3538_v22, %v1844_v43  ;;  %v5517_v3 = vpop.eup %3539  ;;  %vm2153_vm15 = vweird.f32 %v3538_v22  ;;  %vm2222_vm4 = vcmp.gt.f32.partialorder %v5511_v32, 0.0 }
 0x375   :  { %2905 = vst [vmem:[#allocation1 + $0x5] ss:$9 sm:$0xff] %v2633_v27  ;;  %v1779_v27 = vmax.f32 %v1747_v52, 0.0  ;;  %v2097_v26 = vmul.f32 %v5517_v3, %v5496_v40  ;;  %v1812_v52 = vsub.f32 %v5143_v53, %v5482_v45  ;;  %vm2154_vm2 = vmor %vm2152_vm1, %vm2153_vm15  ;;  %v2503_v21 = vsel %vm2439_vm0, %v2407_v7, %v2471_v25  ;;  %v2355_v45 = vpop.xlane.xlu2 %2354 }
 0x376   :  { %2906 = vst [vmem:[#allocation1 + $0x6] ss:$9 sm:$0xff] %v2634_v37  ;;  %v2148_v33 = vmul.f32 %v3538_v22, %v2147_v11  ;;  %v2643_v37 = vperm.slane %v2502_v6, 7  ;;  %v2644_v43 = vperm.slane %v2503_v21, 0  ;;  %v2645_v53 = vperm.slane %v2503_v21, 1 }
 0x377   :  { %2907 = vst [vmem:[#allocation1 + $0x7] ss:$9 sm:$0xff] %v2635_v14  ;;  %v5528_v36 = vadd.f32 1e-05, %v1779_v27  ;;  %v2098_v31 = vmul.f32 %v5517_v3, %v2097_v26  ;;  %v2646_v13 = vperm.slane %v2503_v21, 2  ;;  %v2651_v38 = vperm.slane %v2503_v21, 7 }
 0x378   :  { %v5519_v15 = vpop.eup %3541  ;;  %v2149_v5 = vmul.f32 0.5, %v2148_v33  ;;  %vm2103_vm6 = vweird.f32 %v5517_v3  ;;  %v1807_v27 = vsub.f32 %v5041_v55, %v5439_v56 }
 0x379   :  { %v2077_v57 = vmul.f32 %v5519_v15, %v5500_v2  ;;  %3543 = vrsqrt.f32 %v5528_v36  ;;  %v2099_v6 = vmul.f32 0.5, %v2098_v31  ;;  %vm2083_vm8 = vweird.f32 %v5519_v15  ;;  %vm2104_vm11 = vmor %vm2102_vm9, %vm2103_vm6 }
 0x37a   :  { %v2150_v14 = vsub.f32 1.5, %v2149_v5  ;;  %vm2084_vm12 = vmor %vm2082_vm10, %vm2083_vm8  ;;  %vm2142_vm1 = vweird.f32 %v5528_v36 }
 0x37b   :  { %2372 = vadd.xlane.f32.xlu2 %v2319_v24  ;;  %v2078_v34 = vmul.f32 %v5519_v15, %v2077_v57  ;;  %v2100_v11 = vsub.f32 1.5, %v2099_v6  ;;  %v5575_v6 = vmul.f32 %v5432_v58, %v3887_v9 }
 0x37c   :  { %v2151_v18 = vmul.f32 %v3538_v22, %v2150_v14  ;;  %v2357_v14 = vpop.xlane.xlu0 %2356 }
 0x37d   :  { %v2079_v51 = vmul.f32 0.5, %v2078_v34  ;;  %v2409_v55 = vadd.f32 %v5189_v29, %v2357_v14  ;;  %v1714_v58 = vmul.f32 %v5575_v6, %v5575_v6 }
 0x37e   :  { %v2908_v39 = vld [vmem:[#allocation1] sm:$0xff]  ;;  %v2155_v63 = vsel %vm2154_vm2, %v3538_v22, %v2151_v18  ;;  %v2648_v22 = vperm.slane %v2503_v21, 4 }
 0x37f   :  { %2909 = vst [vmem:[#allocation1] ss:$9 sm:$0xff] %v2636_v46  ;;  %3135 = vperm.xlu0 %3415, %v2908_v39   ;;  %v5534_v1 = vmul.f32 %v2155_v63, %v1812_v52  ;;  %v2647_v46 = vperm.slane %v2503_v21, 3  ;;  %v2473_v63 = vmul.f32 0.01, %v2409_v55  ;;  %vm2441_vm0 = vcmp.gt.f32.partialorder %v2409_v55, 0.0 }
 0x380   :  { %2910 = vst [vmem:[#allocation1 + $0x1] ss:$9 sm:$0xff] %v2637_v12  ;;  %v2408_v12 = vadd.f32 %v5189_v29, %v2355_v45 }
 0x381   :  { %2911 = vst [vmem:[#allocation1 + $0x2] ss:$9 sm:$0xff] %v2638_v50  ;;  %v5546_v50 = vpop.eup %3543  ;;  %v2505_v45 = vsel %vm2441_vm0, %v2409_v55, %v2473_v63  ;;  %vm3216_vm0 = vcmask 261312  }
 0x382   :  { %3126 = vperm.xlu1 %3413, %v5395_v10   ;;  %2912 = vst [vmem:[#allocation1 + $0x3] ss:$9 sm:$0xff] %v2639_v30  ;;  %v2119_v10 = vmul.f32 0.5, %v2118_v60  ;;  %v2649_v60 = vperm.slane %v2503_v21, 5  ;;  %v2080_v30 = vsub.f32 1.5, %v2079_v51  ;;  %v2137_v42 = vmul.f32 %v5546_v50, %v5528_v36 }
 0x383   :  { %2913 = vst [vmem:[#allocation1 + $0x4] ss:$9 sm:$0xff] %v2640_v28  ;;  %v2650_v28 = vperm.slane %v2503_v21, 6  ;;  %v2472_v7 = vmul.f32 0.01, %v2408_v12  ;;  %vm2440_vm7 = vcmp.gt.f32.partialorder %v2408_v12, 0.0  ;;  %vm2143_vm15 = vweird.f32 %v5546_v50 }
 0x384   :  { %2914 = vst [vmem:[#allocation1 + $0x5] ss:$9 sm:$0xff] %v2641_v54  ;;  %v2120_v16 = vsub.f32 1.5, %v2119_v10  ;;  %v2081_v33 = vmul.f32 %v5519_v15, %v2080_v30  ;;  %v2138_v54 = vmul.f32 %v5546_v50, %v2137_v42  ;;  %v1805_v10 = vsub.f32 %v4993_v20, %v5449_v62  ;;  %v5569_v62 = vpop.xlane.xlu2 %1524  ;;  %vm2144_vm2 = vmor %vm2142_vm1, %vm2143_vm15 }
 0x385   :  { %2915 = vst [vmem:[#allocation1 + $0x6] ss:$9 sm:$0xff] %v2642_v61  ;;  %v2504_v61 = vsel %vm2440_vm7, %v2408_v12, %v2472_v7  ;;  %v2660_v12 = vperm.slane %v2505_v45, 0  ;;  %v2664_v30 = vperm.slane %v2505_v45, 4  ;;  %v2665_v42 = vperm.slane %v2505_v45, 5 }
 0x386   :  { %2916 = vst [vmem:[#allocation1 + $0x7] ss:$9 sm:$0xff] %v2643_v37  ;;  %v2121_v59 = vmul.f32 %v5498_v35, %v2120_v16  ;;  %v2085_v5 = vsel %vm2084_vm12, %v5519_v15, %v2081_v33  ;;  %v2652_v37 = vperm.slane %v2504_v61, 0  ;;  %v2139_v2 = vmul.f32 0.5, %v2138_v54 }
 0x387   :  { %v2653_v25 = vperm.slane %v2504_v61, 1  ;;  %v2654_v57 = vperm.slane %v2504_v61, 2  ;;  %v2189_v18 = vmul.f32 %v2085_v5, %v1805_v10  ;;  %v2655_v16 = vperm.slane %v2504_v61, 3 }
 0x388   :  { %v2125_v39 = vsel %vm2124_vm5, %v5498_v35, %v2121_v59  ;;  %v2101_v35 = vmul.f32 %v5517_v3, %v2100_v11  ;;  %v2140_v15 = vsub.f32 1.5, %v2139_v2  ;;  %v2657_v52 = vperm.slane %v2504_v61, 5 }
 0x389   :  { %v5548_v41 = vmul.f32 %v2125_v39, %v1809_v47  ;;  %v2658_v20 = vperm.slane %v2504_v61, 6  ;;  %v2253_v31 = vmul.f32 0.01, %v2189_v18  ;;  %v2659_v21 = vperm.slane %v2504_v61, 7 }
 0x38a   :  { %vm2221_vm14 = vcmp.gt.f32.partialorder %v2189_v18, 0.0  ;;  %v2141_v34 = vmul.f32 %v5546_v50, %v2140_v15  ;;  %v2661_v39 = vperm.slane %v2505_v45, 1  ;;  %v2662_v11 = vperm.slane %v2505_v45, 2 }
 0x38b   :  { %v2666_v7 = vperm.slane %v2505_v45, 6  ;;  %v2254_v5 = vmul.f32 0.01, %v5511_v32  ;;  %vm3208_vm5 = vcmask 130112   ;;  %vm3212_vm7 = vcmask 195712  }
 0x38c   :  { %v2145_v47 = vsel %vm2144_vm2, %v5546_v50, %v2141_v34  ;;  %vm3220_vm1 = vcmask 326912   ;;  %vm2225_vm2 = vcmp.gt.f32.partialorder %v5548_v41, 0.0 }
 0x38d   :  { %v5539_v24 = vld [vmem:[#allocation1] sm:$0xff] }
 0x38e   :  { %2918 = vst [vmem:[#allocation1] ss:$9 sm:$0xff] %v2644_v43  ;;  %v2285_v43 = vsel %vm2221_vm14, %v2189_v18, %v2253_v31  ;;  %v2286_v18 = vsel %vm2222_vm4, %v5511_v32, %v2254_v5  ;;  %vm2224_vm14 = vcmp.gt.f32.partialorder %v5407_v17, 0.0 }
 0x38f   :  { %2919 = vst [vmem:[#allocation1 + $0x1] ss:$9 sm:$0xff] %v2645_v53  ;;  %v1811_v53 = vsub.f32 %v5140_v19, %v5444_v0  ;;  %v2359_v19 = vpop.xlane.xlu1 %2358  ;;  %v1682_v0 = vmul.f32 %v5416_v23, %v3887_v9  ;;  %v2667_v23 = vperm.slane %v2505_v45, 7  ;;  %v2322_v15 = vmul.f32 %v5296_v8, %v2286_v18 }
 0x390   :  { %2920 = vst [vmem:[#allocation1 + $0x2] ss:$9 sm:$0xff] %v2646_v13  ;;  %v2321_v13 = vmul.f32 %v5296_v8, %v2285_v43 }
 0x391   :  { %2921 = vst [vmem:[#allocation1 + $0x3] ss:$9 sm:$0xff] %v2647_v46  ;;  %v2361_v46 = vpop.xlane.xlu2 %2360  ;;  %v1746_v50 = vsub.f32 %v1682_v0, %v1714_v58 }
 0x392   :  { %2922 = vst [vmem:[#allocation1 + $0x4] ss:$9 sm:$0xff] %v2648_v22  ;;  %v5583_v22 = vmul.f32 %v2145_v47, %v1811_v53  ;;  %v2411_v31 = vadd.f32 %v5189_v29, %v2361_v46 }
 0x393   :  { %2923 = vst [vmem:[#allocation1 + $0x5] ss:$9 sm:$0xff] %v2649_v60  ;;  %3129 = vperm.xlu2 %3414, %v5425_v49   ;;  %v2105_v49 = vsel %vm2104_vm11, %v5517_v3, %v2101_v35  ;;  %v2656_v3 = vperm.slane %v2504_v61, 4  ;;  %v2663_v60 = vperm.slane %v2505_v45, 3  ;;  %v5590_v35 = vpop.xlane.xlu0 %1652  ;;  %v1778_v54 = vmax.f32 %v1746_v50, 0.0 }
 0x394   :  { %2924 = vst [vmem:[#allocation1 + $0x6] ss:$9 sm:$0xff] %v2650_v28  ;;  %v2191_v26 = vmul.f32 %v2105_v49, %v1807_v27  ;;  %v2410_v28 = vadd.f32 %v5189_v29, %v2359_v19  ;;  %vm2443_vm6 = vcmp.gt.f32.partialorder %v2411_v31, 0.0 }
 0x395   :  { %2925 = vst [vmem:[#allocation1 + $0x7] ss:$9 sm:$0xff] %v2651_v38  ;;  %v3203_v38 = vlaneseq }
 0x396   :  { %v2255_v56 = vmul.f32 0.01, %v2191_v26  ;;  %vm2223_vm13 = vcmp.gt.f32.partialorder %v2191_v26, 0.0  ;;  %v2474_v61 = vmul.f32 0.01, %v2410_v28  ;;  %vm2442_vm3 = vcmp.gt.f32.partialorder %v2410_v28, 0.0 }
 0x397   :  { %v5593_v33 = vand.u32 127, %v3203_v38  ;;  %v3109_v10 = vpop.permute.xlu1 %3108 }
 0x398   :  { %v2287_v59 = vsel %vm2223_vm13, %v2191_v26, %v2255_v56  ;;  %v2506_v26 = vsel %vm2442_vm3, %v2410_v28, %v2474_v61  ;;  %vm3224_vm3 = vcmask 392512  }
 0x399   :  { %v2323_v51 = vmul.f32 %v5296_v8, %v2287_v59  ;;  %v5596_v49 = vadd.s32 4294967288, %v5593_v33  ;;  %v3112_v27 = vpop.permute.xlu2 %3111  ;;  %v2669_v55 = vperm.slane %v2506_v26, 1  ;;  %v2670_v56 = vperm.slane %v2506_v26, 2 }
 0x39a   :  { %v2674_v32 = vperm.slane %v2506_v26, 6  ;;  %v5612_v63 = vadd.s32 4294967280, %v5593_v33  ;;  %v2675_v59 = vperm.slane %v2506_v26, 7  ;;  %v2475_v8 = vmul.f32 0.01, %v2411_v31 }
 0x39b   :  { %v3207_v2 = vperm.slane %v3112_v27, %v5596_v49  ;;  %v2363_v14 = vpop.xlane.xlu0 %2362  ;;  %v1810_v27 = vsub.f32 %v5106_v44, %v5575_v6 }
 0x39c   :  { %v5566_v40 = vld [vmem:[#allocation1] sm:$0xff] }
 0x39d   :  { %2927 = vst [vmem:[#allocation1] ss:$9 sm:$0xff] %v2652_v37  ;;  %v5600_v37 = vadd.f32 1e-05, %v1778_v54 }
 0x39e   :  { %2928 = vst [vmem:[#allocation1 + $0x1] ss:$9 sm:$0xff] %v2653_v25  ;;  %v3205_v25 = vperm.slane %v3109_v10, %v5593_v33 }
 0x39f   :  { %2929 = vst [vmem:[#allocation1 + $0x2] ss:$9 sm:$0xff] %v2654_v57  ;;  %3545 = vrsqrt.f32 %v5600_v37  ;;  %vm2132_vm10 = vweird.f32 %v5600_v37 }
 0x3a0   :  { %2930 = vst [vmem:[#allocation1 + $0x3] ss:$9 sm:$0xff] %v2655_v16  ;;  %v3209_v57 = vsel %vm3208_vm5, %v3207_v2, %v3205_v25  ;;  %v2668_v16 = vperm.slane %v2506_v26, 0 }
 0x3a1   :  { %2931 = vst [vmem:[#allocation1 + $0x4] ss:$9 sm:$0xff] %v2656_v3 }
 0x3a2   :  { %2932 = vst [vmem:[#allocation1 + $0x5] ss:$9 sm:$0xff] %v2657_v52  ;;  %v2671_v52 = vperm.slane %v2506_v26, 3 }
 0x3a3   :  { %2933 = vst [vmem:[#allocation1 + $0x6] ss:$9 sm:$0xff] %v2658_v20  ;;  %v2672_v20 = vperm.slane %v2506_v26, 4  ;;  %v3115_v43 = vpop.permute.xlu0 %3114 }
 0x3a4   :  { %2934 = vst [vmem:[#allocation1 + $0x7] ss:$9 sm:$0xff] %v2659_v21  ;;  %v2673_v21 = vperm.slane %v2506_v26, 5  ;;  %v3211_v53 = vperm.slane %v3115_v43, %v5612_v63 }
 0x3a5   :  { %v3546_v34 = vpop.eup %3545 }
 0x3a6   :  { %v2127_v45 = vmul.f32 %v3546_v34, %v5600_v37  ;;  %vm2133_vm9 = vweird.f32 %v3546_v34 }
 0x3a7   :  { %vm2134_vm11 = vmor %vm2132_vm10, %vm2133_vm9 }
 0x3a8   :  { %v2128_v47 = vmul.f32 %v3546_v34, %v2127_v45 }
 0x3a9   :  { %2380 = vadd.xlane.f32.xlu0 %v2323_v51  ;;  %v5617_v51 = vsel %vm3212_vm7, %v3211_v53, %v3209_v57  ;;  %v1685_v53 = vmul.f32 %v5590_v35, %v3887_v9 }
 0x3ab   :  { %v2935_v36 = vld [vmem:[#allocation1] sm:$0xff] }
 0x3ac   :  { %2376 = vadd.xlane.f32.xlu1 %v2321_v13  ;;  %2936 = vst [vmem:[#allocation1] ss:$9 sm:$0xff] %v2660_v12  ;;  %v2507_v13 = vsel %vm2443_vm6, %v2411_v31, %v2475_v8  ;;  %v2367_v31 = vpop.xlane.xlu2 %2366 }
 0x3ad   :  { %2937 = vst [vmem:[#allocation1 + $0x1] ss:$9 sm:$0xff] %v2661_v39  ;;  %v2676_v46 = vperm.slane %v2507_v13, 0  ;;  %v2677_v12 = vperm.slane %v2507_v13, 1  ;;  %v2129_v39 = vmul.f32 0.5, %v2128_v47  ;;  %v2679_v19 = vperm.slane %v2507_v13, 3 }
 0x3ae   :  { %2938 = vst [vmem:[#allocation1 + $0x2] ss:$9 sm:$0xff] %v2662_v11  ;;  %v2680_v0 = vperm.slane %v2507_v13, 4  ;;  %v2412_v11 = vadd.f32 %v5189_v29, %v2363_v14  ;;  %v2682_v50 = vperm.slane %v2507_v13, 6 }
 0x3af   :  { %2939 = vst [vmem:[#allocation1 + $0x3] ss:$9 sm:$0xff] %v2663_v60  ;;  %v2681_v60 = vperm.slane %v2507_v13, 5 }
 0x3b0   :  { %2940 = vst [vmem:[#allocation1 + $0x4] ss:$9 sm:$0xff] %v2664_v30  ;;  %v2683_v30 = vperm.slane %v2507_v13, 7  ;;  %v2476_v28 = vmul.f32 0.01, %v2412_v11  ;;  %vm2444_vm8 = vcmp.gt.f32.partialorder %v2412_v11, 0.0 }
 0x3b1   :  { %2941 = vst [vmem:[#allocation1 + $0x5] ss:$9 sm:$0xff] %v2665_v42 }
 0x3b2   :  { %2942 = vst [vmem:[#allocation1 + $0x6] ss:$9 sm:$0xff] %v2666_v7  ;;  %v2508_v7 = vsel %vm2444_vm8, %v2412_v11, %v2476_v28 }
 0x3b3   :  { %2943 = vst [vmem:[#allocation1 + $0x7] ss:$9 sm:$0xff] %v2667_v23  ;;  %v2365_v23 = vpop.xlane.xlu1 %2364  ;;  %v2684_v61 = vperm.slane %v2508_v7, 0  ;;  %v2685_v10 = vperm.slane %v2508_v7, 1  ;;  %v2686_v26 = vperm.slane %v2508_v7, 2  ;;  %v2687_v14 = vperm.slane %v2508_v7, 3 }
 0x3b4   :  { %v2413_v2 = vadd.f32 %v5189_v29, %v2365_v23  ;;  %v2688_v37 = vperm.slane %v2508_v7, 4  ;;  %v2690_v57 = vperm.slane %v2508_v7, 6 }
 0x3b6   :  { %v2477_v18 = vmul.f32 0.01, %v2413_v2  ;;  %vm2445_vm12 = vcmp.gt.f32.partialorder %v2413_v2, 0.0 }
 0x3b8   :  { %v2509_v44 = vsel %vm2445_vm12, %v2413_v2, %v2477_v18 }
 0x3b9   :  { %v2695_v43 = vperm.slane %v2509_v44, 3  ;;  %v2696_v45 = vperm.slane %v2509_v44, 4  ;;  %v2697_v47 = vperm.slane %v2509_v44, 5 }
 0x3ba   :  { %v5607_v3 = vld [vmem:[#allocation1] sm:$0xff] }
 0x3bb   :  { %2945 = vst [vmem:[#allocation1] ss:$9 sm:$0xff] %v2668_v16 }
 0x3bc   :  { %2946 = vst [vmem:[#allocation1 + $0x1] ss:$9 sm:$0xff] %v2669_v55  ;;  %2378 = vadd.xlane.f32.xlu2 %v2322_v15  ;;  %v2691_v55 = vperm.slane %v2508_v7, 7  ;;  %v5633_v15 = vmul.f32 %v5569_v62, %v3887_v9 }
 0x3bd   :  { %2947 = vst [vmem:[#allocation1 + $0x2] ss:$9 sm:$0xff] %v2670_v56  ;;  %3144 = vperm.xlu0 %3415, %v2935_v36   ;;  %v2678_v36 = vperm.slane %v2507_v13, 2  ;;  %v2256_v56 = vmul.f32 0.01, %v5407_v17  ;;  %v2414_v13 = vadd.f32 %v5189_v29, %v2367_v31 }
 0x3be   :  { %2948 = vst [vmem:[#allocation1 + $0x3] ss:$9 sm:$0xff] %v2671_v52  ;;  %v2692_v52 = vperm.slane %v2509_v44, 0  ;;  %v1717_v8 = vmul.f32 %v5633_v15, %v5633_v15 }
 0x3bf   :  { %2949 = vst [vmem:[#allocation1 + $0x4] ss:$9 sm:$0xff] %v2672_v20  ;;  %v2693_v20 = vperm.slane %v2509_v44, 1  ;;  %v2288_v62 = vsel %vm2224_vm14, %v5407_v17, %v2256_v56  ;;  %v2478_v17 = vmul.f32 0.01, %v2414_v13  ;;  %vm2446_vm15 = vcmp.gt.f32.partialorder %v2414_v13, 0.0 }
 0x3c0   :  { %2950 = vst [vmem:[#allocation1 + $0x5] ss:$9 sm:$0xff] %v2673_v21  ;;  %v5639_v21 = vld [vmem:[%s5814_s5] ss:$0 sm:$0xff]  ;;  %vm3232_vm14 = vcmask 523712   ;;  %s3580_s5 = smov [#allocation4]  }
 0x3c1   :  { %2951 = vst [vmem:[#allocation1 + $0x6] ss:$9 sm:$0xff] %v2674_v32  ;;  %v2510_v35 = vsel %vm2446_vm15, %v2414_v13, %v2478_v17  ;;  %vm2227_vm15 = vcmp.gt.f32.partialorder %v5583_v22, 0.0  ;;  %s3311_s25 = sshll.u32 %s3580_s5, 4  ;;  %s3312_s25 = int_to_ptr.vmem [resolvable:$true] %s3311_s25 }
 0x3c2   :  { %2952 = vst [vmem:[#allocation1 + $0x7] ss:$9 sm:$0xff] %v2675_v59  ;;  %v2702_v28 = vperm.slane %v2510_v35, 2  ;;  %v2705_v2 = vperm.slane %v2510_v35, 5  ;;  %v2707_v18 = vperm.slane %v2510_v35, 7 }
 0x3c5   :  { %3132 = vperm.xlu1 %3413, %v5486_v4   ;;  %v2130_v4 = vsub.f32 1.5, %v2129_v39  ;;  %v1749_v39 = vsub.f32 %v1685_v53, %v1717_v8 }
 0x3c7   :  { %v2131_v42 = vmul.f32 %v3546_v34, %v2130_v4  ;;  %v1781_v9 = vmax.f32 %v1749_v39, 0.0  ;;  %v5657_v4 = vadd.s32 4294967264, %v5593_v33 }
 0x3c9   :  { %v5620_v58 = vld [vmem:[#allocation1] sm:$0xff]  ;;  %v2135_v54 = vsel %vm2134_vm11, %v3546_v34, %v2131_v42  ;;  %v2694_v34 = vperm.slane %v2509_v44, 2  ;;  %v5654_v11 = vadd.f32 1e-05, %v1781_v9 }
 0x3ca   :  { %2954 = vst [vmem:[#allocation1] ss:$9 sm:$0xff] %v2676_v46  ;;  %v2194_v25 = vmul.f32 %v2135_v54, %v1810_v27  ;;  %v2698_v46 = vperm.slane %v2509_v44, 6  ;;  %v2369_v54 = vpop.xlane.xlu0 %2368 }
 0x3cb   :  { %2955 = vst [vmem:[#allocation1 + $0x1] ss:$9 sm:$0xff] %v2677_v12  ;;  %v2699_v12 = vperm.slane %v2509_v44, 7  ;;  %3547 = vrsqrt.f32 %v5654_v11  ;;  %vm2162_vm9 = vweird.f32 %v5654_v11 }
 0x3cc   :  { %2956 = vst [vmem:[#allocation1 + $0x2] ss:$9 sm:$0xff] %v2678_v36  ;;  %v2258_v16 = vmul.f32 0.01, %v2194_v25  ;;  %vm2226_vm13 = vcmp.gt.f32.partialorder %v2194_v25, 0.0  ;;  %v2324_v36 = vmul.f32 %v5639_v21, %v2288_v62 }
 0x3cd   :  { %2957 = vst [vmem:[#allocation1 + $0x3] ss:$9 sm:$0xff] %v2679_v19  ;;  %v2700_v19 = vperm.slane %v2510_v35, 0 }
 0x3ce   :  { %2958 = vst [vmem:[#allocation1 + $0x4] ss:$9 sm:$0xff] %v2680_v0  ;;  %v2290_v6 = vsel %vm2226_vm13, %v2194_v25, %v2258_v16  ;;  %v5652_v0 = vadd.s32 4294967272, %v5593_v33  ;;  %vm3228_vm13 = vcmask 458112  }
 0x3cf   :  { %2959 = vst [vmem:[#allocation1 + $0x5] ss:$9 sm:$0xff] %v2681_v60  ;;  %v2326_v32 = vmul.f32 %v5639_v21, %v2290_v6  ;;  %v2701_v60 = vperm.slane %v2510_v35, 1 }
 0x3d0   :  { %2960 = vst [vmem:[#allocation1 + $0x6] ss:$9 sm:$0xff] %v2682_v50  ;;  %v3118_v50 = vpop.permute.xlu2 %3117 }
 0x3d1   :  { %2961 = vst [vmem:[#allocation1 + $0x7] ss:$9 sm:$0xff] %v2683_v30  ;;  %v3121_v30 = vpop.permute.xlu1 %3120  ;;  %v3215_v42 = vperm.slane %v3118_v50, %v5652_v0  ;;  %v3548_v6 = vpop.eup %3547 }
 0x3d2   :  { %v3219_v27 = vperm.slane %v3121_v30, %v5657_v4  ;;  %v2157_v56 = vmul.f32 %v3548_v6, %v5654_v11  ;;  %vm2163_vm8 = vweird.f32 %v3548_v6 }
 0x3d3   :  { %vm2164_vm10 = vmor %vm2162_vm9, %vm2163_vm8  ;;  %vm3236_vm9 = vcmask 589312  }
 0x3d4   :  { %3138 = vperm.xlu2 %3414, %v5539_v24   ;;  %v2689_v24 = vperm.slane %v2508_v7, 5  ;;  %v2257_v7 = vmul.f32 0.01, %v5548_v41  ;;  %v2158_v31 = vmul.f32 %v3548_v6, %v2157_v56 }
 0x3d8   :  { %v5627_v5 = vld [vmem:[#allocation1] sm:$0xff] }
 0x3d9   :  { %2963 = vst [vmem:[#allocation1] ss:$9 sm:$0xff] %v2684_v61  ;;  %v2703_v61 = vperm.slane %v2510_v35, 3 }
 0x3da   :  { %2964 = vst [vmem:[#allocation1 + $0x1] ss:$9 sm:$0xff] %v2685_v10  ;;  %v2704_v10 = vperm.slane %v2510_v35, 4 }
 0x3db   :  { %2965 = vst [vmem:[#allocation1 + $0x2] ss:$9 sm:$0xff] %v2686_v26  ;;  %v3217_v26 = vsel %vm3216_vm0, %v3215_v42, %v5617_v51  ;;  %v3124_v51 = vpop.permute.xlu2 %3123 }
 0x3dc   :  { %2966 = vst [vmem:[#allocation1 + $0x3] ss:$9 sm:$0xff] %v2687_v14  ;;  %v3221_v25 = vsel %vm3220_vm1, %v3219_v27, %v3217_v26  ;;  %v2415_v14 = vadd.f32 %v5189_v29, %v2369_v54 }
 0x3dd   :  { %2967 = vst [vmem:[#allocation1 + $0x4] ss:$9 sm:$0xff] %v2688_v37  ;;  %v2706_v37 = vperm.slane %v2510_v35, 6 }
 0x3de   :  { %2968 = vst [vmem:[#allocation1 + $0x5] ss:$9 sm:$0xff] %v2689_v24  ;;  %v5671_v24 = vadd.s32 4294967256, %v5593_v33  ;;  %vm2447_vm4 = vcmp.gt.f32.partialorder %v2415_v14, 0.0 }
 0x3df   :  { %2969 = vst [vmem:[#allocation1 + $0x6] ss:$9 sm:$0xff] %v2690_v57  ;;  %v2289_v57 = vsel %vm2225_vm2, %v5548_v41, %v2257_v7  ;;  %v1813_v7 = vsub.f32 %v5184_v48, %v5633_v15 }
 0x3e0   :  { %2970 = vst [vmem:[#allocation1 + $0x7] ss:$9 sm:$0xff] %v2691_v55  ;;  %v2325_v16 = vmul.f32 %v5639_v21, %v2289_v57  ;;  %v2479_v55 = vmul.f32 0.01, %v2415_v14  ;;  %v3223_v44 = vperm.slane %v3124_v51, %v5671_v24  ;;  %v2375_v51 = vpop.xlane.xlu0 %2374 }
 0x3e2   :  { %v5678_v41 = vsel %vm3224_vm3, %v3223_v44, %v3221_v25 }
 0x3e7   :  { %v5642_v59 = vld [vmem:[#allocation1] sm:$0xff]  ;;  %2386 = vadd.xlane.f32.xlu0 %v2326_v32 }
 0x3e8   :  { %2972 = vst [vmem:[#allocation1] ss:$9 sm:$0xff] %v2692_v52  ;;  %v2511_v52 = vsel %vm2447_vm4, %v2415_v14, %v2479_v55  ;;  %v5693_v14 = vadd.s32 4294967248, %v5593_v33  ;;  %vm2228_vm4 = vcmp.gt.f32.partialorder %v5534_v1, 0.0 }
 0x3e9   :  { %2973 = vst [vmem:[#allocation1 + $0x1] ss:$9 sm:$0xff] %v2693_v20  ;;  %v2708_v20 = vperm.slane %v2511_v52, 0  ;;  %v2709_v32 = vperm.slane %v2511_v52, 1  ;;  %v2711_v8 = vperm.slane %v2511_v52, 3  ;;  %v2712_v53 = vperm.slane %v2511_v52, 4 }
 0x3ea   :  { %2974 = vst [vmem:[#allocation1 + $0x2] ss:$9 sm:$0xff] %v2694_v34  ;;  %v2713_v13 = vperm.slane %v2511_v52, 5 }
 0x3eb   :  { %2975 = vst [vmem:[#allocation1 + $0x3] ss:$9 sm:$0xff] %v2695_v43  ;;  %v2710_v43 = vperm.slane %v2511_v52, 2 }
 0x3ec   :  { %2976 = vst [vmem:[#allocation1 + $0x4] ss:$9 sm:$0xff] %v2696_v45  ;;  %v2159_v45 = vmul.f32 0.5, %v2158_v31 }
 0x3ed   :  { %2977 = vst [vmem:[#allocation1 + $0x5] ss:$9 sm:$0xff] %v2697_v47  ;;  %v2714_v47 = vperm.slane %v2511_v52, 6 }
 0x3ee   :  { %2978 = vst [vmem:[#allocation1 + $0x6] ss:$9 sm:$0xff] %v2698_v46  ;;  %v2373_v35 = vpop.xlane.xlu2 %2372 }
 0x3ef   :  { %2382 = vadd.xlane.f32.xlu1 %v2324_v36  ;;  %2979 = vst [vmem:[#allocation1 + $0x7] ss:$9 sm:$0xff] %v2699_v12  ;;  %v2715_v12 = vperm.slane %v2511_v52, 7  ;;  %v2160_v36 = vsub.f32 1.5, %v2159_v45 }
 0x3f1   :  { %v2161_v17 = vmul.f32 %v3548_v6, %v2160_v36 }
 0x3f3   :  { %v2165_v42 = vsel %vm2164_vm10, %v3548_v6, %v2161_v17  ;;  %vm3240_vm10 = vcmask 654912  }
 0x3f4   :  { %v2197_v27 = vmul.f32 %v2165_v42, %v1813_v7 }
 0x3f6   :  { %v5661_v23 = vld [vmem:[#allocation1] sm:$0xff]  ;;  %v2261_v26 = vmul.f32 0.01, %v2197_v27  ;;  %vm2229_vm12 = vcmp.gt.f32.partialorder %v2197_v27, 0.0  ;;  %v3130_v57 = vpop.permute.xlu2 %3129 }
 0x3f7   :  { %2981 = vst [vmem:[#allocation1] ss:$9 sm:$0xff] %v2700_v19 }
 0x3f8   :  { %2982 = vst [vmem:[#allocation1 + $0x1] ss:$9 sm:$0xff] %v2701_v60  ;;  %v2293_v48 = vsel %vm2229_vm12, %v2197_v27, %v2261_v26 }
 0x3f9   :  { %2983 = vst [vmem:[#allocation1 + $0x2] ss:$9 sm:$0xff] %v2702_v28  ;;  %v2417_v28 = vadd.f32 %v5189_v29, %v2373_v35  ;;  %v2329_v44 = vmul.f32 %v5639_v21, %v2293_v48  ;;  %v2260_v35 = vmul.f32 0.01, %v5534_v1 }
 0x3fa   :  { %2984 = vst [vmem:[#allocation1 + $0x3] ss:$9 sm:$0xff] %v2703_v61 }
 0x3fb   :  { %2985 = vst [vmem:[#allocation1 + $0x4] ss:$9 sm:$0xff] %v2704_v10  ;;  %3153 = vperm.xlu0 %3415, %v5627_v5   ;;  %v2371_v5 = vpop.xlane.xlu1 %2370  ;;  %v2481_v10 = vmul.f32 0.01, %v2417_v28  ;;  %vm2449_vm11 = vcmp.gt.f32.partialorder %v2417_v28, 0.0 }
 0x3fc   :  { %2986 = vst [vmem:[#allocation1 + $0x5] ss:$9 sm:$0xff] %v2705_v2  ;;  %v2416_v62 = vadd.f32 %v5189_v29, %v2371_v5 }
 0x3fd   :  { %2987 = vst [vmem:[#allocation1 + $0x6] ss:$9 sm:$0xff] %v2706_v37  ;;  %2384 = vadd.xlane.f32.xlu2 %v2325_v16  ;;  %v2513_v2 = vsel %vm2449_vm11, %v2417_v28, %v2481_v10  ;;  %v5696_v37 = vadd.s32 4294967240, %v5593_v33  ;;  %v2292_v28 = vsel %vm2228_vm4, %v5534_v1, %v2260_v35  ;;  %vm3248_vm4 = vcmask 786112  }
 0x3fe   :  { %2988 = vst [vmem:[#allocation1 + $0x7] ss:$9 sm:$0xff] %v2707_v18  ;;  %v2480_v46 = vmul.f32 0.01, %v2416_v62  ;;  %vm2448_vm6 = vcmp.gt.f32.partialorder %v2416_v62, 0.0  ;;  %v2724_v25 = vperm.slane %v2513_v2, 0  ;;  %v2328_v7 = vmul.f32 %v5639_v21, %v2292_v28 }
 0x3ff   :  { %v2725_v15 = vperm.slane %v2513_v2, 1  ;;  %v2726_v18 = vperm.slane %v2513_v2, 2  ;;  %v2727_v55 = vperm.slane %v2513_v2, 3  ;;  %v2728_v6 = vperm.slane %v2513_v2, 4 }
 0x400   :  { %v2512_v39 = vsel %vm2448_vm6, %v2416_v62, %v2480_v46  ;;  %v3231_v52 = vperm.slane %v3130_v57, %v5696_v37  ;;  %v2729_v5 = vperm.slane %v2513_v2, 5  ;;  %v2730_v31 = vperm.slane %v2513_v2, 6 }
 0x401   :  { %v2717_v9 = vperm.slane %v2512_v39, 1  ;;  %v2718_v19 = vperm.slane %v2512_v39, 2  ;;  %v2719_v50 = vperm.slane %v2512_v39, 3  ;;  %v2720_v30 = vperm.slane %v2512_v39, 4 }
 0x402   :  { %v2721_v54 = vperm.slane %v2512_v39, 5  ;;  %v2722_v61 = vperm.slane %v2512_v39, 6  ;;  %v2723_v11 = vperm.slane %v2512_v39, 7  ;;  %v5724_v57 = vadd.s32 4294967224, %v5593_v33 }
 0x405   :  { %v5681_v34 = vld [vmem:[#allocation1] sm:$0xff] }
 0x406   :  { %2990 = vst [vmem:[#allocation1] ss:$9 sm:$0xff] %v2708_v20  ;;  %v2418_v20 = vadd.f32 %v5189_v29, %v2375_v51 }
 0x407   :  { %2991 = vst [vmem:[#allocation1 + $0x1] ss:$9 sm:$0xff] %v2709_v32 }
 0x408   :  { %3141 = vperm.xlu1 %3413, %v5566_v40   ;;  %2992 = vst [vmem:[#allocation1 + $0x2] ss:$9 sm:$0xff] %v2710_v43  ;;  %v2716_v40 = vperm.slane %v2512_v39, 0  ;;  %v2731_v43 = vperm.slane %v2513_v2, 7  ;;  %vm2450_vm2 = vcmp.gt.f32.partialorder %v2418_v20, 0.0 }
 0x409   :  { %2993 = vst [vmem:[#allocation1 + $0x3] ss:$9 sm:$0xff] %v2711_v8  ;;  %v2259_v8 = vmul.f32 0.01, %v5583_v22 }
 0x40a   :  { %2994 = vst [vmem:[#allocation1 + $0x4] ss:$9 sm:$0xff] %v2712_v53  ;;  %v2482_v53 = vmul.f32 0.01, %v2418_v20 }
 0x40b   :  { %2995 = vst [vmem:[#allocation1 + $0x5] ss:$9 sm:$0xff] %v2713_v13  ;;  %v2291_v45 = vsel %vm2227_vm15, %v5583_v22, %v2259_v8 }
 0x40c   :  { %2996 = vst [vmem:[#allocation1 + $0x6] ss:$9 sm:$0xff] %v2714_v47  ;;  %v2514_v13 = vsel %vm2450_vm2, %v2418_v20, %v2482_v53  ;;  %vm3244_vm2 = vcmask 720512  }
 0x40d   :  { %2997 = vst [vmem:[#allocation1 + $0x7] ss:$9 sm:$0xff] %v2715_v12  ;;  %v2732_v46 = vperm.slane %v2514_v13, 0  ;;  %v2733_v12 = vperm.slane %v2514_v13, 1  ;;  %v2734_v39 = vperm.slane %v2514_v13, 2  ;;  %v2738_v22 = vperm.slane %v2514_v13, 6 }
 0x414   :  { %v5686_v60 = vld [vmem:[#allocation1] sm:$0xff] }
 0x415   :  { %2999 = vst [vmem:[#allocation1] ss:$9 sm:$0xff] %v2716_v40  ;;  %3147 = vperm.xlu2 %3414, %v5607_v3   ;;  %v3127_v3 = vpop.permute.xlu1 %3126  ;;  %v2735_v40 = vperm.slane %v2514_v13, 3 }
 0x416   :  { %3000 = vst [vmem:[#allocation1 + $0x1] ss:$9 sm:$0xff] %v2717_v9  ;;  %v3227_v56 = vperm.slane %v3127_v3, %v5693_v14  ;;  %v2736_v9 = vperm.slane %v2514_v13, 4 }
 0x417   :  { %3001 = vst [vmem:[#allocation1 + $0x2] ss:$9 sm:$0xff] %v2718_v19  ;;  %v2737_v19 = vperm.slane %v2514_v13, 5 }
 0x418   :  { %3002 = vst [vmem:[#allocation1 + $0x3] ss:$9 sm:$0xff] %v2719_v50  ;;  %v3229_v32 = vsel %vm3228_vm13, %v3227_v56, %v5678_v41  ;;  %v2327_v41 = vmul.f32 %v5639_v21, %v2291_v45 }
 0x419   :  { %3003 = vst [vmem:[#allocation1 + $0x4] ss:$9 sm:$0xff] %v2720_v30  ;;  %v5707_v62 = vsel %vm3232_vm14, %v3231_v52, %v3229_v32  ;;  %v2739_v30 = vperm.slane %v2514_v13, 7 }
 0x41a   :  { %3004 = vst [vmem:[#allocation1 + $0x5] ss:$9 sm:$0xff] %v2721_v54 }
 0x41b   :  { %3005 = vst [vmem:[#allocation1 + $0x6] ss:$9 sm:$0xff] %v2722_v61 }
 0x41c   :  { %3006 = vst [vmem:[#allocation1 + $0x7] ss:$9 sm:$0xff] %v2723_v11 }
 0x41f   :  { %v2377_v47 = vpop.xlane.xlu1 %2376 }
 0x420   :  { %v2419_v17 = vadd.f32 %v5189_v29, %v2377_v47 }
 0x422   :  { %v2483_v50 = vmul.f32 0.01, %v2419_v17  ;;  %vm2451_vm6 = vcmp.gt.f32.partialorder %v2419_v17, 0.0 }
 0x423   :  { %v5698_v16 = vld [vmem:[#allocation1] sm:$0xff] }
 0x424   :  { %3008 = vst [vmem:[#allocation1] ss:$9 sm:$0xff] %v2724_v25  ;;  %v2515_v42 = vsel %vm2451_vm6, %v2419_v17, %v2483_v50 }
 0x425   :  { %3009 = vst [vmem:[#allocation1 + $0x1] ss:$9 sm:$0xff] %v2725_v15  ;;  %2392 = vadd.xlane.f32.xlu0 %v2329_v44  ;;  %v2740_v54 = vperm.slane %v2515_v42, 0  ;;  %v2741_v61 = vperm.slane %v2515_v42, 1  ;;  %v2742_v11 = vperm.slane %v2515_v42, 2  ;;  %v2743_v10 = vperm.slane %v2515_v42, 3  ;;  %v3136_v15 = vpop.permute.xlu0 %3135 }
 0x426   :  { %3010 = vst [vmem:[#allocation1 + $0x2] ss:$9 sm:$0xff] %v2726_v18  ;;  %v2744_v2 = vperm.slane %v2515_v42, 4  ;;  %v2746_v48 = vperm.slane %v2515_v42, 6  ;;  %v2747_v1 = vperm.slane %v2515_v42, 7 }
 0x427   :  { %3011 = vst [vmem:[#allocation1 + $0x3] ss:$9 sm:$0xff] %v2727_v55  ;;  %v5727_v55 = vadd.s32 4294967232, %v5593_v33 }
 0x428   :  { %3012 = vst [vmem:[#allocation1 + $0x4] ss:$9 sm:$0xff] %v2728_v6 }
 0x429   :  { %3013 = vst [vmem:[#allocation1 + $0x5] ss:$9 sm:$0xff] %v2729_v5 }
 0x42a   :  { %3014 = vst [vmem:[#allocation1 + $0x6] ss:$9 sm:$0xff] %v2730_v31 }
 0x42b   :  { %3015 = vst [vmem:[#allocation1 + $0x7] ss:$9 sm:$0xff] %v2731_v43 }
 0x42d   :  { %v2381_v56 = vpop.xlane.xlu0 %2380 }
 0x42e   :  { %v2421_v8 = vadd.f32 %v5189_v29, %v2381_v56 }
 0x42f   :  { %v2379_v26 = vpop.xlane.xlu2 %2378 }
 0x430   :  { %v2420_v25 = vadd.f32 %v5189_v29, %v2379_v26  ;;  %vm2453_vm11 = vcmp.gt.f32.partialorder %v2421_v8, 0.0 }
 0x432   :  { %2388 = vadd.xlane.f32.xlu1 %v2327_v41  ;;  %v3016_v36 = vld [vmem:[#allocation1] sm:$0xff]  ;;  %v2484_v21 = vmul.f32 0.01, %v2420_v25  ;;  %vm2452_vm8 = vcmp.gt.f32.partialorder %v2420_v25, 0.0  ;;  %v2485_v41 = vmul.f32 0.01, %v2421_v8 }
 0x433   :  { %3017 = vst [vmem:[#allocation1] ss:$9 sm:$0xff] %v2732_v46 }
 0x434   :  { %3018 = vst [vmem:[#allocation1 + $0x1] ss:$9 sm:$0xff] %v2733_v12  ;;  %v2516_v3 = vsel %vm2452_vm8, %v2420_v25, %v2484_v21  ;;  %vm3252_vm8 = vcmask 851712  }
 0x435   :  { %3019 = vst [vmem:[#allocation1 + $0x2] ss:$9 sm:$0xff] %v2734_v39  ;;  %v2748_v18 = vperm.slane %v2516_v3, 0  ;;  %v2749_v51 = vperm.slane %v2516_v3, 1  ;;  %v2750_v6 = vperm.slane %v2516_v3, 2  ;;  %v2751_v5 = vperm.slane %v2516_v3, 3 }
 0x436   :  { %3020 = vst [vmem:[#allocation1 + $0x3] ss:$9 sm:$0xff] %v2735_v40  ;;  %v2752_v31 = vperm.slane %v2516_v3, 4  ;;  %v2753_v32 = vperm.slane %v2516_v3, 5  ;;  %v2754_v53 = vperm.slane %v2516_v3, 6  ;;  %v2755_v13 = vperm.slane %v2516_v3, 7 }
 0x437   :  { %3021 = vst [vmem:[#allocation1 + $0x4] ss:$9 sm:$0xff] %v2736_v9  ;;  %v3133_v44 = vpop.permute.xlu1 %3132 }
 0x438   :  { %3022 = vst [vmem:[#allocation1 + $0x5] ss:$9 sm:$0xff] %v2737_v19  ;;  %v3235_v20 = vperm.slane %v3133_v44, %v5727_v55 }
 0x439   :  { %3023 = vst [vmem:[#allocation1 + $0x6] ss:$9 sm:$0xff] %v2738_v22  ;;  %3162 = vperm.xlu0 %3415, %v5681_v34   ;;  %v2745_v34 = vperm.slane %v2515_v42, 5 }
 0x43a   :  { %3024 = vst [vmem:[#allocation1 + $0x7] ss:$9 sm:$0xff] %v2739_v30  ;;  %v3237_v43 = vsel %vm3236_vm9, %v3235_v20, %v5707_v62 }
 0x43e   :  { %2390 = vadd.xlane.f32.xlu2 %v2328_v7 }
 0x441   :  { %v5719_v27 = vld [vmem:[#allocation1] sm:$0xff]  ;;  %3171 = vperm.xlu0 %3415, %v3016_v36  }
 0x442   :  { %3026 = vst [vmem:[#allocation1] ss:$9 sm:$0xff] %v2740_v54 }
 0x443   :  { %3027 = vst [vmem:[#allocation1 + $0x1] ss:$9 sm:$0xff] %v2741_v61 }
 0x444   :  { %3028 = vst [vmem:[#allocation1 + $0x2] ss:$9 sm:$0xff] %v2742_v11  ;;  %v3139_v11 = vpop.permute.xlu2 %3138 }
 0x445   :  { %3029 = vst [vmem:[#allocation1 + $0x3] ss:$9 sm:$0xff] %v2743_v10  ;;  %v3145_v10 = vpop.permute.xlu0 %3144 }
 0x446   :  { %3030 = vst [vmem:[#allocation1 + $0x4] ss:$9 sm:$0xff] %v2744_v2 }
 0x447   :  { %3031 = vst [vmem:[#allocation1 + $0x5] ss:$9 sm:$0xff] %v2745_v34 }
 0x448   :  { %3032 = vst [vmem:[#allocation1 + $0x6] ss:$9 sm:$0xff] %v2746_v48 }
 0x449   :  { %3033 = vst [vmem:[#allocation1 + $0x7] ss:$9 sm:$0xff] %v2747_v1 }
 0x44b   :  { %3150 = vperm.xlu1 %3413, %v5620_v58   ;;  %v3239_v58 = vperm.slane %v3136_v15, %v5724_v57 }
 0x44d   :  { %v5736_v45 = vsel %vm3240_vm10, %v3239_v58, %v3237_v43  ;;  %v5752_v58 = vadd.s32 4294967200, %v5593_v33 }
 0x450   :  { %v3034_v52 = vld [vmem:[#allocation1] sm:$0xff] }
 0x451   :  { %3035 = vst [vmem:[#allocation1] ss:$9 sm:$0xff] %v2748_v18 }
 0x452   :  { %3036 = vst [vmem:[#allocation1 + $0x1] ss:$9 sm:$0xff] %v2749_v51 }
 0x453   :  { %3159 = vperm.xlu1 %3413, %v5661_v23   ;;  %3037 = vst [vmem:[#allocation1 + $0x2] ss:$9 sm:$0xff] %v2750_v6  ;;  %v2517_v23 = vsel %vm2453_vm11, %v2421_v8, %v2485_v41 }
 0x454   :  { %3038 = vst [vmem:[#allocation1 + $0x3] ss:$9 sm:$0xff] %v2751_v5  ;;  %v2756_v62 = vperm.slane %v2517_v23, 0  ;;  %v2757_v47 = vperm.slane %v2517_v23, 1  ;;  %v2758_v12 = vperm.slane %v2517_v23, 2  ;;  %v2759_v39 = vperm.slane %v2517_v23, 3 }
 0x455   :  { %3039 = vst [vmem:[#allocation1 + $0x4] ss:$9 sm:$0xff] %v2752_v31  ;;  %v2760_v17 = vperm.slane %v2517_v23, 4  ;;  %v2761_v40 = vperm.slane %v2517_v23, 5  ;;  %v2763_v35 = vperm.slane %v2517_v23, 7  ;;  %v5755_v31 = vadd.s32 4294967208, %v5593_v33 }
 0x456   :  { %3040 = vst [vmem:[#allocation1 + $0x5] ss:$9 sm:$0xff] %v2753_v32  ;;  %3156 = vperm.xlu2 %3414, %v5642_v59  }
 0x457   :  { %3041 = vst [vmem:[#allocation1 + $0x6] ss:$9 sm:$0xff] %v2754_v53  ;;  %v3251_v53 = vperm.slane %v3145_v10, %v5752_v58 }
 0x458   :  { %3042 = vst [vmem:[#allocation1 + $0x7] ss:$9 sm:$0xff] %v2755_v13 }
 0x45a   :  { %v2387_v51 = vpop.xlane.xlu0 %2386 }
 0x45b   :  { %3168 = vperm.xlu1 %3413, %v5698_v16   ;;  %v2762_v16 = vperm.slane %v2517_v23, 6 }
 0x45e   :  { %3165 = vperm.xlu2 %3414, %v5686_v60  }
 0x45f   :  { %v3043_v46 = vld [vmem:[#allocation1] sm:$0xff] }
 0x460   :  { %3044 = vst [vmem:[#allocation1] ss:$9 sm:$0xff] %v2756_v62  ;;  %3180 = vperm.xlu0 %3415, %v3043_v46  }
 0x461   :  { %3045 = vst [vmem:[#allocation1 + $0x1] ss:$9 sm:$0xff] %v2757_v47 }
 0x462   :  { %v2383_v36 = vpop.xlane.xlu1 %2382  ;;  %3046 = vst [vmem:[#allocation1 + $0x2] ss:$9 sm:$0xff] %v2758_v12 }
 0x463   :  { %3177 = vperm.xlu1 %3413, %v3034_v52   ;;  %v2422_v59 = vadd.f32 %v5189_v29, %v2383_v36  ;;  %3047 = vst [vmem:[#allocation1 + $0x3] ss:$9 sm:$0xff] %v2759_v39  ;;  %v2424_v52 = vadd.f32 %v5189_v29, %v2387_v51 }
 0x464   :  { %3048 = vst [vmem:[#allocation1 + $0x4] ss:$9 sm:$0xff] %v2760_v17 }
 0x465   :  { %v2486_v9 = vmul.f32 0.01, %v2422_v59  ;;  %3049 = vst [vmem:[#allocation1 + $0x5] ss:$9 sm:$0xff] %v2761_v40  ;;  %vm2454_vm12 = vcmp.gt.f32.partialorder %v2422_v59, 0.0  ;;  %vm2456_vm6 = vcmp.gt.f32.partialorder %v2424_v52, 0.0 }
 0x466   :  { %3050 = vst [vmem:[#allocation1 + $0x6] ss:$9 sm:$0xff] %v2762_v16  ;;  %3174 = vperm.xlu2 %3414, %v5719_v27   ;;  %v5744_v27 = vadd.s32 4294967216, %v5593_v33  ;;  %v2488_v43 = vmul.f32 0.01, %v2424_v52 }
 0x467   :  { %3051 = vst [vmem:[#allocation1 + $0x7] ss:$9 sm:$0xff] %v2763_v35  ;;  %v2518_v60 = vsel %vm2454_vm12, %v2422_v59, %v2486_v9  ;;  %vm3256_vm12 = vcmask 917312  }
 0x468   :  { %v2764_v19 = vperm.slane %v2518_v60, 0  ;;  %v2765_v22 = vperm.slane %v2518_v60, 1  ;;  %v2766_v50 = vperm.slane %v2518_v60, 2  ;;  %v2767_v28 = vperm.slane %v2518_v60, 3 }
 0x469   :  { %v2768_v42 = vperm.slane %v2518_v60, 4  ;;  %v2769_v7 = vperm.slane %v2518_v60, 5  ;;  %v2770_v54 = vperm.slane %v2518_v60, 6  ;;  %v2771_v61 = vperm.slane %v2518_v60, 7 }
 0x46a   :  { %v3243_v34 = vperm.slane %v3139_v11, %v5744_v27  ;;  %v2520_v13 = vsel %vm2456_vm6, %v2424_v52, %v2488_v43 }
 0x46b   :  { %v2780_v23 = vperm.slane %v2520_v13, 0  ;;  %v2781_v62 = vperm.slane %v2520_v13, 1  ;;  %v2782_v46 = vperm.slane %v2520_v13, 2  ;;  %v2783_v12 = vperm.slane %v2520_v13, 3 }
 0x46c   :  { %v3245_v1 = vsel %vm3244_vm2, %v3243_v34, %v5736_v45  ;;  %v2784_v36 = vperm.slane %v2520_v13, 4  ;;  %v2785_v39 = vperm.slane %v2520_v13, 5  ;;  %v2786_v17 = vperm.slane %v2520_v13, 6 }
 0x46d   :  { %v2787_v59 = vperm.slane %v2520_v13, 7  ;;  %v5765_v10 = vpop.permute.xlu0 %3153 }
 0x46e   :  { %v3052_v30 = vld [vmem:[#allocation1] sm:$0xff] }
 0x46f   :  { %3053 = vst [vmem:[#allocation1] ss:$9 sm:$0xff] %v2764_v19  ;;  %3183 = vperm.xlu2 %3414, %v3052_v30  }
 0x470   :  { %3054 = vst [vmem:[#allocation1 + $0x1] ss:$9 sm:$0xff] %v2765_v22  ;;  %v2385_v26 = vpop.xlane.xlu2 %2384 }
 0x471   :  { %3055 = vst [vmem:[#allocation1 + $0x2] ss:$9 sm:$0xff] %v2766_v50  ;;  %v2423_v25 = vadd.f32 %v5189_v29, %v2385_v26 }
 0x472   :  { %3056 = vst [vmem:[#allocation1 + $0x3] ss:$9 sm:$0xff] %v2767_v28 }
 0x473   :  { %3057 = vst [vmem:[#allocation1 + $0x4] ss:$9 sm:$0xff] %v2768_v42  ;;  %vm2455_vm15 = vcmp.gt.f32.partialorder %v2423_v25, 0.0  ;;  %v2487_v48 = vmul.f32 0.01, %v2423_v25 }
 0x474   :  { %3058 = vst [vmem:[#allocation1 + $0x5] ss:$9 sm:$0xff] %v2769_v7 }
 0x475   :  { %3059 = vst [vmem:[#allocation1 + $0x6] ss:$9 sm:$0xff] %v2770_v54  ;;  %v2519_v21 = vsel %vm2455_vm15, %v2423_v25, %v2487_v48 }
 0x476   :  { %3060 = vst [vmem:[#allocation1 + $0x7] ss:$9 sm:$0xff] %v2771_v61  ;;  %v2772_v15 = vperm.slane %v2519_v21, 0  ;;  %v2773_v3 = vperm.slane %v2519_v21, 1  ;;  %v2774_v18 = vperm.slane %v2519_v21, 2  ;;  %v2775_v44 = vperm.slane %v2519_v21, 3 }
 0x477   :  { %v2776_v6 = vperm.slane %v2519_v21, 4  ;;  %v2777_v56 = vperm.slane %v2519_v21, 5  ;;  %v2778_v5 = vperm.slane %v2519_v21, 6  ;;  %v2779_v20 = vperm.slane %v2519_v21, 7 }
 0x478   :  { %v3148_v30 = vpop.permute.xlu2 %3147  ;;  %v5763_v61 = vadd.s32 4294967192, %v5593_v33 }
 0x47a   :  { %v3142_v32 = vpop.permute.xlu1 %3141  ;;  %v3255_v26 = vperm.slane %v3148_v30, %v5763_v61 }
 0x47b   :  { %v3247_v8 = vperm.slane %v3142_v32, %v5755_v31 }
 0x47d   :  { %v3061_v2 = vld [vmem:[#allocation1] sm:$0xff]  ;;  %v3249_v45 = vsel %vm3248_vm4, %v3247_v8, %v3245_v1 }
 0x47e   :  { %3186 = vperm.xlu1 %3413, %v3061_v2   ;;  %3062 = vst [vmem:[#allocation1] ss:$9 sm:$0xff] %v2772_v15  ;;  %v3253_v41 = vsel %vm3252_vm8, %v3251_v53, %v3249_v45 }
 0x47f   :  { %3063 = vst [vmem:[#allocation1 + $0x1] ss:$9 sm:$0xff] %v2773_v3  ;;  %v3257_v34 = vsel %vm3256_vm12, %v3255_v26, %v3253_v41 }
 0x480   :  { %3064 = vst [vmem:[#allocation1 + $0x2] ss:$9 sm:$0xff] %v2774_v18 }
 0x481   :  { %3065 = vst [vmem:[#allocation1 + $0x3] ss:$9 sm:$0xff] %v2775_v44 }
 0x482   :  { %3066 = vst [vmem:[#allocation1 + $0x4] ss:$9 sm:$0xff] %v2776_v6 }
 0x483   :  { %3067 = vst [vmem:[#allocation1 + $0x5] ss:$9 sm:$0xff] %v2777_v56 }
 0x484   :  { %3068 = vst [vmem:[#allocation1 + $0x6] ss:$9 sm:$0xff] %v2778_v5 }
 0x485   :  { %3069 = vst [vmem:[#allocation1 + $0x7] ss:$9 sm:$0xff] %v2779_v20 }
 0x48c   :  { %v3070_v47 = vld [vmem:[#allocation1] sm:$0xff] }
 0x48d   :  { %3189 = vperm.xlu0 %3415, %v3070_v47   ;;  %3071 = vst [vmem:[#allocation1] ss:$9 sm:$0xff] %v2780_v23 }
 0x48e   :  { %3072 = vst [vmem:[#allocation1 + $0x1] ss:$9 sm:$0xff] %v2781_v62 }
 0x48f   :  { %3073 = vst [vmem:[#allocation1 + $0x2] ss:$9 sm:$0xff] %v2782_v46 }
 0x490   :  { %3074 = vst [vmem:[#allocation1 + $0x3] ss:$9 sm:$0xff] %v2783_v12  ;;  %v3258_v12 = vadd.s32 4294967184, %v5593_v33 }
 0x491   :  { %3075 = vst [vmem:[#allocation1 + $0x4] ss:$9 sm:$0xff] %v2784_v36 }
 0x492   :  { %3076 = vst [vmem:[#allocation1 + $0x5] ss:$9 sm:$0xff] %v2785_v39 }
 0x493   :  { %3077 = vst [vmem:[#allocation1 + $0x6] ss:$9 sm:$0xff] %v2786_v17  ;;  %v3262_v17 = vadd.s32 4294967176, %v5593_v33 }
 0x494   :  { %3078 = vst [vmem:[#allocation1 + $0x7] ss:$9 sm:$0xff] %v2787_v59 }
 0x498   :  { %v2393_v18 = vpop.xlane.xlu0 %2392 }
 0x499   :  { %v2427_v52 = vadd.f32 %v5189_v29, %v2393_v18 }
 0x49b   :  { %v3079_v16 = vld [vmem:[#allocation1] sm:$0xff]  ;;  %v2491_v32 = vmul.f32 0.01, %v2427_v52  ;;  %vm2459_vm6 = vcmp.gt.f32.partialorder %v2427_v52, 0.0 }
 0x49c   :  { %3192 = vperm.xlu2 %3414, %v3079_v16  }
 0x49d   :  { %v2523_v43 = vsel %vm2459_vm6, %v2427_v52, %v2491_v32 }
 0x49e   :  { %v2804_v8 = vperm.slane %v2523_v43, 0  ;;  %v2805_v53 = vperm.slane %v2523_v43, 1  ;;  %v2806_v13 = vperm.slane %v2523_v43, 2  ;;  %v2807_v41 = vperm.slane %v2523_v43, 3 }
 0x49f   :  { %v2809_v23 = vperm.slane %v2523_v43, 5  ;;  %v2810_v62 = vperm.slane %v2523_v43, 6  ;;  %v2811_v47 = vperm.slane %v2523_v43, 7 }
 0x4a5   :  { %v2389_v40 = vpop.xlane.xlu1 %2388 }
 0x4a6   :  { %v2425_v9 = vadd.f32 %v5189_v29, %v2389_v40  ;;  %v3263_v40 = vperm.slane %v5765_v10, %v3262_v17 }
 0x4a8   :  { %vm2457_vm11 = vcmp.gt.f32.partialorder %v2425_v9, 0.0  ;;  %v2489_v35 = vmul.f32 0.01, %v2425_v9 }
 0x4aa   :  { %v2521_v60 = vsel %vm2457_vm11, %v2425_v9, %v2489_v35  ;;  %vm3260_vm11 = vcmask 982912  }
 0x4ab   :  { %v2788_v19 = vperm.slane %v2521_v60, 0  ;;  %v2789_v22 = vperm.slane %v2521_v60, 1  ;;  %v2790_v50 = vperm.slane %v2521_v60, 2  ;;  %v2791_v28 = vperm.slane %v2521_v60, 3 }
 0x4ac   :  { %v2792_v42 = vperm.slane %v2521_v60, 4  ;;  %v2793_v7 = vperm.slane %v2521_v60, 5  ;;  %v2794_v54 = vperm.slane %v2521_v60, 6  ;;  %v2795_v11 = vperm.slane %v2521_v60, 7 }
 0x4ad   :  { %3080 = vst [vmem:[#allocation1] ss:$9 sm:$0xff] %v2788_v19  ;;  %v3163_v19 = vpop.permute.xlu0 %3162 }
 0x4ae   :  { %3081 = vst [vmem:[#allocation1 + $0x1] ss:$9 sm:$0xff] %v2789_v22 }
 0x4af   :  { %3082 = vst [vmem:[#allocation1 + $0x2] ss:$9 sm:$0xff] %v2790_v50 }
 0x4b0   :  { %3083 = vst [vmem:[#allocation1 + $0x3] ss:$9 sm:$0xff] %v2791_v28 }
 0x4b1   :  { %3084 = vst [vmem:[#allocation1 + $0x4] ss:$9 sm:$0xff] %v2792_v42  ;;  %v2391_v2 = vpop.xlane.xlu2 %2390 }
 0x4b2   :  { %3085 = vst [vmem:[#allocation1 + $0x5] ss:$9 sm:$0xff] %v2793_v7  ;;  %v2426_v25 = vadd.f32 %v5189_v29, %v2391_v2  ;;  %v2808_v29 = vperm.slane %v2523_v43, 4 }
 0x4b3   :  { %3086 = vst [vmem:[#allocation1 + $0x6] ss:$9 sm:$0xff] %v2794_v54  ;;  %v3269_v54 = vperm.slane %v3163_v19, %v5612_v63 }
 0x4b4   :  { %3087 = vst [vmem:[#allocation1 + $0x7] ss:$9 sm:$0xff] %v2795_v11  ;;  %vm2458_vm15 = vcmp.gt.f32.partialorder %v2426_v25, 0.0  ;;  %v2490_v48 = vmul.f32 0.01, %v2426_v25 }
 0x4b5   :  { %v3172_v42 = vpop.permute.xlu0 %3171 }
 0x4b6   :  { %v2522_v1 = vsel %vm2458_vm15, %v2426_v25, %v2490_v48  ;;  %vm3264_vm15 = vcmask 1048512  }
 0x4b7   :  { %v2796_v21 = vperm.slane %v2522_v1, 0  ;;  %v2797_v15 = vperm.slane %v2522_v1, 1  ;;  %v2798_v3 = vperm.slane %v2522_v1, 2  ;;  %v2799_v51 = vperm.slane %v2522_v1, 3 }
 0x4b8   :  { %v2800_v6 = vperm.slane %v2522_v1, 4  ;;  %v2801_v56 = vperm.slane %v2522_v1, 5  ;;  %v2802_v5 = vperm.slane %v2522_v1, 6  ;;  %v2803_v20 = vperm.slane %v2522_v1, 7 }
 0x4b9   :  { %v3157_v9 = vpop.permute.xlu2 %3156 }
 0x4ba   :  { %v3266_v28 = vperm.slane %v3157_v9, %v5593_v33  ;;  %v3275_v33 = vperm.slane %v3172_v42, %v5671_v24 }
 0x4bb   :  { %v3088_v44 = vld [vmem:[#allocation1] sm:$0xff] }
 0x4bc   :  { %3195 = vperm.xlu1 %3413, %v3088_v44   ;;  %3089 = vst [vmem:[#allocation1] ss:$9 sm:$0xff] %v2796_v21 }
 0x4bd   :  { %3090 = vst [vmem:[#allocation1 + $0x1] ss:$9 sm:$0xff] %v2797_v15  ;;  %v3151_v36 = vpop.permute.xlu1 %3150 }
 0x4be   :  { %3091 = vst [vmem:[#allocation1 + $0x2] ss:$9 sm:$0xff] %v2798_v3  ;;  %v3259_v39 = vperm.slane %v3151_v36, %v3258_v12 }
 0x4bf   :  { %3092 = vst [vmem:[#allocation1 + $0x3] ss:$9 sm:$0xff] %v2799_v51 }
 0x4c0   :  { %3093 = vst [vmem:[#allocation1 + $0x4] ss:$9 sm:$0xff] %v2800_v6  ;;  %v3261_v59 = vsel %vm3260_vm11, %v3259_v39, %v3257_v34 }
 0x4c1   :  { %3094 = vst [vmem:[#allocation1 + $0x5] ss:$9 sm:$0xff] %v2801_v56  ;;  %v3265_v16 = vsel %vm3264_vm15, %v3263_v40, %v3261_v59  ;;  %v3166_v60 = vpop.permute.xlu2 %3165 }
 0x4c2   :  { %3095 = vst [vmem:[#allocation1 + $0x6] ss:$9 sm:$0xff] %v2802_v5  ;;  %v3271_v2 = vperm.slane %v3166_v60, %v5652_v0 }
 0x4c3   :  { %3096 = vst [vmem:[#allocation1 + $0x7] ss:$9 sm:$0xff] %v2803_v20 }
 0x4c5   :  { %v3160_v35 = vpop.permute.xlu1 %3159 }
 0x4c6   :  { %v3267_v50 = vperm.slane %v3160_v35, %v5596_v49 }
 0x4c8   :  { %v3268_v7 = vsel %vm3208_vm5, %v3267_v50, %v3266_v28  ;;  %vm3298_vm5 = vcmask 1040384  }
 0x4c9   :  { %v3175_v30 = vpop.permute.xlu2 %3174  ;;  %v3270_v11 = vsel %vm3212_vm7, %v3269_v54, %v3268_v7  ;;  %vm3303_vm7 = vcmp.lt.s32.totalorder %v3203_v38, 256 }
 0x4ca   :  { %v3097_v45 = vld [vmem:[#allocation1] sm:$0xff]  ;;  %v3272_v25 = vsel %vm3216_vm0, %v3271_v2, %v3270_v11  ;;  %v3277_v63 = vperm.slane %v3175_v30, %v5693_v14 }
 0x4cb   :  { %3198 = vperm.xlu0 %3415, %v3097_v45   ;;  %3098 = vst [vmem:[#allocation1] ss:$9 sm:$0xff] %v2804_v8 }
 0x4cc   :  { %3099 = vst [vmem:[#allocation1 + $0x1] ss:$9 sm:$0xff] %v2805_v53 }
 0x4cd   :  { %3100 = vst [vmem:[#allocation1 + $0x2] ss:$9 sm:$0xff] %v2806_v13  ;;  %v3169_v22 = vpop.permute.xlu1 %3168 }
 0x4ce   :  { %3101 = vst [vmem:[#allocation1 + $0x3] ss:$9 sm:$0xff] %v2807_v41  ;;  %v3273_v10 = vperm.slane %v3169_v22, %v5657_v4 }
 0x4cf   :  { %3102 = vst [vmem:[#allocation1 + $0x4] ss:$9 sm:$0xff] %v2808_v29 }
 0x4d0   :  { %3103 = vst [vmem:[#allocation1 + $0x5] ss:$9 sm:$0xff] %v2809_v23  ;;  %v3274_v49 = vsel %vm3220_vm1, %v3273_v10, %v3272_v25 }
 0x4d1   :  { %3104 = vst [vmem:[#allocation1 + $0x6] ss:$9 sm:$0xff] %v2810_v62  ;;  %v3184_v48 = vpop.permute.xlu2 %3183  ;;  %v3276_v1 = vsel %vm3224_vm3, %v3275_v33, %v3274_v49 }
 0x4d2   :  { %3105 = vst [vmem:[#allocation1 + $0x7] ss:$9 sm:$0xff] %v2811_v47  ;;  %v3181_v34 = vpop.permute.xlu0 %3180  ;;  %v3278_v4 = vsel %vm3228_vm13, %v3277_v63, %v3276_v1  ;;  %v3283_v24 = vperm.slane %v3184_v48, %v5724_v57 }
 0x4d3   :  { %v3281_v0 = vperm.slane %v3181_v34, %v5727_v55 }
 0x4d5   :  { %v3178_v26 = vpop.permute.xlu1 %3177 }
 0x4d6   :  { %v3279_v21 = vperm.slane %v3178_v26, %v5696_v37 }
 0x4d8   :  { %v3280_v3 = vsel %vm3232_vm14, %v3279_v21, %v3278_v4 }
 0x4d9   :  { %v3106_v46 = vld [vmem:[#allocation1] sm:$0xff]  ;;  %v3282_v44 = vsel %vm3236_vm9, %v3281_v0, %v3280_v3 }
 0x4da   :  { %3201 = vperm.xlu2 %3414, %v3106_v46   ;;  %v3284_v14 = vsel %vm3240_vm10, %v3283_v24, %v3282_v44 }
 0x4f0   :  { %v3187_v15 = vpop.permute.xlu1 %3186 }
 0x4f1   :  { %v3285_v6 = vperm.slane %v3187_v15, %v5744_v27 }
 0x4f3   :  { %v3286_v52 = vsel %vm3244_vm2, %v3285_v6, %v3284_v14 }
 0x4f6   :  { %v3193_v18 = vpop.permute.xlu2 %3192 }
 0x4f7   :  { %v3289_v55 = vperm.slane %v3193_v18, %v5752_v58 }
 0x4ff   :  { %v3190_v51 = vpop.permute.xlu0 %3189 }
 0x500   :  { %v3287_v56 = vperm.slane %v3190_v51, %v5755_v31 }
 0x502   :  { %v3288_v5 = vsel %vm3248_vm4, %v3287_v56, %v3286_v52 }
 0x503   :  { %v3290_v8 = vsel %vm3252_vm8, %v3289_v55, %v3288_v5 }
 0x52e   :  { %v3196_v37 = vpop.permute.xlu1 %3195 }
 0x52f   :  { %v3291_v20 = vperm.slane %v3196_v37, %v5763_v61 }
 0x531   :  { %v3292_v57 = vsel %vm3256_vm12, %v3291_v20, %v3290_v8 }
 0x534   :  { %v3202_v32 = vpop.permute.xlu2 %3201 }
 0x535   :  { %v3295_v53 = vperm.slane %v3202_v32, %v3262_v17 }
 0x53d   :  { %v3199_v43 = vpop.permute.xlu0 %3198 }
 0x53e   :  { %v3293_v27 = vperm.slane %v3199_v43, %v3258_v12 }
 0x540   :  { %v3294_v31 = vsel %vm3260_vm11, %v3293_v27, %v3292_v57 }
 0x541   :  { %v3296_v61 = vsel %vm3264_vm15, %v3295_v53, %v3294_v31 }
 0x542   :  { %v3297_v58 = vrot.slane %v3296_v61, 7 }
 0x544   :  { %v3299_v45 = vsel %vm3298_vm5, %v3265_v16, %v3297_v58 }
 0x545   :  { %3305 = vst.msk [vmem:[#allocation4] sm:$0x3] %vm3303_vm7, %v3299_v45 }
 0x546   :  { %3316 = dma.vmem_to_hbm [thread:$0]  %s3312_s25, 32, %s3314_s26, [#allocation5]  }
 0x547   :  { %3576 = dma.done.wait [#allocation5], 32  }
 0x548   :  { %3577 = vsyncadd [#allocation5], 4294967264 }
 0x549   :  { %3321 = vsyncpa [#allocation5], 1 }

</bundles_post_ra>
